<compile_context>
chip_gen: v7x
topology: tpu7x:2x2x1
jax: 0.10.0
libtpu: 0.0.40
codegen_flags: <defaults>
</compile_context>

<pallas_src>
import jax
import jax.numpy as jnp
from jax import lax
from jax.experimental import pallas as pl
from jax.experimental.pallas import tpu as pltpu


def _leaky_relu(x, slope=0.01):
    # nn.LeakyReLU default negative_slope = 0.01
    return jnp.where(x > 0, x, slope * x)


def generator0_kernel(x_ref, w1_ref, b1_ref, w2_ref, b2_ref, w3_ref, b3_ref, o_ref):
    # Fused 3-layer MLP on one batch tile; everything resident in VMEM.
    # f32 matmuls with HIGHEST precision (multi-pass MXU) + f32 VPU/EUP activations.
    x = x_ref[...]                                             # f32 (bt, in_dim)

    h1 = jnp.dot(x, w1_ref[...],
                 preferred_element_type=jnp.float32,
                 precision=lax.Precision.HIGHEST)
    h1 = _leaky_relu(h1 + b1_ref[...])

    h2 = jnp.dot(h1, w2_ref[...],
                 preferred_element_type=jnp.float32,
                 precision=lax.Precision.HIGHEST)
    h2 = _leaky_relu(h2 + b2_ref[...])

    h3 = jnp.dot(h2, w3_ref[...],
                 preferred_element_type=jnp.float32,
                 precision=lax.Precision.HIGHEST)
    o_ref[...] = jnp.tanh(h3 + b3_ref[...])                    # f32 output (lane-dense)


def _choose_batch_tile(B, max_tile=1024):
    """Pick (bt, pad_b).

    Preference order:
      * no padding / no output slice (bt divides B),
      * an even number of grid steps >= 2 (v7x has 2 TensorCores; "parallel" shards steps),
      * as few steps as possible (v5e/v6e run the grid serially; ~0.35-0.6 us/step),
      * bt a multiple of 8 sublanes (or the full-extent block, which waives the rule).
    """
    if B <= 2 * max_tile and B % 16 == 0:
        return B // 2, B                 # exactly 2 even steps, no padding
    if B <= max_tile:
        return B, B                      # single full-extent block (no padding)
    steps = pl.cdiv(B, max_tile)
    if steps % 2:
        steps += 1                       # even step count for v7x megacore
    bt = ((pl.cdiv(B, steps) + 7) // 8) * 8
    return bt, steps * bt                # fallback path: may require padding


def generator0_forward(x, params, *, max_batch_tile=1024):
    """x: (B, in_dim) float32. params: dict w1,b1,w2,b2,w3,b3 (weights pre-transposed)."""
    B, in_dim = x.shape
    mid_dim = params["w1"].shape[1]
    out_dim = params["w3"].shape[1]

    bt, pad_b = _choose_batch_tile(B, max_batch_tile)
    xp = x if pad_b == B else jnp.pad(x, ((0, pad_b - B), (0, 0)))  # fallback only

    w1, b1 = params["w1"], params["b1"]
    w2, b2 = params["w2"], params["b2"]
    w3, b3 = params["w3"], params["b3"]

    # Scoped VMEM budget from the actual tile footprint (default double-buffered residents
    # + pipelined x/out tiles + live f32 intermediates), 25% headroom, capped at 48 MiB
    # so it stays well inside v7x's 64 MiB physical VMEM per TensorCore.
    weight_bytes = 4 * (in_dim * mid_dim + mid_dim * mid_dim + mid_dim * out_dim) * 2
    bias_bytes = 4 * (2 * mid_dim + out_dim) * 2
    io_bytes = 2 * bt * in_dim * 4 + 2 * bt * out_dim * 4
    act_bytes = bt * mid_dim * 4 * 2 + bt * out_dim * 4
    vmem_limit = int((weight_bytes + bias_bytes + io_bytes + act_bytes) * 1.25) + (8 << 20)
    vmem_limit = min(vmem_limit, 48 << 20)

    out = pl.pallas_call(
        generator0_kernel,
        out_shape=jax.ShapeDtypeStruct((pad_b, out_dim), jnp.float32),
        grid=(pad_b // bt,),
        in_specs=[
            pl.BlockSpec((bt, in_dim), lambda i: (i, 0)),          # x tile (pipelined)
            pl.BlockSpec((in_dim, mid_dim), lambda i: (0, 0)),     # w1 (grid-invariant)
            pl.BlockSpec((1, mid_dim), lambda i: (0, 0)),          # b1
            pl.BlockSpec((mid_dim, mid_dim), lambda i: (0, 0)),    # w2
            pl.BlockSpec((1, mid_dim), lambda i: (0, 0)),          # b2
            pl.BlockSpec((mid_dim, out_dim), lambda i: (0, 0)),    # w3
            pl.BlockSpec((1, out_dim), lambda i: (0, 0)),          # b3
        ],
        out_specs=pl.BlockSpec((bt, out_dim), lambda i: (i, 0)),
        compiler_params=pltpu.CompilerParams(
            dimension_semantics=("parallel",),   # independent batch tiles -> both v7x TCs
            vmem_limit_bytes=vmem_limit,
        ),
    )(xp, w1, b1, w2, b2, w3, b3)

    return out if pad_b == B else out[:B]


def init_params(key, in_dim, mid_dim, out_dim):
    """PyTorch nn.Linear default init: U(-1/sqrt(fan_in), 1/sqrt(fan_in)) for W and b."""
    ks = jax.random.split(key, 6)

    def lin(kw, kb, fan_in, fan_out):
        bound = 1.0 / jnp.sqrt(jnp.float32(fan_in))
        w = jax.random.uniform(kw, (fan_in, fan_out), jnp.float32, -bound, bound)
        b = jax.random.uniform(kb, (1, fan_out), jnp.float32, -bound, bound)
        return w, b

    w1, b1 = lin(ks[0], ks[1], in_dim, mid_dim)
    w2, b2 = lin(ks[2], ks[3], mid_dim, mid_dim)
    w3, b3 = lin(ks[4], ks[5], mid_dim, out_dim)
    return {"w1": w1, "b1": b1, "w2": w2, "b2": b2, "w3": w3, "b3": b3}


def reference_forward(x, p):
    # Pure f32 reference (matches PyTorch nn.Linear semantics) with the same matmul precision.
    h1 = _leaky_relu(jnp.dot(x, p["w1"], preferred_element_type=jnp.float32,
                             precision=lax.Precision.HIGHEST) + p["b1"])
    h2 = _leaky_relu(jnp.dot(h1, p["w2"], preferred_element_type=jnp.float32,
                             precision=lax.Precision.HIGHEST) + p["b2"])
    return jnp.tanh(jnp.dot(h2, p["w3"], preferred_element_type=jnp.float32,
                            precision=lax.Precision.HIGHEST) + p["b3"])


if __name__ == "__main__":
    # Small shapes consistent with the module (out_dim = in_dim**2, hidden mid_dim).
    # B chosen so the tile divides it exactly: 2 even grid steps, no padding, no slice.
    B, IN_DIM, MID_DIM = 512, 16, 128
    OUT_DIM = IN_DIM ** 2  # 256

    key = jax.random.PRNGKey(0)
    kx, kp = jax.random.split(key)
    x = jax.random.normal(kx, (B, IN_DIM), dtype=jnp.float32)
    params = init_params(kp, IN_DIM, MID_DIM, OUT_DIM)

    out = jax.block_until_ready(generator0_forward(x, params))

    ref = reference_forward(x, params)
    assert out.shape == (B, OUT_DIM)
    max_err = float(jnp.max(jnp.abs(out - ref)))
    assert jnp.allclose(out, ref, atol=1e-4, rtol=1e-4), \
        f"mismatch vs f32 reference (max abs err {max_err})"

    print("KERNEL_OK")
</pallas_src>

<mosaic_0001>
module attributes {stable_mosaic.version = 11 : i64} {
  func.func @generator0_kernel(%arg0: i32, %arg1: memref<256x16xf32, #tpu.memory_space<vmem>>, %arg2: memref<16x128xf32, #tpu.memory_space<vmem>>, %arg3: memref<1x128xf32, #tpu.memory_space<vmem>>, %arg4: memref<128x128xf32, #tpu.memory_space<vmem>>, %arg5: memref<1x128xf32, #tpu.memory_space<vmem>>, %arg6: memref<128x256xf32, #tpu.memory_space<vmem>>, %arg7: memref<1x256xf32, #tpu.memory_space<vmem>>, %arg8: memref<256x256xf32, #tpu.memory_space<vmem>>) attributes {dimension_semantics = [#tpu.dimension_semantics<parallel>], iteration_bounds = array<i64: 2>, scalar_prefetch = 0 : i64, scratch_operands = 0 : i64, tpu.core_type = #tpu.core_type<tc>, window_params = [{transform_indices = @transform_0, window_bounds = array<i64: 256, 16>}, {pipeline_mode = #tpu.pipeline_mode<synchronous>, transform_indices = @transform_1, window_bounds = array<i64: 16, 128>}, {pipeline_mode = #tpu.pipeline_mode<synchronous>, transform_indices = @transform_2, window_bounds = array<i64: 1, 128>}, {pipeline_mode = #tpu.pipeline_mode<synchronous>, transform_indices = @transform_3, window_bounds = array<i64: 128, 128>}, {pipeline_mode = #tpu.pipeline_mode<synchronous>, transform_indices = @transform_4, window_bounds = array<i64: 1, 128>}, {pipeline_mode = #tpu.pipeline_mode<synchronous>, transform_indices = @transform_5, window_bounds = array<i64: 128, 256>}, {pipeline_mode = #tpu.pipeline_mode<synchronous>, transform_indices = @transform_6, window_bounds = array<i64: 1, 256>}, {transform_indices = @transform_7, window_bounds = array<i64: 256, 256>}]} {
    %c0 = arith.constant 0 : index
    %c0_0 = arith.constant 0 : index
    %0 = vector.load %arg1[%c0, %c0_0] : memref<256x16xf32, #tpu.memory_space<vmem>>, vector<256x16xf32>
    %c0_1 = arith.constant 0 : index
    %c0_2 = arith.constant 0 : index
    %1 = vector.load %arg2[%c0_1, %c0_2] : memref<16x128xf32, #tpu.memory_space<vmem>>, vector<16x128xf32>
    %cst = arith.constant dense<0.000000e+00> : vector<256x128xf32>
    %2 = tpu.matmul %0, %1, %cst {dimension_numbers = #tpu.dot_dimension_numbers<[1], [0], [0], [1], [0, 0, 1, 1], [], []>, precision = #tpu.contract_precision<fp32>} : vector<256x16xf32>, vector<16x128xf32>, vector<256x128xf32> -> vector<256x128xf32>
    %c0_3 = arith.constant 0 : index
    %c0_4 = arith.constant 0 : index
    %3 = vector.load %arg3[%c0_3, %c0_4] : memref<1x128xf32, #tpu.memory_space<vmem>>, vector<1x128xf32>
    %4 = vector.broadcast %3 : vector<1x128xf32> to vector<256x128xf32>
    %5 = arith.addf %2, %4 : vector<256x128xf32>
    %cst_5 = arith.constant 0.000000e+00 : f32
    %6 = vector.broadcast %cst_5 : f32 to vector<256x128xf32>
    %7 = arith.cmpf ogt, %5, %6 : vector<256x128xf32>
    %cst_6 = arith.constant 0.00999999977 : f32
    %8 = vector.broadcast %cst_6 : f32 to vector<256x128xf32>
    %9 = arith.mulf %8, %5 : vector<256x128xf32>
    %10 = arith.select %7, %5, %9 : vector<256x128xi1>, vector<256x128xf32>
    %c0_7 = arith.constant 0 : index
    %c0_8 = arith.constant 0 : index
    %11 = vector.load %arg4[%c0_7, %c0_8] : memref<128x128xf32, #tpu.memory_space<vmem>>, vector<128x128xf32>
    %cst_9 = arith.constant dense<0.000000e+00> : vector<256x128xf32>
    %12 = tpu.matmul %10, %11, %cst_9 {dimension_numbers = #tpu.dot_dimension_numbers<[1], [0], [0], [1], [0, 0, 1, 1], [], []>, precision = #tpu.contract_precision<fp32>} : vector<256x128xf32>, vector<128x128xf32>, vector<256x128xf32> -> vector<256x128xf32>
    %c0_10 = arith.constant 0 : index
    %c0_11 = arith.constant 0 : index
    %13 = vector.load %arg5[%c0_10, %c0_11] : memref<1x128xf32, #tpu.memory_space<vmem>>, vector<1x128xf32>
    %14 = vector.broadcast %13 : vector<1x128xf32> to vector<256x128xf32>
    %15 = arith.addf %12, %14 : vector<256x128xf32>
    %cst_12 = arith.constant 0.000000e+00 : f32
    %16 = vector.broadcast %cst_12 : f32 to vector<256x128xf32>
    %17 = arith.cmpf ogt, %15, %16 : vector<256x128xf32>
    %cst_13 = arith.constant 0.00999999977 : f32
    %18 = vector.broadcast %cst_13 : f32 to vector<256x128xf32>
    %19 = arith.mulf %18, %15 : vector<256x128xf32>
    %20 = arith.select %17, %15, %19 : vector<256x128xi1>, vector<256x128xf32>
    %c0_14 = arith.constant 0 : index
    %c0_15 = arith.constant 0 : index
    %21 = vector.load %arg6[%c0_14, %c0_15] : memref<128x256xf32, #tpu.memory_space<vmem>>, vector<128x256xf32>
    %cst_16 = arith.constant dense<0.000000e+00> : vector<256x256xf32>
    %22 = tpu.matmul %20, %21, %cst_16 {dimension_numbers = #tpu.dot_dimension_numbers<[1], [0], [0], [1], [0, 0, 1, 1], [], []>, precision = #tpu.contract_precision<fp32>} : vector<256x128xf32>, vector<128x256xf32>, vector<256x256xf32> -> vector<256x256xf32>
    %c0_17 = arith.constant 0 : index
    %c0_18 = arith.constant 0 : index
    %23 = vector.load %arg7[%c0_17, %c0_18] : memref<1x256xf32, #tpu.memory_space<vmem>>, vector<1x256xf32>
    %24 = vector.broadcast %23 : vector<1x256xf32> to vector<256x256xf32>
    %25 = arith.addf %22, %24 : vector<256x256xf32>
    %26 = math.tanh %25 : vector<256x256xf32>
    %c0_19 = arith.constant 0 : index
    %c0_20 = arith.constant 0 : index
    %27 = vector.load %arg8[%c0_19, %c0_20] : memref<256x256xf32, #tpu.memory_space<vmem>>, vector<256x256xf32>
    tpu.vector_store %arg8[%c0_19, %c0_20], %26 {strides = array<i32>} : memref<256x256xf32, #tpu.memory_space<vmem>>, vector<256x256xf32>,
    return
  }
  func.func @transform_0(%arg0: i32) -> (i32, i32) {
    %c0_i32 = arith.constant 0 : i32
    %c0_i32_0 = arith.constant 0 : i32
    return %arg0, %c0_i32 : i32, i32
  }
  func.func @transform_1(%arg0: i32) -> (i32, i32) {
    %c0_i32 = arith.constant 0 : i32
    %c0_i32_0 = arith.constant 0 : i32
    %c0_i32_1 = arith.constant 0 : i32
    return %c0_i32, %c0_i32_0 : i32, i32
  }
  func.func @transform_2(%arg0: i32) -> (i32, i32) {
    %c0_i32 = arith.constant 0 : i32
    %c0_i32_0 = arith.constant 0 : i32
    %c0_i32_1 = arith.constant 0 : i32
    return %c0_i32, %c0_i32_0 : i32, i32
  }
  func.func @transform_3(%arg0: i32) -> (i32, i32) {
    %c0_i32 = arith.constant 0 : i32
    %c0_i32_0 = arith.constant 0 : i32
    %c0_i32_1 = arith.constant 0 : i32
    return %c0_i32, %c0_i32_0 : i32, i32
  }
  func.func @transform_4(%arg0: i32) -> (i32, i32) {
    %c0_i32 = arith.constant 0 : i32
    %c0_i32_0 = arith.constant 0 : i32
    %c0_i32_1 = arith.constant 0 : i32
    return %c0_i32, %c0_i32_0 : i32, i32
  }
  func.func @transform_5(%arg0: i32) -> (i32, i32) {
    %c0_i32 = arith.constant 0 : i32
    %c0_i32_0 = arith.constant 0 : i32
    %c0_i32_1 = arith.constant 0 : i32
    return %c0_i32, %c0_i32_0 : i32, i32
  }
  func.func @transform_6(%arg0: i32) -> (i32, i32) {
    %c0_i32 = arith.constant 0 : i32
    %c0_i32_0 = arith.constant 0 : i32
    %c0_i32_1 = arith.constant 0 : i32
    return %c0_i32, %c0_i32_0 : i32, i32
  }
  func.func @transform_7(%arg0: i32) -> (i32, i32) {
    %c0_i32 = arith.constant 0 : i32
    %c0_i32_0 = arith.constant 0 : i32
    return %arg0, %c0_i32 : i32, i32
  }
}

</mosaic_0001>

<bundles_post_ra>
// kernel: tpu_custom_call.1
= control target key start
LH: loop header
LB: loop body
LE: loop exit
PB: predicated region body
PF: predicated region fallthrough
CT: control target
= control target key end

     0   :  { %12 = vsyncpa [#allocation3], 0  ;;  %s13279_s0 = inlined_call_operand.vmem [shape: f32[512,16], index: 0, kind: input, shape index: {}]   ;;  %s13280_s1 = inlined_call_operand.vmem [shape: f32[16,128], index: 1, kind: input, shape index: {}]   ;;  %s13281_s2 = inlined_call_operand.vmem [shape: f32[1,128], index: 2, kind: input, shape index: {}]   ;;  %s13282_s3 = inlined_call_operand.vmem [shape: f32[128,128], index: 3, kind: input, shape index: {}]   ;;  %s13283_s4 = inlined_call_operand.vmem [shape: f32[1,128], index: 4, kind: input, shape index: {}]   ;;  %s13284_s5 = inlined_call_operand.vmem [shape: f32[128,256], index: 5, kind: input, shape index: {}]   ;;  %s13285_s6 = inlined_call_operand.vmem [shape: f32[1,256], index: 6, kind: input, shape index: {}]   ;;  %s13286_s7 = inlined_call_operand.hbm [shape: f32[512,256], index: 7, kind: output, shape index: {}]  }
   0x1   :  { %14 = vsyncpa [#allocation3 + $0x1], 0  ;;  %s9793_s24 = smov 0   ;;  %s9795_s25 = smov 0  }
   0x2   :  { %s9797_s26 = smov 0   ;;  %s9799_s27 = smov 0  }
   0x3 LB: > { %s9814_s28 = sadd.s32 4294967295, %s9747_s27   ;;  %s7022_s29 = sadd.s32 4294967294, %s9747_s27   ;;  %s9747_s27 = sphi %s9799_s27, %s14309_s27   ;;  %s9743_s26 = sphi %s9797_s26, %s14308_s26   ;;  %s9739_s25 = sphi %s9795_s25, %s14307_s25   ;;  %s9735_s24 = sphi %s9793_s24, %s14306_s24  }
   0x4   : > { %s9818_s30 = sadd.s32 1, %s9747_s27   ;;  %s179_s8 = sadd.s32 1, %s9743_s26 }
   0x5   : > { %s176_s9 = ssub.s32 %s9747_s27, %s9818_s30  ;;  %p189_p0 = scmp.ne.s32.totalorder %s9743_s26, %s9739_s25 }
   0x6   : > { %p177_p1 = scmp.eq.s32.totalorder %s176_s9, 0  ;;  %p190_p2 = scmp.eq.s32.totalorder %s9814_s28, 1 }
   0x7   : > { %p195_p3 = scmp.ne.s32.totalorder %s9739_s25, %s9735_s24  ;;  %p196_p4 = scmp.eq.s32.totalorder %s7022_s29, 1 }
   0x8   : > { %s9829_s10 = scalar_select %p177_p1, %s9743_s26, %s179_s8  }
   0x9   : > { %p9831_p5 = por %p190_p2, %p189_p0  ;;  %p9835_p6 = por %p196_p4, %p195_p3 }
   0xa   : > { %p7025_p7 = scmp.ge.s32.totalorder %s9747_s27, 1  ;;  %p241_p8 = scmp.lt.s32.totalorder %s9747_s27, 3 }
   0xc   : > { %p242_p9 = pnand %p7025_p7, %p241_p8 }
   0xe   : > { %245 = sbr.rel (%p242_p9) target bundleno = 1780 (0x6f4), region = 48 }
  0x15   : > { %v312_v0 = vld [vmem:[%s13280_s1] sm:$0xff]  ;;  %v313_v1 = vld [vmem:[%s13280_s1 + $0x8] sm:$0xff]  ;;  %s7027_s17 = sshll.u32 %s9814_s28, 5  ;;  %vm321_vm0 = vcmask 130048   ;;  %s270_s9 = sand.u32 1, %s9739_s25  }
  0x16   : > { %v419_v2 = vand.u32 4294901760, %v312_v0  ;;  %v422_v3 = vand.u32 4294901760, %v313_v1  ;;  %p274_p10 = scmp.lt.s32.totalorder %s7027_s17, 63  ;;  %s7026_s13 = sshll.u32 %s270_s9, 9 }
  0x17   : > { %s13053_s14 = scalar_lea.vmem [#allocation2], %s7026_s13  ;;  %s7038_s15 = sshll.u32 %s9814_s28, 13 }
  0x18   : > { %v9848_v4 = vpack.c.bf16 %v422_v3, %v419_v2  ;;  %s14311_s17 = smov (!%p274_p10, %s7027_s17), 63  ;;  %v9850_v5 = vsub.f32 %v312_v0, %v419_v2  ;;  %v9852_v6 = vsub.f32 %v313_v1, %v422_v3  ;;  %s6960_s16 = sshll.u32 %s13053_s14, 4  ;;  %s13232_s16 = int_to_ptr.vmem [resolvable:$true] %s6960_s16 }
  0x19   : > { %s7028_s18 = sshll.u32 %s14311_s17, 3  ;;  %s13230_s19 = scalar_lea.hbm %s13286_s7, %s7038_s15 }
  0x1a   : > { %8324 = vmatprep.subr.bf16.mxu0 %v9848_v4  ;;  %v13303_v7 = vand.u32 4294901760, %v9850_v5  ;;  %v13302_v8 = vand.u32 4294901760, %v9852_v6  ;;  %s9861_s21 = scalar_lea.vmem %s13279_s0, %s7028_s18  ;;  %v9880_v20 = vpack.c.bf16 %v9852_v6, %v9850_v5  ;;  %s13238_s28 = scalar_lea.sflag [#allocation3], %s270_s9 }
  0x1b   : > { %8326 = vmatpush3.bf16.msra.mxu0 %v9848_v4  ;;  %v280_v9 = vld [vmem:[%s9861_s21] sm:$0xff]  ;;  %v281_v12 = vld [vmem:[%s9861_s21 + $0x8] sm:$0xff]  ;;  %v282_v13 = vld [vmem:[%s9861_s21 + $0x10] sm:$0xff]  ;;  %s9685_s20 = scalar_lea.vmem %s13232_s16, 8192 }
  0x1c   : > { %v809_v10 = vsub.f32 %v9850_v5, %v13303_v7  ;;  %v816_v11 = vsub.f32 %v9852_v6, %v13302_v8  ;;  %v323_v14 = vsel %vm321_vm0, %v280_v9, 0  ;;  %v326_v15 = vsel %vm321_vm0, %v281_v12, 0  ;;  %v283_v17 = vld [vmem:[%s9861_s21 + $0x18] sm:$0xff]  ;;  %v284_v18 = vld [vmem:[%s9861_s21 + $0x20] sm:$0xff]  ;;  %v285_v19 = vld [vmem:[%s9861_s21 + $0x28] sm:$0xff]  ;;  %p9686_p11 = scmp.ne.s32.totalorder %s13232_s16, %s9685_s20 }
  0x1d   : > { %v329_v16 = vsel %vm321_vm0, %v282_v13, 0  ;;  %v9882_v21 = vand.u32 4294901760, %v323_v14  ;;  %v9884_v24 = vand.u32 4294901760, %v326_v15  ;;  %v286_v25 = vld [vmem:[%s9861_s21 + $0x30] sm:$0xff]  ;;  %v332_v27 = vsel %vm321_vm0, %v283_v17, 0  ;;  %v287_v34 = vld [vmem:[%s9861_s21 + $0x38] sm:$0xff] }
  0x1e   : > { %v810_v22 = vand.u32 4294901760, %v809_v10  ;;  %v817_v23 = vand.u32 4294901760, %v816_v11  ;;  %v9887_v26 = vand.u32 4294901760, %v329_v16  ;;  %v335_v28 = vsel %vm321_vm0, %v284_v18, 0  ;;  %v288_v55 = vld [vmem:[%s9861_s21 + $0x40] sm:$0xff]  ;;  %v289_v56 = vld [vmem:[%s9861_s21 + $0x48] sm:$0xff]  ;;  %p9687_p12 = pnand %p9686_p11, %p9831_p5 }
  0x1f   : > { %v338_v29 = vsel %vm321_vm0, %v285_v19, 0  ;;  %v9893_v30 = vsub.f32 %v323_v14, %v9882_v21  ;;  %v9896_v32 = vsub.f32 %v326_v15, %v9884_v24  ;;  %v9898_v33 = vand.u32 4294901760, %v332_v27  ;;  %v290_v1 = vld [vmem:[%s9861_s21 + $0x50] sm:$0xff]  ;;  %v291_v2 = vld [vmem:[%s9861_s21 + $0x58] sm:$0xff]  ;;  %v292_v11 = vld [vmem:[%s9861_s21 + $0x60] sm:$0xff] }
  0x20   : > { %v8327_v31 = vpack.c.bf16 %v817_v23, %v810_v22  ;;  %v9902_v35 = vsub.f32 %v329_v16, %v9887_v26  ;;  %v9904_v36 = vand.u32 4294901760, %v335_v28  ;;  %v9906_v37 = vand.u32 4294901760, %v338_v29  ;;  %v293_v16 = vld [vmem:[%s9861_s21 + $0x68] sm:$0xff]  ;;  %v294_v17 = vld [vmem:[%s9861_s21 + $0x70] sm:$0xff]  ;;  %p9688_p13 = pneg %p9687_p12 }
  0x21   : > { %v341_v38 = vsel %vm321_vm0, %v286_v25, 0  ;;  %v13301_v39 = vand.u32 4294901760, %v9893_v30  ;;  %v13299_v40 = vand.u32 4294901760, %v9896_v32  ;;  %v9912_v41 = vsub.f32 %v332_v27, %v9898_v33 }
  0x22   : > { %8328 = vmatprep.subr.bf16.mxu0 %v8327_v31  ;;  %v9914_v42 = vand.u32 4294901760, %v341_v38  ;;  %v13297_v43 = vand.u32 4294901760, %v9902_v35  ;;  %v9918_v44 = vsub.f32 %v335_v28, %v9904_v36  ;;  %v9921_v45 = vsub.f32 %v338_v29, %v9906_v37 }
  0x23   : > { %v344_v46 = vsel %vm321_vm0, %v287_v34, 0  ;;  %v488_v47 = vsub.f32 %v9893_v30, %v13301_v39  ;;  %v498_v48 = vsub.f32 %v9896_v32, %v13299_v40  ;;  %v13295_v49 = vand.u32 4294901760, %v9912_v41 }
  0x24   : > { %v9932_v50 = vsub.f32 %v341_v38, %v9914_v42  ;;  %v508_v51 = vsub.f32 %v9902_v35, %v13297_v43  ;;  %v13294_v52 = vand.u32 4294901760, %v9918_v44  ;;  %v13293_v53 = vand.u32 4294901760, %v9921_v45 }
  0x25   : > { %v9939_v54 = vand.u32 4294901760, %v344_v46  ;;  %v489_v57 = vand.u32 4294901760, %v488_v47  ;;  %v499_v58 = vand.u32 4294901760, %v498_v48  ;;  %v518_v59 = vsub.f32 %v9912_v41, %v13295_v49  ;;  %v295_v47 = vld [vmem:[%s9861_s21 + $0x78] sm:$0xff]  ;;  %v302_v49 = vld [vmem:[%s9861_s21 + $0xb0] sm:$0xff] }
  0x26   : > { %v13292_v60 = vand.u32 4294901760, %v9932_v50  ;;  %v509_v61 = vand.u32 4294901760, %v508_v51  ;;  %v528_v62 = vsub.f32 %v9918_v44, %v13294_v52  ;;  %v538_v63 = vsub.f32 %v9921_v45, %v13293_v53  ;;  %v301_v52 = vld [vmem:[%s9861_s21 + $0xa8] sm:$0xff] }
  0x27   : > { %v9954_v0 = vsub.f32 %v344_v46, %v9939_v54  ;;  %7535 = vmatprep.mubr.f32.mxu0 %v489_v57  ;;  %v347_v9 = vsel %vm321_vm0, %v288_v55, 0  ;;  %v350_v10 = vsel %vm321_vm0, %v289_v56, 0  ;;  %v519_v12 = vand.u32 4294901760, %v518_v59 }
  0x28   : > { %v548_v3 = vsub.f32 %v9932_v50, %v13292_v60  ;;  %7536 = vmatmul.mubr.f32.vlgmr.msra.gmra.mrb[0].mxu0 %v499_v58  ;;  %v529_v13 = vand.u32 4294901760, %v528_v62  ;;  %v9965_v15 = vand.u32 4294901760, %v347_v9  ;;  %v539_v18 = vand.u32 4294901760, %v538_v63 }
  0x29   : > { %v13291_v14 = vand.u32 4294901760, %v9954_v0  ;;  %8330 = vmatpush3.bf16.msra.mxu0 %v8327_v31  ;;  %7538 = vmatprep.mubr.f32.mxu0 %v509_v61  ;;  %v9969_v19 = vand.u32 4294901760, %v350_v10  ;;  %v353_v22 = vsel %vm321_vm0, %v290_v1, 0  ;;  %v356_v23 = vsel %vm321_vm0, %v291_v2, 0 }
  0x2a   : > { %v549_v25 = vand.u32 4294901760, %v548_v3  ;;  %v9974_v27 = vsub.f32 %v347_v9, %v9965_v15  ;;  %v9976_v28 = vand.u32 4294901760, %v353_v22  ;;  %v9978_v29 = vand.u32 4294901760, %v356_v23  ;;  %8332 = vmatprep.subr.bf16.mxu0 %v9880_v20 }
  0x2b   : > { %v9982_v31 = vsub.f32 %v350_v10, %v9969_v19  ;;  %v359_v34 = vsel %vm321_vm0, %v292_v11, 0  ;;  %v362_v38 = vsel %vm321_vm0, %v293_v16, 0  ;;  %v365_v46 = vsel %vm321_vm0, %v294_v17, 0  ;;  %v296_v11 = vld [vmem:[%s9861_s21 + $0x80] sm:$0xff] }
  0x2c   : > { %13732 = vst [vmem:[#allocation5_spill] sm:$0xff] %v9974_v27  ;;  %7539 = vmatmul.mubr.f32.gmra.mrb[2].mxu0 %v519_v12  ;;  %v558_v48 = vsub.f32 %v9954_v0, %v13291_v14  ;;  %v13289_v51 = vand.u32 4294901760, %v9974_v27  ;;  %v9993_v55 = vsub.f32 %v353_v22, %v9976_v28  ;;  %v9996_v56 = vsub.f32 %v356_v23, %v9978_v29  ;;  %v300_v14 = vld [vmem:[%s9861_s21 + $0xa0] sm:$0xff] }
  0x2d   : > { %13733 = vst [vmem:[#allocation6_spill] sm:$0xff] %v9982_v31  ;;  %7541 = vmatprep.mubr.f32.mxu0 %v529_v13  ;;  %v13288_v57 = vand.u32 4294901760, %v9982_v31  ;;  %v9999_v58 = vand.u32 4294901760, %v359_v34  ;;  %v10001_v59 = vand.u32 4294901760, %v362_v38  ;;  %v10003_v61 = vand.u32 4294901760, %v365_v46 }
  0x2e   : > { %13734 = vst [vmem:[#allocation7_spill] sm:$0xff] %v9993_v55  ;;  %13735 = vst [vmem:[#allocation8_spill] sm:$0xff] %v9996_v56  ;;  %v568_v62 = vsub.f32 %v9974_v27, %v13289_v51  ;;  %v13287_v63 = vand.u32 4294901760, %v9993_v55  ;;  %v13290_v1 = vand.u32 4294901760, %v9996_v56  ;;  %v368_v2 = vsel %vm321_vm0, %v295_v47, 0  ;;  %v299_v47 = vld [vmem:[%s9861_s21 + $0x98] sm:$0xff] }
  0x2f   : > { %v10012_v3 = vsub.f32 %v359_v34, %v9999_v58  ;;  %v10015_v9 = vsub.f32 %v362_v38, %v10001_v59  ;;  %v10018_v10 = vsub.f32 %v365_v46, %v10003_v61  ;;  %v559_v12 = vand.u32 4294901760, %v558_v48  ;;  %v297_v34 = vld [vmem:[%s9861_s21 + $0x88] sm:$0xff]  ;;  %v298_v38 = vld [vmem:[%s9861_s21 + $0x90] sm:$0xff] }
  0x30   : > { %7542 = vmatmul.mubr.f32.gmra.mrb[4].mxu0 %v539_v18  ;;  %v578_v13 = vsub.f32 %v9982_v31, %v13288_v57  ;;  %v10024_v16 = vand.u32 4294901760, %v368_v2  ;;  %v569_v17 = vand.u32 4294901760, %v568_v62  ;;  %v588_v22 = vsub.f32 %v9993_v55, %v13287_v63  ;;  %v310_v55 = vld [vmem:[%s9861_s21 + $0xf0] sm:$0xff] }
  0x31   : > { %13736 = vst [vmem:[#allocation9_spill] sm:$0xff] %v10012_v3  ;;  %13737 = vst [vmem:[#allocation10_spill] sm:$0xff] %v10015_v9  ;;  %7544 = vmatprep.mubr.f32.mxu0 %v549_v25  ;;  %v13296_v23 = vand.u32 4294901760, %v10012_v3  ;;  %v598_v18 = vsub.f32 %v9996_v56, %v13290_v1  ;;  %v371_v46 = vsel %vm321_vm0, %v296_v11, 0  ;;  %v13298_v25 = vand.u32 4294901760, %v10015_v9  ;;  %v309_v56 = vld [vmem:[%s9861_s21 + $0xe8] sm:$0xff] }
  0x32   : > { %13738 = vst [vmem:[#allocation11_spill] sm:$0xff] %v10018_v10  ;;  %v13300_v48 = vand.u32 4294901760, %v10018_v10  ;;  %v10040_v62 = vsub.f32 %v368_v2, %v10024_v16  ;;  %v10042_v63 = vand.u32 4294901760, %v371_v46  ;;  %v579_v57 = vand.u32 4294901760, %v578_v13 }
  0x33   : > { %v374_v51 = vsel %vm321_vm0, %v297_v34, 0  ;;  %v377_v1 = vsel %vm321_vm0, %v298_v38, 0  ;;  %v589_v11 = vand.u32 4294901760, %v588_v22  ;;  %v608_v60 = vsub.f32 %v10012_v3, %v13296_v23 }
  0x34   : > { %13739 = vst [vmem:[#allocation12_spill] sm:$0xff] %v10040_v62  ;;  %7545 = vmatmul.mubr.f32.gmra.mrb[6].mxu0 %v559_v12  ;;  %v10051_v53 = vsub.f32 %v371_v46, %v10042_v63  ;;  %v380_v2 = vsel %vm321_vm0, %v299_v47, 0  ;;  %v599_v12 = vand.u32 4294901760, %v598_v18  ;;  %v10056_v13 = vand.u32 4294901760, %v374_v51 }
  0x35   : > { %7547 = vmatprep.mubr.f32.mxu0 %v569_v17  ;;  %v10058_v34 = vand.u32 4294901760, %v377_v1  ;;  %v618_v17 = vsub.f32 %v10015_v9, %v13298_v25  ;;  %v628_v22 = vsub.f32 %v10018_v10, %v13300_v48  ;;  %v13306_v38 = vand.u32 4294901760, %v10040_v62 }
  0x36   : > { %13740 = vst [vmem:[#allocation13_spill] sm:$0xff] %v10051_v53  ;;  %v383_v46 = vsel %vm321_vm0, %v300_v14, 0  ;;  %v10069_v18 = vsub.f32 %v374_v51, %v10056_v13  ;;  %v10071_v47 = vand.u32 4294901760, %v380_v2  ;;  %v386_v23 = vsel %vm321_vm0, %v301_v52, 0  ;;  %v303_v14 = vld [vmem:[%s9861_s21 + $0xb8] sm:$0xff] }
  0x37   : > { %v389_v43 = vsel %vm321_vm0, %v302_v49, 0  ;;  %v609_v25 = vand.u32 4294901760, %v608_v60  ;;  %v13307_v40 = vand.u32 4294901760, %v10051_v53  ;;  %v10077_v48 = vsub.f32 %v377_v1, %v10058_v34 }
  0x38   : > { %7548 = vmatmul.mubr.f32.gmra.mrb[8].mxu0 %v579_v57  ;;  %13741 = vst [vmem:[#allocation14_spill] sm:$0xff] %v10069_v18  ;;  %v10079_v39 = vand.u32 4294901760, %v383_v46  ;;  %v304_v57 = vld [vmem:[%s9861_s21 + $0xc0] sm:$0xff]  ;;  %v619_v51 = vand.u32 4294901760, %v618_v17  ;;  %v629_v8 = vand.u32 4294901760, %v628_v22  ;;  %v10083_v7 = vand.u32 4294901760, %v386_v23 }
  0x39   : > { %7550 = vmatprep.mubr.f32.mxu0 %v589_v11  ;;  %13742 = vst [vmem:[#allocation15_spill] sm:$0xff] %v10077_v48  ;;  %v10085_v52 = vand.u32 4294901760, %v389_v43  ;;  %v638_v49 = vsub.f32 %v10040_v62, %v13306_v38  ;;  %v10092_v1 = vsub.f32 %v380_v2, %v10071_v47  ;;  %v392_v11 = vsel %vm321_vm0, %v303_v14, 0  ;;  %v305_v38 = vld [vmem:[%s9861_s21 + $0xc8] sm:$0xff]  ;;  %v306_v14 = vld [vmem:[%s9861_s21 + $0xd0] sm:$0xff] }
  0x3a   : > { %v648_v17 = vsub.f32 %v10051_v53, %v13307_v40  ;;  %v395_v10 = vsel %vm321_vm0, %v304_v57, 0  ;;  %v10105_v60 = vsub.f32 %v386_v23, %v10083_v7  ;;  %v13747_v22 = vand.u32 4294901760, %v10069_v18 }
  0x3b   : > { %13743 = vst [vmem:[#allocation16_spill] sm:$0xff] %v10092_v1  ;;  %v10108_v2 = vsub.f32 %v389_v43, %v10085_v52  ;;  %v639_v40 = vand.u32 4294901760, %v638_v49  ;;  %v10117_v53 = vand.u32 4294901760, %v395_v10  ;;  %v13749_v62 = vand.u32 4294901760, %v10077_v48  ;;  %v307_v49 = vld [vmem:[%s9861_s21 + $0xd8] sm:$0xff] }
  0x3c   : > { %7551 = vmatmul.mubr.f32.gmra.mrb[10].mxu0 %v599_v12  ;;  %v10100_v12 = vsub.f32 %v383_v46, %v10079_v39  ;;  %13745 = vst [vmem:[#allocation18_spill] sm:$0xff] %v10105_v60  ;;  %v658_v46 = vsub.f32 %v10069_v18, %v13747_v22  ;;  %v649_v23 = vand.u32 4294901760, %v648_v17  ;;  %v398_v3 = vsel %vm321_vm0, %v305_v38, 0 }
  0x3d   : > { %7553 = vmatprep.mubr.f32.mxu0 %v609_v25  ;;  %13746 = vst [vmem:[#allocation19_spill] sm:$0xff] %v10108_v2  ;;  %v10110_v25 = vand.u32 4294901760, %v392_v11  ;;  %13748 = vst [vmem:[#allocation20_spill] sm:$0xff] %v10117_v53  ;;  %v668_v43 = vsub.f32 %v10077_v48, %v13749_v62  ;;  %v13751_v62 = vand.u32 4294901760, %v10092_v1  ;;  %v10136_v38 = vsub.f32 %v395_v10, %v10117_v53 }
  0x3e   : > { %13744 = vst [vmem:[#allocation17_spill] sm:$0xff] %v10100_v12  ;;  %v659_v17 = vand.u32 4294901760, %v658_v46  ;;  %v13754_v57 = vand.u32 4294901760, %v10100_v12 }
  0x3f   : > { %v10129_v18 = vsub.f32 %v392_v11, %v10110_v25  ;;  %v678_v9 = vsub.f32 %v10092_v1, %v13751_v62  ;;  %13752 = vst [vmem:[#allocation22_spill] sm:$0xff] %v10136_v38  ;;  %v669_v22 = vand.u32 4294901760, %v668_v43  ;;  %v13756_v62 = vand.u32 4294901760, %v10105_v60 }
  0x40   : > { %7554 = vmatmul.mubr.f32.gmra.mrb[12].mxu0 %v619_v51  ;;  %v401_v51 = vsel %vm321_vm0, %v306_v14, 0  ;;  %v10138_v14 = vand.u32 4294901760, %v398_v3  ;;  %v688_v11 = vsub.f32 %v10100_v12, %v13754_v57  ;;  %v13757_v1 = vand.u32 4294901760, %v10108_v2 }
  0x41   : > { %7556 = vmatprep.mubr.f32.mxu0 %v629_v8  ;;  %13750 = vst [vmem:[#allocation21_spill] sm:$0xff] %v10129_v18  ;;  %v308_v8 = vld [vmem:[%s9861_s21 + $0xe0] sm:$0xff]  ;;  %v10143_v48 = vand.u32 4294901760, %v401_v51  ;;  %v698_v10 = vsub.f32 %v10105_v60, %v13756_v62  ;;  %v679_v57 = vand.u32 4294901760, %v678_v9  ;;  %v413_v43 = vsel %vm321_vm0, %v310_v55, 0 }
  0x42   : > { %13753 = vst [vmem:[#allocation23_spill] sm:$0xff] %v10138_v14  ;;  %v407_v46 = vsel %vm321_vm0, %v308_v8, 0  ;;  %v689_v31 = vand.u32 4294901760, %v688_v11  ;;  %v13760_v12 = vand.u32 4294901760, %v10129_v18 }
  0x43   : > { %13755 = vst [vmem:[#allocation24_spill] sm:$0xff] %v10143_v48  ;;  %v10163_v62 = vsub.f32 %v401_v51, %v10143_v48  ;;  %v10165_v60 = vand.u32 4294901760, %v407_v46  ;;  %v699_v9 = vand.u32 4294901760, %v698_v10 }
  0x44   : > { %7557 = vmatmul.mubr.f32.gmra.mrb[14].mxu0 %v639_v40  ;;  %v404_v40 = vsel %vm321_vm0, %v307_v49, 0  ;;  %v10158_v49 = vsub.f32 %v398_v3, %v10138_v14  ;;  %v718_v3 = vsub.f32 %v10129_v18, %v13760_v12 }
  0x45   : > { %7559 = vmatprep.mubr.f32.mxu0 %v649_v23  ;;  %v708_v23 = vsub.f32 %v10108_v2, %v13757_v1  ;;  %v10160_v8 = vand.u32 4294901760, %v404_v40  ;;  %13759 = vst [vmem:[#allocation26_spill] sm:$0xff] %v10165_v60  ;;  %v410_v1 = vsel %vm321_vm0, %v309_v56, 0  ;;  %v13341_v55 = vand.u32 4294901760, %v10163_v62 }
  0x46   : > { %v13340_v51 = vand.u32 4294901760, %v10158_v49  ;;  %v10180_v56 = vand.u32 4294901760, %v410_v1  ;;  %v10184_v10 = vsub.f32 %v407_v46, %v10165_v60 }
  0x47   : > { %13758 = vst [vmem:[#allocation25_spill] sm:$0xff] %v10160_v8  ;;  %v709_v2 = vand.u32 4294901760, %v708_v23  ;;  %v10178_v27 = vsub.f32 %v404_v40, %v10160_v8  ;;  %v10186_v23 = vand.u32 4294901760, %v413_v43  ;;  %v748_v18 = vsub.f32 %v10163_v62, %v13341_v55 }
  0x48   : > { %7560 = vmatmul.mubr.f32.gmra.mrb[16].mxu0 %v659_v17  ;;  %v311_v17 = vld [vmem:[%s9861_s21 + $0xf8] sm:$0xff]  ;;  %13763 = vst [vmem:[#allocation28_spill] sm:$0xff] %v10180_v56  ;;  %s9750_s21 = smov [#allocation2]  }
  0x49   : > { %7562 = vmatprep.mubr.f32.mxu0 %v669_v22  ;;  %v13761_v22 = vand.u32 4294901760, %v10136_v38  ;;  %13762 = vst [vmem:[#allocation27_spill] sm:$0xff] %v10178_v27  ;;  %13764 = vst [vmem:[#allocation29_spill] sm:$0xff] %v10186_v23  ;;  %v416_v12 = vsel %vm321_vm0, %v311_v17, 0  ;;  %v13342_v40 = vand.u32 4294901760, %v10178_v27  ;;  %v13348_v17 = vand.u32 4294901760, %v10184_v10 }
  0x4a   : > { %s9689_s22 = sshll.u32 %s9750_s21, 4  ;;  %s9690_s22 = int_to_ptr.vmem [resolvable:$false] %s9689_s22 }
  0x4b   : > { %v728_v11 = vsub.f32 %v10136_v38, %v13761_v22  ;;  %v738_v22 = vsub.f32 %v10158_v49, %v13340_v51  ;;  %v10194_v38 = vsub.f32 %v410_v1, %v10180_v56  ;;  %v758_v1 = vsub.f32 %v10178_v27, %v13342_v40  ;;  %s9691_s23 = scalar_lea.vmem %s9690_s22, 16384  ;;  %p9692_p0 = scmp.lt.s32.totalorder %s13232_s16, %s9690_s22 }
  0x4c   : > { %7563 = vmatmul.mubr.f32.gmra.mrb[18].mxu0 %v679_v57  ;;  %v719_v57 = vand.u32 4294901760, %v718_v3  ;;  %v768_v55 = vsub.f32 %v10184_v10, %v13348_v17  ;;  %v13783_v17 = vld [vmem:[#allocation21_spill] sm:$0xff]  ;;  %p9693_p1 = scmp.lt.s32.totalorder %s9691_s23, %s9685_s20 }
  0x4d   : > { %7565 = vmatprep.mubr.f32.mxu0 %v689_v31  ;;  %v10196_v31 = vand.u32 4294901760, %v416_v12  ;;  %v729_v46 = vand.u32 4294901760, %v728_v11  ;;  %v739_v3 = vand.u32 4294901760, %v738_v22  ;;  %v13347_v51 = vand.u32 4294901760, %v10194_v38 }
  0x4e   : > { %v749_v11 = vand.u32 4294901760, %v748_v18  ;;  %v769_v27 = vand.u32 4294901760, %v768_v55  ;;  %p9694_p2 = por %p9693_p1, %p9692_p0 }
  0x4f   : > { %13765 = vst [vmem:[#allocation30_spill] sm:$0xff] %v10196_v31  ;;  %v778_v22 = vsub.f32 %v10194_v38, %v13347_v51  ;;  %v13782_v51 = vld [vmem:[#allocation19_spill] sm:$0xff] }
  0x50   : > { %7566 = vmatmul.mubr.f32.gmra.mrb[20].mxu0 %v699_v9  ;;  %v10203_v9 = vsub.f32 %v413_v43, %v10186_v23  ;;  %p9695_p3 = pnand %p9694_p2, %p9688_p13 }
  0x51   : > { %7568 = vmatprep.mubr.f32.mxu0 %v709_v2  ;;  %v10210_v2 = vsub.f32 %v416_v12, %v10196_v31  ;;  %v779_v12 = vand.u32 4294901760, %v778_v22  ;;  %v13772_v22 = vld [vmem:[#allocation9_spill] sm:$0xff] }
  0x52   : > { %v13346_v43 = vand.u32 4294901760, %v10203_v9 }
  0x53   : > { %v13345_v40 = vand.u32 4294901760, %v10210_v2 }
  0x54   : > { %7569 = vmatmul.mubr.f32.gmra.mrb[22].mxu0 %v719_v57  ;;  %v759_v57 = vand.u32 4294901760, %v758_v1  ;;  %v788_v18 = vsub.f32 %v10203_v9, %v13346_v43  ;;  %v13781_v43 = vld [vmem:[#allocation18_spill] sm:$0xff] }
  0x55   : > { %7571 = vmatprep.mubr.f32.mxu0 %v729_v46  ;;  %v798_v46 = vsub.f32 %v10210_v2, %v13345_v40  ;;  %v13780_v40 = vld [vmem:[#allocation17_spill] sm:$0xff] }
  0x57   : > { %v799_v1 = vand.u32 4294901760, %v798_v46  ;;  %v13775_v46 = vld [vmem:[#allocation12_spill] sm:$0xff] }
  0x58   : > { %7572 = vmatmul.mubr.f32.gmra.mrb[24].mxu0 %v739_v3  ;;  %v789_v3 = vand.u32 4294901760, %v788_v18  ;;  %v13773_v18 = vld [vmem:[#allocation10_spill] sm:$0xff] }
  0x59   : > { %7574 = vmatprep.mubr.f32.mxu0 %v749_v11  ;;  %v13770_v11 = vld [vmem:[#allocation7_spill] sm:$0xff] }
  0x5c   : > { %7575 = vmatmul.mubr.f32.gmra.mrb[26].mxu0 %v759_v57  ;;  %v13771_v57 = vld [vmem:[#allocation8_spill] sm:$0xff] }
  0x5d   : > { %7577 = vmatprep.mubr.f32.mxu0 %v769_v27  ;;  %v13767_v27 = vand.u32 4294901760, %v9852_v6  ;;  %v13769_v6 = vld [vmem:[#allocation6_spill] sm:$0xff] }
  0x60   : > { %7578 = vmatmul.mubr.f32.gmra.mrb[28].mxu0 %v779_v12  ;;  %v13774_v12 = vld [vmem:[#allocation11_spill] sm:$0xff] }
  0x61   : > { %7580 = vmatprep.mubr.f32.mxu0 %v789_v3  ;;  %v13776_v3 = vld [vmem:[#allocation13_spill] sm:$0xff] }
  0x64   : > { %7581 = vmatmul.mubr.f32.gmra.mrb[30].mxu0 %v799_v1  ;;  %v13777_v1 = vld [vmem:[#allocation14_spill] sm:$0xff] }
  0x65   : > { %7587 = vmatprep.mubr.f32.mxu0 %v9882_v21 }
  0x68   : > { %7588 = vmatmul.mubr.f32.vlgmr.msra.gmra.mrb[0].mxu0 %v9884_v24 }
  0x69   : > { %8334 = vmatpush3.bf16.msra.mxu0 %v9880_v20  ;;  %7590 = vmatprep.mubr.f32.mxu0 %v9887_v26  ;;  %v13766_v20 = vand.u32 4294901760, %v9850_v5  ;;  %v13768_v5 = vld [vmem:[#allocation5_spill] sm:$0xff] }
  0x6a   : > { %8336 = vmatprep.subr.bf16.mxu0 %v9848_v4 }
  0x6b   : > { %v8339_v55 = vpack.c.bf16 %v13767_v27, %v13766_v20  ;;  %v13778_v20 = vld [vmem:[#allocation15_spill] sm:$0xff]  ;;  %v13779_v27 = vld [vmem:[#allocation16_spill] sm:$0xff] }
  0x6c   : > { %7591 = vmatmul.mubr.f32.gmra.mrb[2].mxu0 %v9898_v33 }
  0x6d   : > { %7593 = vmatprep.mubr.f32.mxu0 %v9904_v36 }
  0x70   : > { %7594 = vmatmul.mubr.f32.gmra.mrb[4].mxu0 %v9906_v37 }
  0x71   : > { %7596 = vmatprep.mubr.f32.mxu0 %v9914_v42 }
  0x74   : > { %7597 = vmatmul.mubr.f32.gmra.mrb[6].mxu0 %v9939_v54 }
  0x75   : > { %7599 = vmatprep.mubr.f32.mxu0 %v9965_v15 }
  0x78   : > { %7600 = vmatmul.mubr.f32.gmra.mrb[8].mxu0 %v9969_v19 }
  0x79   : > { %7602 = vmatprep.mubr.f32.mxu0 %v9976_v28 }
  0x7c   : > { %7603 = vmatmul.mubr.f32.gmra.mrb[10].mxu0 %v9978_v29 }
  0x7d   : > { %7605 = vmatprep.mubr.f32.mxu0 %v9999_v58 }
  0x80   : > { %7606 = vmatmul.mubr.f32.gmra.mrb[12].mxu0 %v10001_v59 }
  0x81   : > { %7608 = vmatprep.mubr.f32.mxu0 %v10003_v61 }
  0x84   : > { %7609 = vmatmul.mubr.f32.gmra.mrb[14].mxu0 %v10024_v16 }
  0x85   : > { %7611 = vmatprep.mubr.f32.mxu0 %v10042_v63 }
  0x88   : > { %7612 = vmatmul.mubr.f32.gmra.mrb[16].mxu0 %v10056_v13 }
  0x89   : > { %7614 = vmatprep.mubr.f32.mxu0 %v10058_v34 }
  0x8c   : > { %7615 = vmatmul.mubr.f32.gmra.mrb[18].mxu0 %v10071_v47 }
  0x8d   : > { %7617 = vmatprep.mubr.f32.mxu0 %v10079_v39 }
  0x90   : > { %7618 = vmatmul.mubr.f32.gmra.mrb[20].mxu0 %v10083_v7 }
  0x91   : > { %7620 = vmatprep.mubr.f32.mxu0 %v10085_v52 }
  0x94   : > { %7621 = vmatmul.mubr.f32.gmra.mrb[22].mxu0 %v10110_v25 }
  0x95   : > { %7623 = vmatprep.mubr.f32.mxu0 %v10117_v53  ;;  %v13791_v53 = vand.u32 4294901760, %v9921_v45 }
  0x98   : > { %7624 = vmatmul.mubr.f32.gmra.mrb[24].mxu0 %v10138_v14  ;;  %v13790_v14 = vand.u32 4294901760, %v9918_v44 }
  0x99   : > { %7626 = vmatprep.mubr.f32.mxu0 %v10143_v48  ;;  %v13789_v48 = vand.u32 4294901760, %v9912_v41 }
  0x9c   : > { %7627 = vmatmul.mubr.f32.gmra.mrb[26].mxu0 %v10160_v8  ;;  %v13788_v8 = vand.u32 4294901760, %v9902_v35 }
  0x9d   : > { %7629 = vmatprep.mubr.f32.mxu0 %v10165_v60  ;;  %v13787_v60 = vand.u32 4294901760, %v9896_v32 }
  0xa0   : > { %7630 = vmatmul.mubr.f32.gmra.mrb[28].mxu0 %v10180_v56  ;;  %v13786_v56 = vand.u32 4294901760, %v9893_v30 }
  0xa1   : > { %7632 = vmatprep.mubr.f32.mxu0 %v10186_v23  ;;  %v13785_v23 = vld [vmem:[#allocation27_spill] sm:$0xff] }
  0xa4   : > { %7633 = vmatmul.mubr.f32.gmra.mrb[30].mxu0 %v10196_v31  ;;  %v13784_v31 = vld [vmem:[#allocation22_spill] sm:$0xff] }
  0xa5   : > { %7639 = vmatprep.mubr.f32.mxu0 %v9893_v30  ;;  %v13792_v30 = vand.u32 4294901760, %v9932_v50 }
  0xa8   : > { %7640 = vmatmul.mubr.f32.vlgmr.msra.gmra.mrb[0].mxu0 %v9896_v32  ;;  %v13793_v32 = vand.u32 4294901760, %v9954_v0 }
  0xa9   : > { %8338 = vmatpush3.bf16.msra.mxu0 %v9848_v4  ;;  %7642 = vmatprep.mubr.f32.mxu0 %v9902_v35  ;;  %v13794_v35 = vand.u32 4294901760, %v13768_v5 }
  0xaa   : > { %8340 = vmatprep.subr.bf16.mxu0 %v8339_v55 }
  0xac   : > { %7643 = vmatmul.mubr.f32.gmra.mrb[2].mxu0 %v9912_v41  ;;  %v13796_v41 = vand.u32 4294901760, %v13770_v11 }
  0xad   : > { %7645 = vmatprep.mubr.f32.mxu0 %v9918_v44  ;;  %v13797_v44 = vand.u32 4294901760, %v13771_v57 }
  0xb0   : > { %7646 = vmatmul.mubr.f32.gmra.mrb[4].mxu0 %v9921_v45  ;;  %v13798_v45 = vand.u32 4294901760, %v13772_v22 }
  0xb1   : > { %7648 = vmatprep.mubr.f32.mxu0 %v9932_v50  ;;  %v13799_v50 = vand.u32 4294901760, %v13773_v18 }
  0xb4   : > { %7649 = vmatmul.mubr.f32.gmra.mrb[6].mxu0 %v9954_v0  ;;  %v13801_v0 = vand.u32 4294901760, %v13775_v46 }
  0xb5   : > { %7651 = vmatprep.mubr.f32.mxu0 %v13768_v5  ;;  %v13807_v5 = vand.u32 4294901760, %v13781_v43 }
  0xb8   : > { %7652 = vmatmul.mubr.f32.gmra.mrb[8].mxu0 %v13769_v6 }
  0xb9   : > { %7654 = vmatprep.mubr.f32.mxu0 %v13770_v11  ;;  %v13809_v11 = vand.u32 4294901760, %v13783_v17 }
  0xbc   : > { %7655 = vmatmul.mubr.f32.gmra.mrb[10].mxu0 %v13771_v57  ;;  %v13810_v57 = vand.u32 4294901760, %v13784_v31 }
  0xbd   : > { %7657 = vmatprep.mubr.f32.mxu0 %v13772_v22  ;;  %v13811_v22 = vand.u32 4294901760, %v10158_v49 }
  0xc0   : > { %7658 = vmatmul.mubr.f32.gmra.mrb[12].mxu0 %v13773_v18  ;;  %v13812_v18 = vand.u32 4294901760, %v10163_v62 }
  0xc1   : > { %7660 = vmatprep.mubr.f32.mxu0 %v13774_v12 }
  0xc4   : > { %7661 = vmatmul.mubr.f32.gmra.mrb[14].mxu0 %v13775_v46  ;;  %v10394_v46 = vld [vmem:[%s13282_s3 + $0x28] sm:$0xff] }
  0xc5   : > { %7663 = vmatprep.mubr.f32.mxu0 %v13776_v3 }
  0xc8   : > { %7664 = vmatmul.mubr.f32.gmra.mrb[16].mxu0 %v13777_v1 }
  0xc9   : > { %7666 = vmatprep.mubr.f32.mxu0 %v13778_v20 }
  0xcc   : > { %7667 = vmatmul.mubr.f32.gmra.mrb[18].mxu0 %v13779_v27 }
  0xcd   : > { %7669 = vmatprep.mubr.f32.mxu0 %v13780_v40 }
  0xd0   : > { %7670 = vmatmul.mubr.f32.gmra.mrb[20].mxu0 %v13781_v43  ;;  %v13814_v43 = vand.u32 4294901760, %v10184_v10 }
  0xd1   : > { %7672 = vmatprep.mubr.f32.mxu0 %v13782_v51 }
  0xd4   : > { %7673 = vmatmul.mubr.f32.gmra.mrb[22].mxu0 %v13783_v17  ;;  %v13816_v17 = vand.u32 4294901760, %v10203_v9 }
  0xd5   : > { %7675 = vmatprep.mubr.f32.mxu0 %v13784_v31  ;;  %v13817_v31 = vand.u32 4294901760, %v10210_v2 }
  0xd8   : > { %7676 = vmatmul.mubr.f32.gmra.mrb[24].mxu0 %v10158_v49  ;;  %v10365_v49 = vld [vmem:[%s13282_s3] sm:$0xff] }
  0xd9   : > { %7678 = vmatprep.mubr.f32.mxu0 %v10163_v62  ;;  %v10370_v62 = vld [vmem:[%s13282_s3 + $0x8] sm:$0xff] }
  0xdc   : > { %7679 = vmatmul.mubr.f32.gmra.mrb[26].mxu0 %v13785_v23 }
  0xdd   : > { %7681 = vmatprep.mubr.f32.mxu0 %v10184_v10  ;;  %v2330_v10 = vand.u32 4294901760, %v10365_v49 }
  0xe0   : > { %7682 = vmatmul.mubr.f32.gmra.mrb[28].mxu0 %v10194_v38 }
  0xe1   : > { %7684 = vmatprep.mubr.f32.mxu0 %v10203_v9  ;;  %v10383_v9 = vld [vmem:[%s13282_s3 + $0x18] sm:$0xff] }
  0xe4   : > { %7685 = vmatmul.mubr.f32.gmra.mrb[30].mxu0 %v10210_v2 }
  0xe5   : > { %7691 = vmatprep.mubr.f32.mxu0 %v13786_v56  ;;  %v13805_v56 = vand.u32 4294901760, %v13779_v27 }
  0xe8   : > { %7692 = vmatmul.mubr.f32.vlgmr.msra.gmra.mrb[0].mxu0 %v13787_v60  ;;  %v13795_v60 = vand.u32 4294901760, %v13769_v6  ;;  %v13808_v6 = vand.u32 4294901760, %v13782_v51  ;;  %v13815_v51 = vand.u32 4294901760, %v10194_v38  ;;  %v10375_v38 = vld [vmem:[%s13282_s3 + $0x10] sm:$0xff] }
  0xe9   : > { %8342 = vmatpush3.bf16.msra.mxu0 %v8339_v55  ;;  %7694 = vmatprep.mubr.f32.mxu0 %v13788_v8  ;;  %v13804_v8 = vand.u32 4294901760, %v13778_v20  ;;  %v13806_v55 = vand.u32 4294901760, %v13780_v40  ;;  %v13813_v40 = vand.u32 4294901760, %v13785_v23  ;;  %v2333_v23 = vand.u32 4294901760, %v10370_v62 }
  0xea   : > { %8344 = vmatprep.subr.bf16.mxu0 %v9848_v4  ;;  %v2336_v2 = vand.u32 4294901760, %v10375_v38 }
  0xec   : > { %7695 = vmatmul.mubr.f32.gmra.mrb[2].mxu0 %v13789_v48  ;;  %v13802_v48 = vand.u32 4294901760, %v13776_v3  ;;  %v2339_v3 = vand.u32 4294901760, %v10383_v9 }
  0xed   : > { %7697 = vmatprep.mubr.f32.mxu0 %v13790_v14  ;;  %v13803_v14 = vand.u32 4294901760, %v13777_v1  ;;  %v10401_v1 = vpack.c.bf16 %v2333_v23, %v2330_v10 }
  0xee   : > { %v10408_v20 = vpack.c.bf16 %v2339_v3, %v2336_v2 }
  0xef   : > { %8348 = vmatprep.subr.bf16.mxu1 %v10401_v1 }
  0xf0   : > { %7698 = vmatmul.mubr.f32.gmra.mrb[4].mxu0 %v13791_v53  ;;  %v13800_v53 = vand.u32 4294901760, %v13774_v12  ;;  %v10389_v12 = vld [vmem:[%s13282_s3 + $0x20] sm:$0xff]  ;;  %13818 = vst [vmem:[#allocation5_spill] sm:$0xff] %v10408_v20  ;;  %8350 = vmatpush3.bf16.msra.mxu1 %v10401_v1 }
  0xf1   : > { %7700 = vmatprep.mubr.f32.mxu0 %v13792_v30  ;;  %v2342_v27 = vand.u32 4294901760, %v10389_v12  ;;  %v2345_v30 = vand.u32 4294901760, %v10394_v46  ;;  %8352 = vmatprep.subr.bf16.mxu1 %v10408_v20 }
  0xf4   : > { %7701 = vmatmul.mubr.f32.gmra.mrb[6].mxu0 %v13793_v32  ;;  %v10417_v32 = vld [vmem:[%s13282_s3 + $0x30] sm:$0xff]  ;;  %8354 = vmatpush3.bf16.msra.mxu1 %v10408_v20 }
  0xf5   : > { %7703 = vmatprep.mubr.f32.mxu0 %v13794_v35  ;;  %v10422_v35 = vld [vmem:[%s13282_s3 + $0x38] sm:$0xff] }
  0xf8   : > { %7704 = vmatmul.mubr.f32.gmra.mrb[8].mxu0 %v13795_v60  ;;  %v2348_v60 = vand.u32 4294901760, %v10417_v32 }
  0xf9   : > { %7706 = vmatprep.mubr.f32.mxu0 %v13796_v41  ;;  %v2351_v41 = vand.u32 4294901760, %v10422_v35 }
  0xfc   : > { %7707 = vmatmul.mubr.f32.gmra.mrb[10].mxu0 %v13797_v44  ;;  %v10444_v44 = vpack.c.bf16 %v2351_v41, %v2348_v60 }
  0xfd   : > { %7709 = vmatprep.mubr.f32.mxu0 %v13798_v45  ;;  %v13821_v45 = vld [vmem:[#allocation20_spill] sm:$0xff] }
  0xfe   : > { %13820 = vst [vmem:[#allocation7_spill] sm:$0xff] %v10444_v44 }
 0x100   : > { %7710 = vmatmul.mubr.f32.gmra.mrb[12].mxu0 %v13799_v50  ;;  %v13822_v50 = vld [vmem:[#allocation23_spill] sm:$0xff] }
 0x101   : > { %7712 = vmatprep.mubr.f32.mxu0 %v13800_v53  ;;  %v13823_v53 = vld [vmem:[#allocation24_spill] sm:$0xff] }
 0x104   : > { %7713 = vmatmul.mubr.f32.gmra.mrb[14].mxu0 %v13801_v0  ;;  %v13824_v0 = vld [vmem:[#allocation25_spill] sm:$0xff] }
 0x105   : > { %7715 = vmatprep.mubr.f32.mxu0 %v13802_v48  ;;  %v13825_v48 = vld [vmem:[#allocation26_spill] sm:$0xff] }
 0x108   : > { %7716 = vmatmul.mubr.f32.gmra.mrb[16].mxu0 %v13803_v14  ;;  %v13826_v14 = vld [vmem:[#allocation28_spill] sm:$0xff] }
 0x109   : > { %7718 = vmatprep.mubr.f32.mxu0 %v13804_v8  ;;  %v13827_v8 = vld [vmem:[#allocation29_spill] sm:$0xff] }
 0x10c   : > { %7719 = vmatmul.mubr.f32.gmra.mrb[18].mxu0 %v13805_v56  ;;  %v13828_v56 = vld [vmem:[#allocation30_spill] sm:$0xff] }
 0x10d   : > { %7721 = vmatprep.mubr.f32.mxu0 %v13806_v55 }
 0x110   : > { %7722 = vmatmul.mubr.f32.gmra.mrb[20].mxu0 %v13807_v5 }
 0x111   : > { %7724 = vmatprep.mubr.f32.mxu0 %v13808_v6 }
 0x114   : > { %7725 = vmatmul.mubr.f32.gmra.mrb[22].mxu0 %v13809_v11 }
 0x115   : > { %7727 = vmatprep.mubr.f32.mxu0 %v13810_v57 }
 0x118   : > { %7728 = vmatmul.mubr.f32.gmra.mrb[24].mxu0 %v13811_v22 }
 0x119   : > { %7730 = vmatprep.mubr.f32.mxu0 %v13812_v18 }
 0x11c   : > { %7731 = vmatmul.mubr.f32.gmra.mrb[26].mxu0 %v13813_v40 }
 0x11d   : > { %7733 = vmatprep.mubr.f32.mxu0 %v13814_v43 }
 0x120   : > { %7734 = vmatmul.mubr.f32.gmra.mrb[28].mxu0 %v13815_v51 }
 0x121   : > { %7736 = vmatprep.mubr.f32.mxu0 %v13816_v17 }
 0x124   : > { %7737 = vmatmul.mubr.f32.gmra.mrb[30].mxu0 %v13817_v31 }
 0x125   : > { %7743 = vmatprep.mubr.f32.mxu0 %v9882_v21 }
 0x128   : > { %7744 = vmatmul.mubr.f32.vlgmr.msra.gmra.mrb[0].mxu0 %v9884_v24 }
 0x129   : > { %8346 = vmatpush3.bf16.msra.mxu0 %v9848_v4  ;;  %7746 = vmatprep.mubr.f32.mxu0 %v9887_v26  ;;  %v10432_v4 = vpack.c.bf16 %v2345_v30, %v2342_v27 }
 0x12b   : > { %13819 = vst [vmem:[#allocation6_spill] sm:$0xff] %v10432_v4  ;;  %8356 = vmatprep.subr.bf16.mxu1 %v10432_v4 }
 0x12c   : > { %7747 = vmatmul.mubr.f32.gmra.mrb[2].mxu0 %v9898_v33  ;;  %8358 = vmatpush3.bf16.msra.mxu1 %v10432_v4 }
 0x12d   : > { %7749 = vmatprep.mubr.f32.mxu0 %v9904_v36  ;;  %8360 = vmatprep.subr.bf16.mxu1 %v10444_v44 }
 0x130   : > { %7750 = vmatmul.mubr.f32.gmra.mrb[4].mxu0 %v9906_v37  ;;  %8362 = vmatpush3.bf16.msra.mxu1 %v10444_v44 }
 0x131   : > { %7752 = vmatprep.mubr.f32.mxu0 %v9914_v42 }
 0x134   : > { %7753 = vmatmul.mubr.f32.gmra.mrb[6].mxu0 %v9939_v54 }
 0x135   : > { %7755 = vmatprep.mubr.f32.mxu0 %v9965_v15 }
 0x138   : > { %7756 = vmatmul.mubr.f32.gmra.mrb[8].mxu0 %v9969_v19 }
 0x139   : > { %7758 = vmatprep.mubr.f32.mxu0 %v9976_v28 }
 0x13c   : > { %7759 = vmatmul.mubr.f32.gmra.mrb[10].mxu0 %v9978_v29 }
 0x13d   : > { %7761 = vmatprep.mubr.f32.mxu0 %v9999_v58 }
 0x140   : > { %7762 = vmatmul.mubr.f32.gmra.mrb[12].mxu0 %v10001_v59 }
 0x141   : > { %7764 = vmatprep.mubr.f32.mxu0 %v10003_v61 }
 0x144   : > { %7765 = vmatmul.mubr.f32.gmra.mrb[14].mxu0 %v10024_v16 }
 0x145   : > { %7767 = vmatprep.mubr.f32.mxu0 %v10042_v63 }
 0x148   : > { %7768 = vmatmul.mubr.f32.gmra.mrb[16].mxu0 %v10056_v13 }
 0x149   : > { %7770 = vmatprep.mubr.f32.mxu0 %v10058_v34 }
 0x14c   : > { %7771 = vmatmul.mubr.f32.gmra.mrb[18].mxu0 %v10071_v47 }
 0x14d   : > { %7773 = vmatprep.mubr.f32.mxu0 %v10079_v39 }
 0x150   : > { %7774 = vmatmul.mubr.f32.gmra.mrb[20].mxu0 %v10083_v7 }
 0x151   : > { %7776 = vmatprep.mubr.f32.mxu0 %v10085_v52 }
 0x154   : > { %7777 = vmatmul.mubr.f32.gmra.mrb[22].mxu0 %v10110_v25 }
 0x155   : > { %7779 = vmatprep.mubr.f32.mxu0 %v13821_v45 }
 0x158   : > { %7780 = vmatmul.mubr.f32.gmra.mrb[24].mxu0 %v13822_v50 }
 0x159   : > { %7782 = vmatprep.mubr.f32.mxu0 %v13823_v53 }
 0x15c   : > { %7783 = vmatmul.mubr.f32.gmra.mrb[26].mxu0 %v13824_v0 }
 0x15d   : > { %7785 = vmatprep.mubr.f32.mxu0 %v13825_v48 }
 0x160   : > { %7786 = vmatmul.mubr.f32.gmra.mrb[28].mxu0 %v13826_v14 }
 0x161   : > { %7788 = vmatprep.mubr.f32.mxu0 %v13827_v8 }
 0x164   : > { %7789 = vmatmul.mubr.f32.gmra.mrb[30].mxu0 %v13828_v56 }
 0x165   : > { %7795 = vmatprep.mubr.f32.mxu0 %v9882_v21  ;;  %v2315_v21 = vld [vmem:[%s13282_s3 + $0x48] sm:$0xff] }
 0x168   : > { %7796 = vmatmul.mubr.f32.vlgmr.msra.gmra.mrb[0].mxu0 %v9884_v24 }
 0x169   : > { %7798 = vmatprep.mubr.f32.mxu0 %v9887_v26  ;;  %v2357_v26 = vand.u32 4294901760, %v2315_v21 }
 0x16b   : > { %v10570_v18 = vsub.f32 %v2315_v21, %v2357_v26  ;;  %v10608_v21 = vsub.f32 %v10383_v9, %v2339_v3  ;;  %v10631_v9 = vsub.f32 %v10417_v32, %v2348_v60 }
 0x16c   : > { %7799 = vmatmul.mubr.f32.gmra.mrb[2].mxu0 %v9898_v33 }
 0x16d   : > { %7801 = vmatprep.mubr.f32.mxu0 %v9904_v36  ;;  %v2316_v36 = vld [vmem:[%s13282_s3 + $0x50] sm:$0xff]  ;;  %13836 = vst [vmem:[#allocation15_spill] sm:$0xff] %v10570_v18  ;;  %v13368_v43 = vand.u32 4294901760, %v10570_v18  ;;  %13840 = vst [vmem:[#allocation19_spill] sm:$0xff] %v10608_v21 }
 0x16e   : > { %13843 = vst [vmem:[#allocation27_spill] sm:$0xff] %v10631_v9 }
 0x16f   : > { %v2797_v17 = vsub.f32 %v10570_v18, %v13368_v43 }
 0x170   : > { %7802 = vmatmul.mubr.f32.gmra.mrb[4].mxu0 %v9906_v37  ;;  %v2317_v37 = vld [vmem:[%s13282_s3 + $0x58] sm:$0xff] }
 0x171   : > { %7804 = vmatprep.mubr.f32.mxu0 %v9914_v42  ;;  %v2363_v42 = vand.u32 4294901760, %v2317_v37 }
 0x174   : > { %7805 = vmatmul.mubr.f32.gmra.mrb[6].mxu0 %v9939_v54 }
 0x175   : > { %7807 = vmatprep.mubr.f32.mxu0 %v9965_v15  ;;  %v2318_v15 = vld [vmem:[%s13282_s3 + $0x60] sm:$0xff] }
 0x178   : > { %7808 = vmatmul.mubr.f32.gmra.mrb[8].mxu0 %v9969_v19  ;;  %v2319_v19 = vld [vmem:[%s13282_s3 + $0x68] sm:$0xff] }
 0x179   : > { %7810 = vmatprep.mubr.f32.mxu0 %v9976_v28  ;;  %v2366_v28 = vand.u32 4294901760, %v2318_v15 }
 0x17c   : > { %7811 = vmatmul.mubr.f32.gmra.mrb[10].mxu0 %v9978_v29  ;;  %v2369_v29 = vand.u32 4294901760, %v2319_v19 }
 0x17d   : > { %7813 = vmatprep.mubr.f32.mxu0 %v9999_v58 }
 0x17e   : > { %v10533_v58 = vpack.c.bf16 %v2369_v29, %v2366_v28  ;;  %v10644_v3 = vsub.f32 %v2319_v19, %v2369_v29 }
 0x180   : > { %7814 = vmatmul.mubr.f32.gmra.mrb[12].mxu0 %v10001_v59  ;;  %13831 = vst [vmem:[#allocation10_spill] sm:$0xff] %v10533_v58  ;;  %v2320_v59 = vld [vmem:[%s13282_s3 + $0x70] sm:$0xff] }
 0x181   : > { %7816 = vmatprep.mubr.f32.mxu0 %v10003_v61  ;;  %v2321_v61 = vld [vmem:[%s13282_s3 + $0x78] sm:$0xff] }
 0x184   : > { %7817 = vmatmul.mubr.f32.gmra.mrb[14].mxu0 %v10024_v16  ;;  %v2375_v16 = vand.u32 4294901760, %v2321_v61 }
 0x185   : > { %7819 = vmatprep.mubr.f32.mxu0 %v10042_v63  ;;  %v2372_v63 = vand.u32 4294901760, %v2320_v59 }
 0x188   : > { %7820 = vmatmul.mubr.f32.gmra.mrb[16].mxu0 %v10056_v13  ;;  %v10543_v13 = vpack.c.bf16 %v2375_v16, %v2372_v63 }
 0x189   : > { %7822 = vmatprep.mubr.f32.mxu0 %v10058_v34  ;;  %v10550_v34 = vsub.f32 %v10365_v49, %v2330_v10  ;;  %v2798_v49 = vand.u32 4294901760, %v2797_v17 }
 0x18a   : > { %13832 = vst [vmem:[#allocation11_spill] sm:$0xff] %v10543_v13 }
 0x18b   : > { %13833 = vst [vmem:[#allocation12_spill] sm:$0xff] %v10550_v34 }
 0x18c   : > { %7823 = vmatmul.mubr.f32.gmra.mrb[18].mxu0 %v10071_v47  ;;  %v10555_v47 = vsub.f32 %v10370_v62, %v2333_v23  ;;  %v10584_v23 = vsub.f32 %v2317_v37, %v2363_v42  ;;  %v13372_v37 = vand.u32 4294901760, %v10631_v9 }
 0x18d   : > { %7825 = vmatprep.mubr.f32.mxu0 %v10079_v39  ;;  %v2360_v39 = vand.u32 4294901760, %v2316_v36 }
 0x18e   : > { %13834 = vst [vmem:[#allocation13_spill] sm:$0xff] %v10555_v47  ;;  %13838 = vst [vmem:[#allocation17_spill] sm:$0xff] %v10584_v23 }
 0x18f   : > { %v10523_v54 = vpack.c.bf16 %v2363_v42, %v2360_v39  ;;  %v10582_v10 = vsub.f32 %v2316_v36, %v2360_v39  ;;  %v10622_v36 = vsub.f32 %v10394_v46, %v2345_v30  ;;  %v10642_v46 = vsub.f32 %v2318_v15, %v2366_v28 }
 0x190   : > { %7826 = vmatmul.mubr.f32.gmra.mrb[20].mxu0 %v10083_v7  ;;  %v2314_v7 = vld [vmem:[%s13282_s3 + $0x40] sm:$0xff]  ;;  %v13377_v30 = vand.u32 4294901760, %v10608_v21  ;;  %v13370_v39 = vand.u32 4294901760, %v10644_v3  ;;  %v10664_v28 = vsub.f32 %v2320_v59, %v2372_v63  ;;  %v2776_v59 = vsub.f32 %v10631_v9, %v13372_v37 }
 0x191   : > { %7828 = vmatprep.mubr.f32.mxu0 %v10085_v52  ;;  %v2354_v24 = vand.u32 4294901760, %v2314_v7  ;;  %13830 = vst [vmem:[#allocation9_spill] sm:$0xff] %v10523_v54  ;;  %v13380_v52 = vand.u32 4294901760, %v10550_v34  ;;  %13837 = vst [vmem:[#allocation16_spill] sm:$0xff] %v10582_v10  ;;  %v13375_v60 = vand.u32 4294901760, %v10622_v36 }
 0x192   : > { %13842 = vst [vmem:[#allocation22_spill] sm:$0xff] %v10622_v36  ;;  %v2755_v19 = vsub.f32 %v10608_v21, %v13377_v30 }
 0x193   : > { %v10513_v33 = vpack.c.bf16 %v2357_v26, %v2354_v24  ;;  %v2734_v55 = vsub.f32 %v10550_v34, %v13380_v52  ;;  %v10568_v22 = vsub.f32 %v2314_v7, %v2354_v24  ;;  %v10603_v7 = vsub.f32 %v10375_v38, %v2336_v2 }
 0x194   : > { %7829 = vmatmul.mubr.f32.gmra.mrb[22].mxu0 %v10110_v25  ;;  %v13379_v25 = vand.u32 4294901760, %v10555_v47  ;;  %v10617_v26 = vsub.f32 %v10389_v12, %v2342_v27  ;;  %v10636_v2 = vsub.f32 %v10422_v35, %v2351_v41  ;;  %v13367_v41 = vand.u32 4294901760, %v10642_v46 }
 0x195   : > { %7831 = vmatprep.mubr.f32.mxu0 %v13821_v45  ;;  %13829 = vst [vmem:[#allocation8_spill] sm:$0xff] %v10513_v33  ;;  %8364 = vmatprep.subr.bf16.mxu1 %v10513_v33  ;;  %v2735_v6 = vand.u32 4294901760, %v2734_v55  ;;  %13835 = vst [vmem:[#allocation14_spill] sm:$0xff] %v10568_v22  ;;  %v13369_v40 = vand.u32 4294901760, %v10568_v22  ;;  %v13366_v45 = vand.u32 4294901760, %v10582_v10  ;;  %v10612_v24 = vpack.c.bf16 %v10608_v21, %v10603_v7 }
 0x196   : > { %8366 = vmatpush3.bf16.msra.mxu1 %v10513_v33  ;;  %v2741_v5 = vsub.f32 %v10555_v47, %v13379_v25  ;;  %13839 = vst [vmem:[#allocation18_spill] sm:$0xff] %v10603_v7  ;;  %13841 = vst [vmem:[#allocation21_spill] sm:$0xff] %v10617_v26  ;;  %v10626_v38 = vpack.c.bf16 %v10622_v36, %v10617_v26  ;;  %v10640_v12 = vpack.c.bf16 %v10636_v2, %v10631_v9 }
 0x197   : > { %8368 = vmatprep.subr.bf16.mxu1 %v10523_v54  ;;  %v2790_v51 = vsub.f32 %v10568_v22, %v13369_v40  ;;  %13844 = vst [vmem:[#allocation20_spill] sm:$0xff] %v10636_v2  ;;  %v13378_v27 = vand.u32 4294901760, %v10603_v7  ;;  %v13376_v32 = vand.u32 4294901760, %v10617_v26  ;;  %v13371_v35 = vand.u32 4294901760, %v10636_v2 }
 0x198   : > { %7832 = vmatmul.mubr.f32.gmra.mrb[24].mxu0 %v13822_v50  ;;  %v2742_v11 = vand.u32 4294901760, %v2741_v5  ;;  %v13365_v50 = vand.u32 4294901760, %v10584_v23  ;;  %v10656_v42 = vpack.c.bf16 %v10570_v18, %v10568_v22  ;;  %v2769_v55 = vsub.f32 %v10622_v36, %v13375_v60 }
 0x199   : > { %7834 = vmatprep.mubr.f32.mxu0 %v13823_v53  ;;  %v2791_v31 = vand.u32 4294901760, %v2790_v51  ;;  %v2804_v53 = vsub.f32 %v10582_v10, %v13366_v45  ;;  %v2748_v15 = vsub.f32 %v10603_v7, %v13378_v27  ;;  %v2762_v29 = vsub.f32 %v10617_v26, %v13376_v32 }
 0x19a   : > { %8370 = vmatpush3.bf16.msra.mxu1 %v10523_v54  ;;  %v10565_v57 = vpack.c.bf16 %v2742_v11, %v2735_v6  ;;  %v10672_v5 = vsub.f32 %v2321_v61, %v2375_v16  ;;  %v10677_v6 = vld [vmem:[%s13281_s2] ss:$0 sm:$0xff]  ;;  %v2783_v63 = vsub.f32 %v10636_v2, %v13371_v35  ;;  %v2818_v11 = vsub.f32 %v10642_v46, %v13367_v41 }
 0x19b   : > { %8372 = vmatprep.subr.bf16.mxu1 %v10533_v58  ;;  %v10580_v62 = vpack.c.bf16 %v2798_v49, %v2791_v31  ;;  %v2825_v61 = vsub.f32 %v10644_v3, %v13370_v39  ;;  %v2749_v51 = vand.u32 4294901760, %v2748_v15  ;;  %v2756_v17 = vand.u32 4294901760, %v2755_v19 }
 0x19c   : > { %7835 = vmatmul.mubr.f32.gmra.mrb[26].mxu0 %v13824_v0  ;;  %v2811_v0 = vsub.f32 %v10584_v23, %v13365_v50  ;;  %v13373_v31 = vand.u32 4294901760, %v10664_v28  ;;  %v2777_v45 = vand.u32 4294901760, %v2776_v59  ;;  %v2784_v41 = vand.u32 4294901760, %v2783_v63 }
 0x19d   : > { %7837 = vmatprep.mubr.f32.mxu0 %v13825_v48  ;;  %v2805_v48 = vand.u32 4294901760, %v2804_v53  ;;  %v2819_v43 = vand.u32 4294901760, %v2818_v11  ;;  %v2826_v39 = vand.u32 4294901760, %v2825_v61  ;;  %v10697_v15 = vpack.c.bf16 %v10584_v23, %v10582_v10 }
 0x19e   : > { %8374 = vmatpush3.bf16.msra.mxu1 %v10533_v58  ;;  %v10699_v35 = vpack.c.bf16 %v2756_v17, %v2749_v51  ;;  %v10717_v37 = vpack.c.bf16 %v2784_v41, %v2777_v45 }
 0x19f   : > { %8376 = vmatprep.subr.bf16.mxu1 %v10543_v13 }
 0x1a0   : > { %7838 = vmatmul.mubr.f32.gmra.mrb[28].mxu0 %v13826_v14  ;;  %v2812_v14 = vand.u32 4294901760, %v2811_v0  ;;  %v2763_v0 = vand.u32 4294901760, %v2762_v29  ;;  %v10704_v29 = vsub.f32 %v10664_v28, %v13373_v31 }
 0x1a1   : > { %7840 = vmatprep.mubr.f32.mxu0 %v13827_v8 }
 0x1a2   : > { %8378 = vmatpush3.bf16.msra.mxu1 %v10543_v13  ;;  %v10594_v8 = vpack.c.bf16 %v2812_v14, %v2805_v48  ;;  %v2770_v48 = vand.u32 4294901760, %v2769_v55  ;;  %v13374_v14 = vand.u32 4294901760, %v10672_v5 }
 0x1a3   : > { %8380 = vmatprep.subr.bf16.mxu1 %v10565_v57 }
 0x1a4   : > { %7841 = vmatmul.mubr.f32.gmra.mrb[30].mxu0 %v13828_v56  ;;  %v10598_v56 = vpack.c.bf16 %v10555_v47, %v10550_v34  ;;  %v10707_v11 = vpack.c.bf16 %v2770_v48, %v2763_v0  ;;  %v10712_v61 = vsub.f32 %v10672_v5, %v13374_v14  ;;  %v2833_v14 = vand.u32 4294901760, %v10704_v29 }
 0x1a6   : > { %v2840_v41 = vand.u32 4294901760, %v10712_v61 }
 0x23b   : > { %v7797_v16 = vpop.f32.mrb[0].mxu0 }
 0x23c   : > { %v8747_v49 = vadd.f32 %v7797_v16, %v10677_v6  ;;  %v2020_v53 = vpop.f32.mrb[1].mxu0 }
 0x23d   : > { %v8748_v50 = vadd.f32 %v10677_v6, %v2020_v53 }
 0x23e   : > { %vm2211_vm1 = vcmp.gt.f32.partialorder %v8747_v49, 0.0  ;;  %v2243_v40 = vmul.f32 0.01, %v8747_v49 }
 0x23f   : > { %vm2210_vm2 = vcmp.gt.f32.partialorder %v8748_v50, 0.0  ;;  %v2242_v19 = vmul.f32 0.01, %v8748_v50  ;;  %v7800_v16 = vpop.f32.mrb[2].mxu0 }
 0x240   : > { %v2275_v55 = vsel %vm2211_vm1, %v8747_v49, %v2243_v40  ;;  %v8749_v59 = vadd.f32 %v7800_v16, %v10677_v6  ;;  %v2032_v63 = vpop.f32.mrb[3].mxu0  ;;  %v10721_v49 = vpack.c.bf16 %v2826_v39, %v2819_v43 }
 0x241   : > { %v10714_v53 = vand.u32 4294901760, %v2275_v55  ;;  %v2274_v51 = vsel %vm2210_vm2, %v8748_v50, %v2242_v19  ;;  %v8750_v17 = vadd.f32 %v10677_v6, %v2032_v63 }
 0x242   : > { %v10719_v31 = vand.u32 4294901760, %v2274_v51  ;;  %vm2213_vm3 = vcmp.gt.f32.partialorder %v8749_v59, 0.0  ;;  %v2245_v40 = vmul.f32 0.01, %v8749_v59 }
 0x243   : > { %v10724_v0 = vsub.f32 %v2275_v55, %v10714_v53  ;;  %vm2212_vm4 = vcmp.gt.f32.partialorder %v8750_v17, 0.0  ;;  %v2244_v48 = vmul.f32 0.01, %v8750_v17  ;;  %v7803_v16 = vpop.f32.mrb[4].mxu0 }
 0x244   : > { %v2277_v60 = vsel %vm2213_vm3, %v8749_v59, %v2245_v40  ;;  %v8751_v50 = vadd.f32 %v7803_v16, %v10677_v6  ;;  %v2044_v19 = vpop.f32.mrb[5].mxu0  ;;  %v10729_v45 = vsub.f32 %v2274_v51, %v10719_v31 }
 0x245   : > { %13845 = vst [vmem:[#allocation23_spill] sm:$0xff] %v10724_v0  ;;  %v10732_v63 = vand.u32 4294901760, %v2277_v60  ;;  %v2276_v43 = vsel %vm2212_vm4, %v8750_v17, %v2244_v48  ;;  %v8752_v39 = vadd.f32 %v10677_v6, %v2044_v19  ;;  %v13383_v55 = vand.u32 4294901760, %v10724_v0 }
 0x246   : > { %13846 = vst [vmem:[#allocation24_spill] sm:$0xff] %v10729_v45  ;;  %v10736_v32 = vand.u32 4294901760, %v2276_v43  ;;  %vm2215_vm5 = vcmp.gt.f32.partialorder %v8751_v50, 0.0  ;;  %v2247_v29 = vmul.f32 0.01, %v8751_v50  ;;  %v13385_v59 = vand.u32 4294901760, %v10729_v45 }
 0x247   : > { %v10740_v40 = vsub.f32 %v2277_v60, %v10732_v63  ;;  %vm2214_vm6 = vcmp.gt.f32.partialorder %v8752_v39, 0.0  ;;  %v2246_v51 = vmul.f32 0.01, %v8752_v39  ;;  %v7806_v16 = vpop.f32.mrb[6].mxu0  ;;  %v2423_v61 = vsub.f32 %v10724_v0, %v13383_v55 }
 0x248   : > { %v10746_v17 = vsub.f32 %v2276_v43, %v10736_v32  ;;  %v2279_v48 = vsel %vm2215_vm5, %v8751_v50, %v2247_v29  ;;  %v8753_v19 = vadd.f32 %v7806_v16, %v10677_v6  ;;  %v2056_v30 = vpop.f32.mrb[7].mxu0  ;;  %v2413_v27 = vsub.f32 %v10729_v45, %v13385_v59 }
 0x249   : > { %13847 = vst [vmem:[#allocation25_spill] sm:$0xff] %v10740_v40  ;;  %v10752_v60 = vand.u32 4294901760, %v2279_v48  ;;  %v2278_v25 = vsel %vm2214_vm6, %v8752_v39, %v2246_v51  ;;  %v8754_v52 = vadd.f32 %v10677_v6, %v2056_v30  ;;  %v2424_v23 = vand.u32 4294901760, %v2423_v61 }
 0x24a   : > { %13848 = vst [vmem:[#allocation26_spill] sm:$0xff] %v10746_v17  ;;  %v10755_v10 = vand.u32 4294901760, %v2278_v25  ;;  %vm2217_vm7 = vcmp.gt.f32.partialorder %v8753_v19, 0.0  ;;  %v2249_v55 = vmul.f32 0.01, %v8753_v19  ;;  %v2414_v43 = vand.u32 4294901760, %v2413_v27 }
 0x24b   : > { %v10758_v50 = vsub.f32 %v2279_v48, %v10752_v60  ;;  %vm2216_vm8 = vcmp.gt.f32.partialorder %v8754_v52, 0.0  ;;  %v2248_v29 = vmul.f32 0.01, %v8754_v52  ;;  %v7809_v16 = vpop.f32.mrb[8].mxu0  ;;  %v13389_v18 = vand.u32 4294901760, %v10746_v17 }
 0x24c   : > { %v10762_v59 = vsub.f32 %v2278_v25, %v10755_v10  ;;  %v2281_v39 = vsel %vm2217_vm7, %v8753_v19, %v2249_v55  ;;  %v8755_v30 = vadd.f32 %v7809_v16, %v10677_v6  ;;  %v2068_v51 = vpop.f32.mrb[9].mxu0  ;;  %7875 = vmatprep.mubr.f32.mxu1 %v2414_v43  ;;  %v13392_v61 = vand.u32 4294901760, %v10740_v40 }
 0x24d   : > { %13849 = vst [vmem:[#allocation28_spill] sm:$0xff] %v10758_v50  ;;  %v10766_v22 = vand.u32 4294901760, %v2281_v39  ;;  %v2280_v27 = vsel %vm2216_vm8, %v8754_v52, %v2248_v29  ;;  %v8756_v48 = vadd.f32 %v10677_v6, %v2068_v51  ;;  %7876 = vmatmul.mubr.f32.vlgmr.msra.gmra.mrb[0].mxu1 %v2424_v23  ;;  %v2433_v2 = vsub.f32 %v10746_v17, %v13389_v18 }
 0x24e   : > { %13850 = vst [vmem:[#allocation29_spill] sm:$0xff] %v10762_v59  ;;  %v10772_v9 = vand.u32 4294901760, %v2280_v27  ;;  %vm2219_vm9 = vcmp.gt.f32.partialorder %v8755_v30, 0.0  ;;  %v2251_v25 = vmul.f32 0.01, %v8755_v30  ;;  %8382 = vmatpush3.bf16.msra.mxu1 %v10565_v57  ;;  %v2443_v55 = vsub.f32 %v10740_v40, %v13392_v61 }
 0x24f   : > { %vm2218_vm10 = vcmp.gt.f32.partialorder %v8756_v48, 0.0  ;;  %v2250_v19 = vmul.f32 0.01, %v8756_v48  ;;  %v7812_v52 = vpop.f32.mrb[10].mxu0  ;;  %v2434_v43 = vand.u32 4294901760, %v2433_v2  ;;  %8384 = vmatprep.subr.bf16.mxu1 %v10699_v35  ;;  %v10779_v23 = vpack.c.bf16 %v2840_v41, %v2833_v14 }
 0x250   : > { %v10782_v29 = vsub.f32 %v2281_v39, %v10766_v22  ;;  %v2283_v16 = vsel %vm2219_vm9, %v8755_v30, %v2251_v25  ;;  %v8757_v51 = vadd.f32 %v7812_v52, %v10677_v6  ;;  %v2080_v18 = vpop.f32.mrb[11].mxu0  ;;  %v2444_v57 = vand.u32 4294901760, %v2443_v55 }
 0x251   : > { %v10785_v36 = vand.u32 4294901760, %v2283_v16  ;;  %v2282_v26 = vsel %vm2218_vm10, %v8756_v48, %v2250_v19  ;;  %v8758_v61 = vadd.f32 %v10677_v6, %v2080_v18  ;;  %7878 = vmatprep.mubr.f32.mxu1 %v2434_v43  ;;  %v13394_v2 = vand.u32 4294901760, %v10762_v59 }
 0x252   : > { %13851 = vst [vmem:[#allocation30_spill] sm:$0xff] %v10782_v29  ;;  %v10790_v21 = vsub.f32 %v2280_v27, %v10772_v9  ;;  %vm2221_vm11 = vcmp.gt.f32.partialorder %v8757_v51, 0.0  ;;  %v2253_v14 = vmul.f32 0.01, %v8757_v51  ;;  %7879 = vmatmul.mubr.f32.gmra.mrb[2].mxu1 %v2444_v57  ;;  %v13396_v41 = vand.u32 4294901760, %v10758_v50 }
 0x253   : > { %13852 = vst [vmem:[#allocation31_spill] sm:$0xff] %v10785_v36  ;;  %v10793_v39 = vand.u32 4294901760, %v2282_v26  ;;  %vm2220_vm12 = vcmp.gt.f32.partialorder %v8758_v61, 0.0  ;;  %v2252_v30 = vmul.f32 0.01, %v8758_v61  ;;  %v7815_v25 = vpop.f32.mrb[12].mxu0  ;;  %v2453_v18 = vsub.f32 %v10762_v59, %v13394_v2  ;;  %8386 = vmatpush3.bf16.msra.mxu1 %v10699_v35 }
 0x254   : > { %13853 = vst [vmem:[#allocation32_spill] sm:$0xff] %v10790_v21  ;;  %v10800_v48 = vsub.f32 %v2283_v16, %v10785_v36  ;;  %v2285_v27 = vsel %vm2221_vm11, %v8757_v51, %v2253_v14  ;;  %v8759_v55 = vadd.f32 %v7815_v25, %v10677_v6  ;;  %v2092_v19 = vpop.f32.mrb[13].mxu0  ;;  %v2463_v52 = vsub.f32 %v10758_v50, %v13396_v41 }
 0x255   : > { %8388 = vmatprep.subr.bf16.mxu1 %v10707_v11  ;;  %v10807_v43 = vand.u32 4294901760, %v2285_v27  ;;  %v2284_v57 = vsel %vm2220_vm12, %v8758_v61, %v2252_v30  ;;  %v8760_v2 = vadd.f32 %v10677_v6, %v2092_v19  ;;  %v2454_v7 = vand.u32 4294901760, %v2453_v18 }
 0x256   : > { %13854 = vst [vmem:[#allocation33_spill] sm:$0xff] %v10800_v48  ;;  %v10810_v35 = vand.u32 4294901760, %v2284_v57  ;;  %vm2223_vm13 = vcmp.gt.f32.partialorder %v8759_v55, 0.0  ;;  %v2255_v16 = vmul.f32 0.01, %v8759_v55  ;;  %v2464_v51 = vand.u32 4294901760, %v2463_v52 }
 0x257   : > { %13855 = vst [vmem:[#allocation34_spill] sm:$0xff] %v10807_v43  ;;  %v10813_v14 = vsub.f32 %v2282_v26, %v10793_v39  ;;  %vm2222_vm14 = vcmp.gt.f32.partialorder %v8760_v2, 0.0  ;;  %v2254_v25 = vmul.f32 0.01, %v8760_v2  ;;  %7881 = vmatprep.mubr.f32.mxu1 %v2454_v7  ;;  %v7818_v41 = vpop.f32.mrb[14].mxu0  ;;  %v13399_v47 = vand.u32 4294901760, %v10790_v21  ;;  %8390 = vmatpush3.bf16.msra.mxu1 %v10707_v11 }
 0x258   : > { %13856 = vst [vmem:[#allocation35_spill] sm:$0xff] %v10810_v35  ;;  %v10818_v61 = vsub.f32 %v2285_v27, %v10807_v43  ;;  %v2287_v30 = vsel %vm2223_vm13, %v8759_v55, %v2255_v16  ;;  %7882 = vmatmul.mubr.f32.gmra.mrb[4].mxu1 %v2464_v51  ;;  %v8761_v18 = vadd.f32 %v7818_v41, %v10677_v6  ;;  %v2104_v19 = vpop.f32.mrb[15].mxu0  ;;  %v13406_v52 = vand.u32 4294901760, %v10782_v29 }
 0x259   : > { %13857 = vst [vmem:[#allocation36_spill] sm:$0xff] %v10813_v14  ;;  %8392 = vmatprep.subr.bf16.mxu1 %v10717_v37  ;;  %v10823_v26 = vand.u32 4294901760, %v2287_v30  ;;  %v2286_v7 = vsel %vm2222_vm14, %v8760_v2, %v2254_v25  ;;  %v8762_v34 = vadd.f32 %v10677_v6, %v2104_v19  ;;  %v2473_v11 = vsub.f32 %v10790_v21, %v13399_v47 }
 0x25a   : > { %13858 = vst [vmem:[#allocation37_spill] sm:$0xff] %v10818_v61  ;;  %v10830_v27 = vsub.f32 %v2284_v57, %v10810_v35  ;;  %vm2225_vm15 = vcmp.gt.f32.partialorder %v8761_v18, 0.0  ;;  %v2257_v55 = vmul.f32 0.01, %v8761_v18  ;;  %v2483_v41 = vsub.f32 %v10782_v29, %v13406_v52 }
 0x25b   : > { %13859 = vst [vmem:[#allocation38_spill] sm:$0xff] %v10823_v26  ;;  %v10835_v16 = vand.u32 4294901760, %v2286_v7  ;;  %vm2224_vm0 = vcmp.gt.f32.partialorder %v8762_v34, 0.0  ;;  %v2256_v51 = vmul.f32 0.01, %v8762_v34  ;;  %v2474_v2 = vand.u32 4294901760, %v2473_v11  ;;  %8394 = vmatpush3.bf16.msra.mxu1 %v10717_v37 }
 0x25c   : > { %13860 = vst [vmem:[#allocation39_spill] sm:$0xff] %v10830_v27  ;;  %v7821_v25 = vpop.f32.mrb[16].mxu0  ;;  %v10839_v19 = vsub.f32 %v2287_v30, %v10823_v26  ;;  %v2289_v47 = vsel %vm2225_vm15, %v8761_v18, %v2257_v55  ;;  %v2484_v57 = vand.u32 4294901760, %v2483_v41  ;;  %8396 = vmatprep.subr.bf16.mxu1 %v10580_v62  ;;  %v13413_v11 = vand.u32 4294901760, %v10813_v14 }
 0x25d   : > { %13861 = vst [vmem:[#allocation40_spill] sm:$0xff] %v10835_v16  ;;  %v8763_v13 = vadd.f32 %v7821_v25, %v10677_v6  ;;  %v2116_v58 = vpop.f32.mrb[17].mxu0  ;;  %v10843_v54 = vand.u32 4294901760, %v2289_v47  ;;  %v2288_v52 = vsel %vm2224_vm0, %v8762_v34, %v2256_v51  ;;  %7884 = vmatprep.mubr.f32.mxu1 %v2474_v2  ;;  %v13416_v30 = vand.u32 4294901760, %v10800_v48 }
 0x25e   : > { %13862 = vst [vmem:[#allocation41_spill] sm:$0xff] %v10839_v19  ;;  %v8764_v33 = vadd.f32 %v10677_v6, %v2116_v58  ;;  %v10847_v29 = vand.u32 4294901760, %v2288_v52  ;;  %7885 = vmatmul.mubr.f32.gmra.mrb[6].mxu1 %v2484_v57  ;;  %v10851_v18 = vsub.f32 %v2286_v7, %v10835_v16  ;;  %v2493_v34 = vsub.f32 %v10813_v14, %v13413_v11 }
 0x25f   : > { %13863 = vst [vmem:[#allocation42_spill] sm:$0xff] %v10843_v54  ;;  %vm2227_vm1 = vcmp.gt.f32.partialorder %v8763_v13, 0.0  ;;  %v2259_v37 = vmul.f32 0.01, %v8763_v13  ;;  %v7824_v41 = vpop.f32.mrb[18].mxu0  ;;  %8398 = vmatpush3.bf16.msra.mxu1 %v10580_v62  ;;  %v10858_v58 = vsub.f32 %v2289_v47, %v10843_v54  ;;  %v2503_v2 = vsub.f32 %v10800_v48, %v13416_v30 }
 0x260   : > { %13864 = vst [vmem:[#allocation43_spill] sm:$0xff] %v10847_v29  ;;  %13865 = vst [vmem:[#allocation44_spill] sm:$0xff] %v10851_v18  ;;  %vm2226_vm2 = vcmp.gt.f32.partialorder %v8764_v33, 0.0  ;;  %v2258_v55 = vmul.f32 0.01, %v8764_v33  ;;  %v8765_v7 = vadd.f32 %v7824_v41, %v10677_v6  ;;  %v2128_v25 = vpop.f32.mrb[19].mxu0  ;;  %8400 = vmatprep.subr.bf16.mxu1 %v10594_v8  ;;  %v10869_v62 = vsub.f32 %v2288_v52, %v10847_v29 }
 0x261   : > { %13866 = vst [vmem:[#allocation45_spill] sm:$0xff] %v10858_v58  ;;  %v2291_v51 = vsel %vm2227_vm1, %v8763_v13, %v2259_v37  ;;  %v2494_v11 = vand.u32 4294901760, %v2493_v34  ;;  %v8766_v14 = vadd.f32 %v10677_v6, %v2128_v25  ;;  %v2504_v47 = vand.u32 4294901760, %v2503_v2 }
 0x262   : > { %v10865_v57 = vand.u32 4294901760, %v2291_v51  ;;  %v2290_v44 = vsel %vm2226_vm2, %v8764_v33, %v2258_v55  ;;  %13868 = vst [vmem:[#allocation47_spill] sm:$0xff] %v10869_v62  ;;  %vm2229_vm3 = vcmp.gt.f32.partialorder %v8765_v7, 0.0  ;;  %v2261_v13 = vmul.f32 0.01, %v8765_v7 }
 0x263   : > { %v10871_v37 = vand.u32 4294901760, %v2290_v44  ;;  %7887 = vmatprep.mubr.f32.mxu1 %v2494_v11  ;;  %vm2228_vm4 = vcmp.gt.f32.partialorder %v8766_v14, 0.0  ;;  %v2260_v41 = vmul.f32 0.01, %v8766_v14  ;;  %v13421_v30 = vand.u32 4294901760, %v10830_v27  ;;  %v7827_v48 = vpop.f32.mrb[20].mxu0  ;;  %8402 = vmatpush3.bf16.msra.mxu1 %v10594_v8 }
 0x264   : > { %13867 = vst [vmem:[#allocation46_spill] sm:$0xff] %v10865_v57  ;;  %v10876_v33 = vsub.f32 %v2291_v51, %v10865_v57  ;;  %7888 = vmatmul.mubr.f32.gmra.mrb[8].mxu1 %v2504_v47  ;;  %v2293_v55 = vsel %vm2229_vm3, %v8765_v7, %v2261_v13  ;;  %v13428_v52 = vand.u32 4294901760, %v10818_v61  ;;  %v8767_v34 = vadd.f32 %v7827_v48, %v10677_v6  ;;  %v2140_v2 = vpop.f32.mrb[21].mxu0 }
 0x265   : > { %13869 = vst [vmem:[#allocation48_spill] sm:$0xff] %v10871_v37  ;;  %8404 = vmatprep.subr.bf16.mxu1 %v10721_v49  ;;  %v10881_v11 = vand.u32 4294901760, %v2293_v55  ;;  %v2292_v25 = vsel %vm2228_vm4, %v8766_v14, %v2260_v41  ;;  %v2513_v21 = vsub.f32 %v10830_v27, %v13421_v30  ;;  %v8768_v8 = vadd.f32 %v10677_v6, %v2140_v2 }
 0x266   : > { %13870 = vst [vmem:[#allocation49_spill] sm:$0xff] %v10876_v33  ;;  %v10887_v51 = vand.u32 4294901760, %v2292_v25  ;;  %v2523_v7 = vsub.f32 %v10818_v61, %v13428_v52  ;;  %vm2231_vm5 = vcmp.gt.f32.partialorder %v8767_v34, 0.0  ;;  %v2263_v48 = vmul.f32 0.01, %v8767_v34 }
 0x267   : > { %13871 = vst [vmem:[#allocation50_spill] sm:$0xff] %v10881_v11  ;;  %v10893_v47 = vsub.f32 %v2290_v44, %v10871_v37  ;;  %v2514_v13 = vand.u32 4294901760, %v2513_v21  ;;  %vm2230_vm6 = vcmp.gt.f32.partialorder %v8768_v8, 0.0  ;;  %v2262_v14 = vmul.f32 0.01, %v8768_v8  ;;  %v7830_v41 = vpop.f32.mrb[22].mxu0  ;;  %8406 = vmatpush3.bf16.msra.mxu1 %v10721_v49 }
 0x268   : > { %13872 = vst [vmem:[#allocation51_spill] sm:$0xff] %v10887_v51  ;;  %v10897_v30 = vsub.f32 %v2293_v55, %v10881_v11  ;;  %v2524_v2 = vand.u32 4294901760, %v2523_v7  ;;  %v2295_v27 = vsel %vm2231_vm5, %v8767_v34, %v2263_v48  ;;  %v13431_v50 = vand.u32 4294901760, %v10851_v18  ;;  %v2152_v4 = vpop.f32.mrb[23].mxu0  ;;  %8408 = vmatprep.subr.bf16.mxu1 %v10779_v23 }
 0x269   : > { %13873 = vst [vmem:[#allocation52_spill] sm:$0xff] %v10893_v47  ;;  %7890 = vmatprep.mubr.f32.mxu1 %v2514_v13  ;;  %v10901_v52 = vand.u32 4294901760, %v2295_v27  ;;  %v2294_v44 = vsel %vm2230_vm6, %v8768_v8, %v2262_v14  ;;  %v13434_v21 = vand.u32 4294901760, %v10839_v19  ;;  %v8769_v61 = vadd.f32 %v7830_v41, %v10677_v6 }
 0x26a   : > { %13874 = vst [vmem:[#allocation53_spill] sm:$0xff] %v10897_v30  ;;  %v10906_v49 = vsub.f32 %v2292_v25, %v10887_v51  ;;  %7891 = vmatmul.mubr.f32.gmra.mrb[10].mxu1 %v2524_v2  ;;  %v2533_v55 = vsub.f32 %v10851_v18, %v13431_v50  ;;  %v8770_v34 = vadd.f32 %v10677_v6, %v2152_v4  ;;  %v10913_v48 = vand.u32 4294901760, %v2294_v44 }
 0x26b   : > { %13875 = vst [vmem:[#allocation54_spill] sm:$0xff] %v10901_v52  ;;  %v2543_v8 = vsub.f32 %v10839_v19, %v13434_v21  ;;  %vm2233_vm7 = vcmp.gt.f32.partialorder %v8769_v61, 0.0  ;;  %v2265_v13 = vmul.f32 0.01, %v8769_v61  ;;  %v7833_v14 = vpop.f32.mrb[24].mxu0  ;;  %8410 = vmatpush3.bf16.msra.mxu1 %v10779_v23  ;;  %v10920_v25 = vsub.f32 %v2295_v27, %v10901_v52 }
 0x26c   : > { %13876 = vst [vmem:[#allocation55_spill] sm:$0xff] %v10906_v49  ;;  %13877 = vst [vmem:[#allocation56_spill] sm:$0xff] %v10913_v48  ;;  %v2534_v41 = vand.u32 4294901760, %v2533_v55  ;;  %vm2232_vm8 = vcmp.gt.f32.partialorder %v8770_v34, 0.0  ;;  %v2264_v2 = vmul.f32 0.01, %v8770_v34  ;;  %8412 = vmatprep.subr.bf16.mxu1 %v10598_v56  ;;  %v8771_v27 = vadd.f32 %v7833_v14, %v10677_v6 }
 0x26d   : > { %v2164_v4 = vpop.f32.mrb[25].mxu0  ;;  %v2544_v50 = vand.u32 4294901760, %v2543_v8  ;;  %v2297_v7 = vsel %vm2233_vm7, %v8769_v61, %v2265_v13  ;;  %v13878_v18 = vand.u32 4294901760, %v10869_v62  ;;  %v13441_v19 = vand.u32 4294901760, %v10858_v58 }
 0x26e   : > { %7893 = vmatprep.mubr.f32.mxu1 %v2534_v41  ;;  %v10927_v59 = vand.u32 4294901760, %v2297_v7  ;;  %v2296_v23 = vsel %vm2232_vm8, %v8770_v34, %v2264_v2  ;;  %v8772_v55 = vadd.f32 %v10677_v6, %v2164_v4  ;;  %v10932_v40 = vsub.f32 %v2294_v44, %v10913_v48 }
 0x26f   : > { %v2553_v21 = vsub.f32 %v10869_v62, %v13878_v18  ;;  %7894 = vmatmul.mubr.f32.gmra.mrb[12].mxu1 %v2544_v50  ;;  %v2563_v61 = vsub.f32 %v10858_v58, %v13441_v19  ;;  %v13452_v18 = vand.u32 4294901760, %v10893_v47  ;;  %v7836_v13 = vpop.f32.mrb[26].mxu0  ;;  %v10938_v41 = vand.u32 4294901760, %v2296_v23 }
 0x270   : > { %13879 = vst [vmem:[#allocation57_spill] sm:$0xff] %v10927_v59  ;;  %13880 = vst [vmem:[#allocation58_spill] sm:$0xff] %v10932_v40  ;;  %vm2235_vm9 = vcmp.gt.f32.partialorder %v8771_v27, 0.0  ;;  %v2267_v34 = vmul.f32 0.01, %v8771_v27  ;;  %vm2234_vm10 = vcmp.gt.f32.partialorder %v8772_v55, 0.0  ;;  %v10941_v2 = vsub.f32 %v2297_v7, %v10927_v59 }
 0x271   : > { %v2554_v8 = vand.u32 4294901760, %v2553_v21  ;;  %13881 = vst [vmem:[#allocation59_spill] sm:$0xff] %v10938_v41  ;;  %v2176_v14 = vpop.f32.mrb[27].mxu0  ;;  %v2564_v44 = vand.u32 4294901760, %v2563_v61  ;;  %v2266_v50 = vmul.f32 0.01, %v8772_v55  ;;  %v2573_v21 = vsub.f32 %v10893_v47, %v13452_v18 }
 0x272   : > { %v2299_v4 = vsel %vm2235_vm9, %v8771_v27, %v2267_v34  ;;  %v13453_v19 = vand.u32 4294901760, %v10876_v33  ;;  %v8773_v58 = vadd.f32 %v7836_v13, %v10677_v6  ;;  %v8774_v62 = vadd.f32 %v10677_v6, %v2176_v14 }
 0x273   : > { %7896 = vmatprep.mubr.f32.mxu1 %v2554_v8  ;;  %v10949_v20 = vand.u32 4294901760, %v2299_v4  ;;  %v2298_v17 = vsel %vm2234_vm10, %v8772_v55, %v2266_v50  ;;  %v2574_v7 = vand.u32 4294901760, %v2573_v21  ;;  %v13462_v8 = vand.u32 4294901760, %v10906_v49  ;;  %v7839_v61 = vpop.f32.mrb[28].mxu0 }
 0x274   : > { %7897 = vmatmul.mubr.f32.gmra.mrb[14].mxu1 %v2564_v44  ;;  %v10953_v0 = vsub.f32 %v2296_v23, %v10938_v41  ;;  %v2583_v27 = vsub.f32 %v10876_v33, %v13453_v19  ;;  %vm2237_vm11 = vcmp.gt.f32.partialorder %v8773_v58, 0.0  ;;  %v2269_v34 = vmul.f32 0.01, %v8773_v58  ;;  %v2188_v13 = vpop.f32.mrb[29].mxu0 }
 0x275   : > { %13882 = vst [vmem:[#allocation60_spill] sm:$0xff] %v10949_v20  ;;  %v10958_v18 = vand.u32 4294901760, %v2298_v17  ;;  %7899 = vmatprep.mubr.f32.mxu1 %v2574_v7  ;;  %vm2236_vm12 = vcmp.gt.f32.partialorder %v8774_v62, 0.0  ;;  %v2268_v14 = vmul.f32 0.01, %v8774_v62  ;;  %v2593_v55 = vsub.f32 %v10906_v49, %v13462_v8 }
 0x276   : > { %13883 = vst [vmem:[#allocation61_spill] sm:$0xff] %v10953_v0  ;;  %v10964_v44 = vsub.f32 %v2299_v4, %v10949_v20  ;;  %v2584_v23 = vand.u32 4294901760, %v2583_v27  ;;  %v2301_v50 = vsel %vm2237_vm11, %v8773_v58, %v2269_v34  ;;  %v13463_v21 = vand.u32 4294901760, %v10897_v30 }
 0x277   : > { %13884 = vst [vmem:[#allocation62_spill] sm:$0xff] %v10958_v18  ;;  %v10967_v19 = vand.u32 4294901760, %v2301_v50  ;;  %v2300_v33 = vsel %vm2236_vm12, %v8774_v62, %v2268_v14  ;;  %v2594_v47 = vand.u32 4294901760, %v2593_v55  ;;  %v8775_v45 = vadd.f32 %v7839_v61, %v10677_v6  ;;  %v7842_v7 = vpop.f32.mrb[30].mxu0 }
 0x278   : > { %13885 = vst [vmem:[#allocation63_spill] sm:$0xff] %v10964_v44  ;;  %7900 = vmatmul.mubr.f32.gmra.mrb[16].mxu1 %v2584_v23  ;;  %v10970_v59 = vand.u32 4294901760, %v2300_v33  ;;  %v2603_v8 = vsub.f32 %v10897_v30, %v13463_v21  ;;  %v8776_v4 = vadd.f32 %v10677_v6, %v2188_v13  ;;  %v13468_v58 = vand.u32 4294901760, %v10932_v40  ;;  %v2200_v27 = vpop.f32.mrb[31].mxu0 }
 0x279   : > { %13886 = vst [vmem:[#allocation64_spill] sm:$0xff] %v10967_v19  ;;  %v10978_v34 = vsub.f32 %v2298_v17, %v10958_v18  ;;  %7902 = vmatprep.mubr.f32.mxu1 %v2594_v47  ;;  %vm2239_vm13 = vcmp.gt.f32.partialorder %v8775_v45, 0.0  ;;  %v2271_v62 = vmul.f32 0.01, %v8775_v45  ;;  %v13473_v61 = vand.u32 4294901760, %v10920_v25 }
 0x27a   : > { %13887 = vst [vmem:[#allocation65_spill] sm:$0xff] %v10970_v59  ;;  %v10982_v14 = vsub.f32 %v2301_v50, %v10967_v19  ;;  %v2604_v55 = vand.u32 4294901760, %v2603_v8  ;;  %vm2238_vm14 = vcmp.gt.f32.partialorder %v8776_v4, 0.0  ;;  %v2270_v23 = vmul.f32 0.01, %v8776_v4 }
 0x27b   : > { %v2303_v21 = vsel %vm2239_vm13, %v8775_v45, %v2271_v62  ;;  %v2613_v13 = vsub.f32 %v10932_v40, %v13468_v58  ;;  %v2623_v17 = vsub.f32 %v10920_v25, %v13473_v61  ;;  %v8777_v47 = vadd.f32 %v7842_v7, %v10677_v6 }
 0x27c   : > { %v10992_v30 = vsub.f32 %v2300_v33, %v10970_v59  ;;  %7903 = vmatmul.mubr.f32.gmra.mrb[18].mxu1 %v2604_v55  ;;  %v2302_v50 = vsel %vm2238_vm14, %v8776_v4, %v2270_v23  ;;  %v8778_v8 = vadd.f32 %v10677_v6, %v2200_v27  ;;  %v13474_v49 = vand.u32 4294901760, %v10953_v0 }
 0x27d   : > { %v10996_v45 = vand.u32 4294901760, %v2303_v21  ;;  %v10998_v62 = vand.u32 4294901760, %v2302_v50  ;;  %v2614_v58 = vand.u32 4294901760, %v2613_v13  ;;  %vm2241_vm15 = vcmp.gt.f32.partialorder %v8777_v47, 0.0 }
 0x27e   : > { %v2624_v40 = vand.u32 4294901760, %v2623_v17  ;;  %v2273_v19 = vmul.f32 0.01, %v8777_v47  ;;  %vm2240_vm0 = vcmp.gt.f32.partialorder %v8778_v8, 0.0  ;;  %v2272_v61 = vmul.f32 0.01, %v8778_v8 }
 0x27f   : > { %13888 = vst [vmem:[#allocation66_spill] sm:$0xff] %v10996_v45  ;;  %13889 = vst [vmem:[#allocation67_spill] sm:$0xff] %v10998_v62  ;;  %v11001_v7 = vsub.f32 %v2302_v50, %v10998_v62  ;;  %7905 = vmatprep.mubr.f32.mxu1 %v2614_v58  ;;  %v2633_v6 = vsub.f32 %v10953_v0, %v13474_v49  ;;  %v13477_v33 = vand.u32 4294901760, %v10941_v2  ;;  %v13478_v4 = vand.u32 4294901760, %v10978_v34 }
 0x280   : > { %7906 = vmatmul.mubr.f32.gmra.mrb[20].mxu1 %v2624_v40  ;;  %v2305_v27 = vsel %vm2241_vm15, %v8777_v47, %v2273_v19  ;;  %v2304_v55 = vsel %vm2240_vm0, %v8778_v8, %v2272_v61  ;;  %v13479_v23 = vand.u32 4294901760, %v10964_v44  ;;  %v13482_v13 = vand.u32 4294901760, %v10992_v30 }
 0x281   : > { %v11011_v17 = vsub.f32 %v2303_v21, %v10996_v45  ;;  %v11013_v50 = vand.u32 4294901760, %v2304_v55  ;;  %v2634_v58 = vand.u32 4294901760, %v2633_v6  ;;  %v2643_v49 = vsub.f32 %v10941_v2, %v13477_v33 }
 0x282   : > { %v11018_v0 = vand.u32 4294901760, %v2305_v27  ;;  %v2653_v40 = vsub.f32 %v10978_v34, %v13478_v4  ;;  %v2663_v19 = vsub.f32 %v10964_v44, %v13479_v23  ;;  %v2673_v21 = vsub.f32 %v10992_v30, %v13482_v13 }
 0x283   : > { %13890 = vst [vmem:[#allocation68_spill] sm:$0xff] %v11013_v50  ;;  %v11030_v61 = vsub.f32 %v2304_v55, %v11013_v50  ;;  %7908 = vmatprep.mubr.f32.mxu1 %v2634_v58  ;;  %v2644_v47 = vand.u32 4294901760, %v2643_v49  ;;  %v13487_v8 = vand.u32 4294901760, %v10982_v14  ;;  %v13483_v6 = vand.u32 4294901760, %v11001_v7 }
 0x284   : > { %13891 = vst [vmem:[#allocation69_spill] sm:$0xff] %v11018_v0  ;;  %v2654_v33 = vand.u32 4294901760, %v2653_v40  ;;  %v2674_v4 = vand.u32 4294901760, %v2673_v21  ;;  %v11039_v13 = vsub.f32 %v2305_v27, %v11018_v0  ;;  %v2664_v55 = vand.u32 4294901760, %v2663_v19 }
 0x285   : > { %7909 = vmatmul.mubr.f32.gmra.mrb[22].mxu1 %v2644_v47  ;;  %v2693_v23 = vsub.f32 %v11001_v7, %v13483_v6  ;;  %v13485_v44 = vand.u32 4294901760, %v11030_v61  ;;  %v2683_v49 = vsub.f32 %v10982_v14, %v13487_v8  ;;  %v13486_v58 = vand.u32 4294901760, %v11011_v17  ;;  %v13911_v8 = vld [vmem:[#allocation44_spill] sm:$0xff] }
 0x286   : > { %7911 = vmatprep.mubr.f32.mxu1 %v2654_v33  ;;  %v13484_v19 = vand.u32 4294901760, %v11039_v13 }
 0x287   : > { %v2694_v33 = vand.u32 4294901760, %v2693_v23  ;;  %v2713_v40 = vsub.f32 %v11030_v61, %v13485_v44  ;;  %v2684_v21 = vand.u32 4294901760, %v2683_v49  ;;  %v2703_v27 = vsub.f32 %v11011_v17, %v13486_v58  ;;  %v13898_v49 = vld [vmem:[#allocation25_spill] sm:$0xff] }
 0x288   : > { %v13909_v44 = vld [vmem:[#allocation9_spill] sm:$0xff] }
 0x289   : > { %7912 = vmatmul.mubr.f32.gmra.mrb[24].mxu1 %v2664_v55  ;;  %v2714_v47 = vand.u32 4294901760, %v2713_v40  ;;  %v2704_v6 = vand.u32 4294901760, %v2703_v27  ;;  %v13897_v55 = vld [vmem:[#allocation5_spill] sm:$0xff]  ;;  %v13900_v40 = vld [vmem:[#allocation6_spill] sm:$0xff]  ;;  %v13902_v27 = vld [vmem:[#allocation32_spill] sm:$0xff] }
 0x28a   : > { %7914 = vmatprep.mubr.f32.mxu1 %v2674_v4  ;;  %v2723_v4 = vsub.f32 %v11039_v13, %v13484_v19  ;;  %v13908_v19 = vld [vmem:[#allocation39_spill] sm:$0xff]  ;;  %v13910_v58 = vld [vmem:[#allocation37_spill] sm:$0xff] }
 0x28c   : > { %v2724_v23 = vand.u32 4294901760, %v2723_v4  ;;  %v13904_v4 = vld [vmem:[#allocation30_spill] sm:$0xff] }
 0x28d   : > { %7915 = vmatmul.mubr.f32.gmra.mrb[26].mxu1 %v2684_v21  ;;  %v13901_v21 = vld [vmem:[#allocation28_spill] sm:$0xff] }
 0x28e   : > { %7917 = vmatprep.mubr.f32.mxu1 %v2694_v33  ;;  %v13899_v33 = vld [vmem:[#allocation29_spill] sm:$0xff] }
 0x291   : > { %7918 = vmatmul.mubr.f32.gmra.mrb[28].mxu1 %v2704_v6  ;;  %v13896_v6 = vld [vmem:[#allocation26_spill] sm:$0xff] }
 0x292   : > { %7920 = vmatprep.mubr.f32.mxu1 %v2714_v47  ;;  %v13903_v47 = vld [vmem:[#allocation7_spill] sm:$0xff] }
 0x295   : > { %7921 = vmatmul.mubr.f32.gmra.mrb[30].mxu1 %v2724_v23  ;;  %v13905_v23 = vld [vmem:[#allocation36_spill] sm:$0xff] }
 0x296   : > { %7955 = vmatprep.mubr.f32.mxu1 %v10719_v31 }
 0x299   : > { %7956 = vmatmul.mubr.f32.vlgmr.msra.gmra.mrb[0].mxu1 %v10714_v53 }
 0x29a   : > { %8414 = vmatpush3.bf16.msra.mxu1 %v10598_v56  ;;  %7958 = vmatprep.mubr.f32.mxu1 %v10736_v32  ;;  %v8435_v56 = vpack.c.bf16 %v10644_v3, %v10642_v46 }
 0x29b   : > { %8416 = vmatprep.subr.bf16.mxu1 %v10612_v24 }
 0x29d   : > { %7959 = vmatmul.mubr.f32.gmra.mrb[2].mxu1 %v10732_v63 }
 0x29e   : > { %7961 = vmatprep.mubr.f32.mxu1 %v10755_v10  ;;  %8418 = vmatpush3.bf16.msra.mxu1 %v10612_v24  ;;  %v8439_v24 = vpack.c.bf16 %v10672_v5, %v10664_v28 }
 0x29f   : > { %8420 = vmatprep.subr.bf16.mxu1 %v10626_v38 }
 0x2a1   : > { %7962 = vmatmul.mubr.f32.gmra.mrb[4].mxu1 %v10752_v60 }
 0x2a2   : > { %7964 = vmatprep.mubr.f32.mxu1 %v10772_v9  ;;  %8422 = vmatpush3.bf16.msra.mxu1 %v10626_v38  ;;  %v13892_v38 = vld [vmem:[#allocation57_spill] sm:$0xff] }
 0x2a3   : > { %8424 = vmatprep.subr.bf16.mxu1 %v10640_v12 }
 0x2a5   : > { %7965 = vmatmul.mubr.f32.gmra.mrb[6].mxu1 %v10766_v22 }
 0x2a6   : > { %7967 = vmatprep.mubr.f32.mxu1 %v10793_v39  ;;  %8426 = vmatpush3.bf16.msra.mxu1 %v10640_v12  ;;  %v13893_v12 = vld [vmem:[#allocation64_spill] sm:$0xff] }
 0x2a7   : > { %8428 = vmatprep.subr.bf16.mxu1 %v10656_v42 }
 0x2a9   : > { %7968 = vmatmul.mubr.f32.gmra.mrb[8].mxu1 %v10785_v36 }
 0x2aa   : > { %7970 = vmatprep.mubr.f32.mxu1 %v10810_v35  ;;  %8430 = vmatpush3.bf16.msra.mxu1 %v10656_v42  ;;  %v13894_v42 = vld [vmem:[#allocation24_spill] sm:$0xff] }
 0x2ab   : > { %8432 = vmatprep.subr.bf16.mxu1 %v10697_v15 }
 0x2ad   : > { %7971 = vmatmul.mubr.f32.gmra.mrb[10].mxu1 %v10807_v43 }
 0x2ae   : > { %7973 = vmatprep.mubr.f32.mxu1 %v10835_v16  ;;  %8434 = vmatpush3.bf16.msra.mxu1 %v10697_v15  ;;  %v13895_v15 = vld [vmem:[#allocation23_spill] sm:$0xff]  ;;  %v13935_v16 = vld [vmem:[#allocation21_spill] sm:$0xff] }
 0x2af   : > { %8436 = vmatprep.subr.bf16.mxu1 %v8435_v56  ;;  %v13936_v43 = vand.u32 4294901760, %v13935_v16  ;;  %v13946_v16 = vand.u32 4294901760, %v13902_v27 }
 0x2b1   : > { %7974 = vmatmul.mubr.f32.gmra.mrb[12].mxu1 %v10823_v26  ;;  %v13933_v26 = vand.u32 4294901760, %v13895_v15 }
 0x2b2   : > { %7976 = vmatprep.mubr.f32.mxu1 %v10847_v29  ;;  %8438 = vmatpush3.bf16.msra.mxu1 %v8435_v56  ;;  %v13906_v56 = vld [vmem:[#allocation8_spill] sm:$0xff] }
 0x2b3   : > { %8440 = vmatprep.subr.bf16.mxu1 %v8439_v24 }
 0x2b5   : > { %7977 = vmatmul.mubr.f32.gmra.mrb[14].mxu1 %v10843_v54  ;;  %v13931_v54 = vld [vmem:[#allocation19_spill] sm:$0xff] }
 0x2b6   : > { %7979 = vmatprep.mubr.f32.mxu1 %v10871_v37  ;;  %8442 = vmatpush3.bf16.msra.mxu1 %v8439_v24  ;;  %v13907_v24 = vld [vmem:[#allocation33_spill] sm:$0xff] }
 0x2b7   : > { %8444 = vmatprep.subr.bf16.mxu1 %v10401_v1 }
 0x2b9   : > { %7980 = vmatmul.mubr.f32.gmra.mrb[16].mxu1 %v10865_v57  ;;  %v13925_v57 = vld [vmem:[#allocation58_spill] sm:$0xff] }
 0x2ba   : > { %7982 = vmatprep.mubr.f32.mxu1 %v10887_v51  ;;  %v13924_v51 = vld [vmem:[#allocation53_spill] sm:$0xff] }
 0x2bd   : > { %7983 = vmatmul.mubr.f32.gmra.mrb[18].mxu1 %v10881_v11  ;;  %v13923_v11 = vld [vmem:[#allocation55_spill] sm:$0xff] }
 0x2be   : > { %7985 = vmatprep.mubr.f32.mxu1 %v10913_v48  ;;  %v13922_v48 = vld [vmem:[#allocation49_spill] sm:$0xff] }
 0x2c1   : > { %7986 = vmatmul.mubr.f32.gmra.mrb[20].mxu1 %v10901_v52  ;;  %v13921_v52 = vld [vmem:[#allocation52_spill] sm:$0xff] }
 0x2c2   : > { %7988 = vmatprep.mubr.f32.mxu1 %v10938_v41  ;;  %v13920_v41 = vld [vmem:[#allocation45_spill] sm:$0xff] }
 0x2c5   : > { %7989 = vmatmul.mubr.f32.gmra.mrb[22].mxu1 %v13892_v38 }
 0x2c6   : > { %7991 = vmatprep.mubr.f32.mxu1 %v10958_v18 }
 0x2c9   : > { %7992 = vmatmul.mubr.f32.gmra.mrb[24].mxu1 %v10949_v20  ;;  %v13918_v20 = vld [vmem:[#allocation13_spill] sm:$0xff] }
 0x2ca   : > { %7994 = vmatprep.mubr.f32.mxu1 %v10970_v59  ;;  %v13919_v18 = vand.u32 4294901760, %v13918_v20  ;;  %v13927_v20 = vld [vmem:[#allocation63_spill] sm:$0xff] }
 0x2cd   : > { %7995 = vmatmul.mubr.f32.gmra.mrb[26].mxu1 %v13893_v12  ;;  %v13916_v12 = vld [vmem:[#allocation12_spill] sm:$0xff] }
 0x2ce   : > { %7997 = vmatprep.mubr.f32.mxu1 %v10998_v62  ;;  %v13915_v62 = vld [vmem:[#allocation11_spill] sm:$0xff]  ;;  %v13917_v59 = vand.u32 4294901760, %v13916_v12  ;;  %v13926_v12 = vld [vmem:[#allocation61_spill] sm:$0xff] }
 0x2d0   : > { %v8475_v38 = vpack.c.bf16 %v13919_v18, %v13917_v59  ;;  %v13928_v59 = vand.u32 4294901760, %v13894_v42  ;;  %v13929_v18 = vld [vmem:[#allocation18_spill] sm:$0xff] }
 0x2d1   : > { %7998 = vmatmul.mubr.f32.gmra.mrb[28].mxu1 %v10996_v45  ;;  %v13914_v45 = vld [vmem:[#allocation47_spill] sm:$0xff]  ;;  %v13930_v37 = vand.u32 4294901760, %v13929_v18  ;;  %v13955_v18 = vld [vmem:[#allocation17_spill] sm:$0xff] }
 0x2d2   : > { %8000 = vmatprep.mubr.f32.mxu1 %v11013_v50  ;;  %v13913_v50 = vld [vmem:[#allocation41_spill] sm:$0xff] }
 0x2d5   : > { %8001 = vmatmul.mubr.f32.gmra.mrb[30].mxu1 %v11018_v0  ;;  %v13912_v0 = vld [vmem:[#allocation10_spill] sm:$0xff] }
 0x2d6   : > { %8035 = vmatprep.mubr.f32.mxu1 %v13894_v42  ;;  %v13939_v42 = vand.u32 4294901760, %v13898_v49 }
 0x2d9   : > { %8036 = vmatmul.mubr.f32.vlgmr.msra.gmra.mrb[0].mxu1 %v13895_v15 }
 0x2da   : > { %8446 = vmatpush3.bf16.msra.mxu1 %v10401_v1  ;;  %8038 = vmatprep.mubr.f32.mxu1 %v13896_v6 }
 0x2db   : > { %8448 = vmatprep.subr.bf16.mxu1 %v13897_v55 }
 0x2dd   : > { %8039 = vmatmul.mubr.f32.gmra.mrb[2].mxu1 %v13898_v49  ;;  %v13952_v49 = vand.u32 4294901760, %v13905_v23 }
 0x2de   : > { %8041 = vmatprep.mubr.f32.mxu1 %v13899_v33  ;;  %8450 = vmatpush3.bf16.msra.mxu1 %v13897_v55 }
 0x2df   : > { %8452 = vmatprep.subr.bf16.mxu1 %v13900_v40 }
 0x2e1   : > { %8042 = vmatmul.mubr.f32.gmra.mrb[4].mxu1 %v13901_v21 }
 0x2e2   : > { %8044 = vmatprep.mubr.f32.mxu1 %v13902_v27  ;;  %8454 = vmatpush3.bf16.msra.mxu1 %v13900_v40  ;;  %v13956_v27 = vand.u32 4294901760, %v13955_v18 }
 0x2e3   : > { %8456 = vmatprep.subr.bf16.mxu1 %v13903_v47 }
 0x2e5   : > { %8045 = vmatmul.mubr.f32.gmra.mrb[6].mxu1 %v13904_v4 }
 0x2e6   : > { %8047 = vmatprep.mubr.f32.mxu1 %v13905_v23  ;;  %8458 = vmatpush3.bf16.msra.mxu1 %v13903_v47  ;;  %v13960_v23 = vand.u32 4294901760, %v10644_v3  ;;  %v13967_v3 = vand.u32 4294901760, %v13920_v41 }
 0x2e7   : > { %8460 = vmatprep.subr.bf16.mxu1 %v13906_v56 }
 0x2e9   : > { %8048 = vmatmul.mubr.f32.gmra.mrb[8].mxu1 %v13907_v24 }
 0x2ea   : > { %8050 = vmatprep.mubr.f32.mxu1 %v13908_v19  ;;  %8462 = vmatpush3.bf16.msra.mxu1 %v13906_v56 }
 0x2eb   : > { %8464 = vmatprep.subr.bf16.mxu1 %v13909_v44 }
 0x2ed   : > { %8051 = vmatmul.mubr.f32.gmra.mrb[10].mxu1 %v13910_v58 }
 0x2ee   : > { %8053 = vmatprep.mubr.f32.mxu1 %v13911_v8  ;;  %8466 = vmatpush3.bf16.msra.mxu1 %v13909_v44  ;;  %v13937_v44 = vld [vmem:[#allocation22_spill] sm:$0xff] }
 0x2ef   : > { %8468 = vmatprep.subr.bf16.mxu1 %v13912_v0  ;;  %v13938_v35 = vand.u32 4294901760, %v13937_v44  ;;  %v13949_v44 = vld [vmem:[#allocation15_spill] sm:$0xff] }
 0x2f0   : > { %v13950_v15 = vand.u32 4294901760, %v13949_v44 }
 0x2f1   : > { %8054 = vmatmul.mubr.f32.gmra.mrb[12].mxu1 %v13913_v50  ;;  %v8483_v36 = vpack.c.bf16 %v13938_v35, %v13936_v43  ;;  %v13947_v43 = vld [vmem:[#allocation14_spill] sm:$0xff] }
 0x2f2   : > { %8056 = vmatprep.mubr.f32.mxu1 %v13914_v45  ;;  %8470 = vmatpush3.bf16.msra.mxu1 %v13912_v0  ;;  %v13934_v0 = vand.u32 4294901760, %v13896_v6  ;;  %v13948_v35 = vand.u32 4294901760, %v13947_v43 }
 0x2f3   : > { %8472 = vmatprep.subr.bf16.mxu1 %v13915_v62 }
 0x2f4   : > { %v8491_v6 = vpack.c.bf16 %v13950_v15, %v13948_v35  ;;  %v11287_v15 = vld [vmem:[%s13284_s5 + $0x20] sm:$0xff] }
 0x2f5   : > { %8057 = vmatmul.mubr.f32.gmra.mrb[14].mxu1 %v13920_v41  ;;  %v13973_v41 = vand.u32 4294901760, %v10920_v25  ;;  %v4453_v18 = vand.u32 4294901760, %v11287_v15 }
 0x2f6   : > { %8059 = vmatprep.mubr.f32.mxu1 %v13921_v52  ;;  %8474 = vmatpush3.bf16.msra.mxu1 %v13915_v62  ;;  %v13932_v62 = vand.u32 4294901760, %v13931_v54  ;;  %v13941_v54 = vld [vmem:[#allocation27_spill] sm:$0xff] }
 0x2f7   : > { %8476 = vmatprep.subr.bf16.mxu1 %v8475_v38 }
 0x2f8   : > { %v8479_v29 = vpack.c.bf16 %v13932_v62, %v13930_v37  ;;  %v13943_v37 = vld [vmem:[#allocation20_spill] sm:$0xff] }
 0x2f9   : > { %8060 = vmatmul.mubr.f32.gmra.mrb[16].mxu1 %v13922_v48  ;;  %v13944_v62 = vand.u32 4294901760, %v13943_v37  ;;  %v13962_v37 = vand.u32 4294901760, %v13911_v8  ;;  %v13968_v8 = vand.u32 4294901760, %v13921_v52  ;;  %v13974_v52 = vand.u32 4294901760, %v13926_v12 }
 0x2fa   : > { %8062 = vmatprep.mubr.f32.mxu1 %v13923_v11 }
 0x2fd   : > { %8063 = vmatmul.mubr.f32.gmra.mrb[18].mxu1 %v13924_v51 }
 0x2fe   : > { %8065 = vmatprep.mubr.f32.mxu1 %v13925_v57 }
 0x301   : > { %8066 = vmatmul.mubr.f32.gmra.mrb[20].mxu1 %v10920_v25  ;;  %v13980_v25 = vand.u32 4294901760, %v11001_v7 }
 0x302   : > { %8068 = vmatprep.mubr.f32.mxu1 %v13926_v12  ;;  %v13981_v12 = vand.u32 4294901760, %v11011_v17 }
 0x305   : > { %8069 = vmatmul.mubr.f32.gmra.mrb[22].mxu1 %v10941_v2 }
 0x306   : > { %8071 = vmatprep.mubr.f32.mxu1 %v10978_v34 }
 0x309   : > { %8072 = vmatmul.mubr.f32.gmra.mrb[24].mxu1 %v13927_v20 }
 0x30a   : > { %8074 = vmatprep.mubr.f32.mxu1 %v10992_v30 }
 0x30d   : > { %8075 = vmatmul.mubr.f32.gmra.mrb[26].mxu1 %v10982_v14 }
 0x30e   : > { %8077 = vmatprep.mubr.f32.mxu1 %v11001_v7  ;;  %v11260_v7 = vld [vmem:[%s13284_s5] sm:$0xff] }
 0x311   : > { %8078 = vmatmul.mubr.f32.gmra.mrb[28].mxu1 %v11011_v17 }
 0x312   : > { %8080 = vmatprep.mubr.f32.mxu1 %v11030_v61 }
 0x315   : > { %8081 = vmatmul.mubr.f32.gmra.mrb[30].mxu1 %v11039_v13 }
 0x316   : > { %8115 = vmatprep.mubr.f32.mxu1 %v13928_v59  ;;  %v13940_v59 = vand.u32 4294901760, %v13899_v33  ;;  %v13953_v33 = vld [vmem:[#allocation16_spill] sm:$0xff] }
 0x319   : > { %8116 = vmatmul.mubr.f32.vlgmr.msra.gmra.mrb[0].mxu1 %v13933_v26  ;;  %v13942_v26 = vand.u32 4294901760, %v13941_v54 }
 0x31a   : > { %8478 = vmatpush3.bf16.msra.mxu1 %v8475_v38  ;;  %8118 = vmatprep.mubr.f32.mxu1 %v13934_v0  ;;  %v13945_v0 = vand.u32 4294901760, %v13901_v21  ;;  %v13954_v21 = vand.u32 4294901760, %v13953_v33 }
 0x31b   : > { %8480 = vmatprep.subr.bf16.mxu1 %v8479_v29  ;;  %v8487_v38 = vpack.c.bf16 %v13944_v62, %v13942_v26  ;;  %v13961_v26 = vand.u32 4294901760, %v13910_v58  ;;  %v13975_v58 = vand.u32 4294901760, %v10941_v2  ;;  %v13982_v2 = vand.u32 4294901760, %v11030_v61  ;;  %v11268_v61 = vld [vmem:[%s13284_s5 + $0x10] sm:$0xff] }
 0x31c   : > { %v4449_v43 = vand.u32 4294901760, %v11268_v61 }
 0x31d   : > { %8119 = vmatmul.mubr.f32.gmra.mrb[2].mxu1 %v13939_v42  ;;  %v8495_v42 = vpack.c.bf16 %v13956_v27, %v13954_v21  ;;  %v11318_v27 = vld [vmem:[%s13284_s5 + $0x58] sm:$0xff] }
 0x31e   : > { %8121 = vmatprep.mubr.f32.mxu1 %v13940_v59  ;;  %8482 = vmatpush3.bf16.msra.mxu1 %v8479_v29  ;;  %v13951_v29 = vand.u32 4294901760, %v13904_v4  ;;  %v13958_v59 = vand.u32 4294901760, %v13908_v19  ;;  %v13959_v4 = vand.u32 4294901760, %v10642_v46  ;;  %v13964_v19 = vand.u32 4294901760, %v10672_v5 }
 0x31f   : > { %8484 = vmatprep.subr.bf16.mxu1 %v8483_v36  ;;  %v13966_v46 = vand.u32 4294901760, %v13914_v45  ;;  %v13970_v5 = vand.u32 4294901760, %v13923_v11  ;;  %v13971_v45 = vand.u32 4294901760, %v13924_v51  ;;  %v13977_v11 = vand.u32 4294901760, %v13927_v20 }
 0x320   : > { %v8499_v54 = vpack.c.bf16 %v13960_v23, %v13959_v4  ;;  %v13978_v51 = vand.u32 4294901760, %v10992_v30  ;;  %v11250_v30 = vld [vmem:[%s13284_s5 + $0x8] sm:$0xff]  ;;  %v4445_v20 = vand.u32 4294901760, %v11260_v7 }
 0x321   : > { %8122 = vmatmul.mubr.f32.gmra.mrb[4].mxu1 %v13945_v0  ;;  %v11274_v0 = vld [vmem:[%s13284_s5 + $0x28] sm:$0xff] }
 0x322   : > { %8124 = vmatprep.mubr.f32.mxu1 %v13946_v16  ;;  %8486 = vmatpush3.bf16.msra.mxu1 %v8483_v36  ;;  %v13957_v36 = vand.u32 4294901760, %v13907_v24  ;;  %v13963_v24 = vand.u32 4294901760, %v10664_v28  ;;  %v13969_v28 = vand.u32 4294901760, %v13922_v48  ;;  %v13976_v48 = vand.u32 4294901760, %v10978_v34  ;;  %v11279_v16 = vld [vmem:[%s13284_s5 + $0x38] sm:$0xff] }
 0x323   : > { %8488 = vmatprep.subr.bf16.mxu1 %v8487_v38  ;;  %v13983_v34 = vand.u32 4294901760, %v11039_v13  ;;  %v13542_v13 = vand.u32 4294901760, %v11250_v30  ;;  %v13540_v35 = vand.u32 4294901760, %v11274_v0  ;;  %v13537_v44 = vand.u32 4294901760, %v11279_v16 }
 0x324   : > { %v8503_v62 = vpack.c.bf16 %v13964_v19, %v13963_v24  ;;  %v11312_v21 = vsub.f32 %v11260_v7, %v4445_v20  ;;  %v11357_v24 = vsub.f32 %v11287_v15, %v4453_v18  ;;  %v11524_v15 = vld [vmem:[%s13284_s5 + $0xd8] sm:$0xff] }
 0x325   : > { %8125 = vmatmul.mubr.f32.gmra.mrb[6].mxu1 %v13951_v29  ;;  %v11297_v29 = vld [vmem:[%s13284_s5 + $0x48] sm:$0xff]  ;;  %v11337_v4 = vsub.f32 %v11279_v16, %v13537_v44  ;;  %v11493_v44 = vld [vmem:[%s13284_s5 + $0xb0] sm:$0xff] }
 0x326   : > { %8127 = vmatprep.mubr.f32.mxu1 %v13952_v49  ;;  %8490 = vmatpush3.bf16.msra.mxu1 %v8487_v38  ;;  %v13965_v38 = vand.u32 4294901760, %v13913_v50  ;;  %v13972_v50 = vand.u32 4294901760, %v13925_v57  ;;  %v13979_v57 = vand.u32 4294901760, %v10982_v14  ;;  %v11255_v14 = vld [vmem:[%s13284_s5 + $0x18] sm:$0xff]  ;;  %v11302_v49 = vsub.f32 %v11250_v30, %v13542_v13  ;;  %13987 = vst [vmem:[#allocation5_spill] sm:$0xff] %v11357_v24  ;;  %v11519_v13 = vld [vmem:[%s13284_s5 + $0xc8] sm:$0xff] }
 0x327   : > { %8492 = vmatprep.subr.bf16.mxu1 %v8491_v6  ;;  %v13541_v17 = vand.u32 4294901760, %v11255_v14  ;;  %13986 = vst [vmem:[#allocation26_spill] sm:$0xff] %v11337_v4  ;;  %v13536_v19 = vand.u32 4294901760, %v11297_v29 }
 0x329   : > { %8128 = vmatmul.mubr.f32.gmra.mrb[8].mxu1 %v13957_v36  ;;  %v11307_v33 = vsub.f32 %v11255_v14, %v13541_v17  ;;  %v11327_v36 = vsub.f32 %v11268_v61, %v4449_v43  ;;  %v11431_v61 = vld [vmem:[%s13284_s5 + $0x90] sm:$0xff] }
 0x32a   : > { %8130 = vmatprep.mubr.f32.mxu1 %v13958_v59  ;;  %8494 = vmatpush3.bf16.msra.mxu1 %v8491_v6  ;;  %v11292_v6 = vld [vmem:[%s13284_s5 + $0x30] sm:$0xff]  ;;  %v11332_v59 = vsub.f32 %v11274_v0, %v13540_v35 }
 0x32b   : > { %8496 = vmatprep.subr.bf16.mxu1 %v8495_v42  ;;  %13984 = vst [vmem:[#allocation24_spill] sm:$0xff] %v11327_v36  ;;  %v4457_v23 = vand.u32 4294901760, %v11292_v6 }
 0x32c   : > { %13985 = vst [vmem:[#allocation23_spill] sm:$0xff] %v11332_v59 }
 0x32d   : > { %8131 = vmatmul.mubr.f32.gmra.mrb[10].mxu1 %v13961_v26  ;;  %v11348_v26 = vld [vmem:[%s13284_s5 + $0x68] sm:$0xff]  ;;  %v11504_v35 = vpack.c.bf16 %v4457_v23, %v4453_v18  ;;  %v11545_v18 = vld [vmem:[%s13284_s5 + $0xd0] sm:$0xff] }
 0x32e   : > { %8133 = vmatprep.mubr.f32.mxu1 %v13962_v37  ;;  %8498 = vmatpush3.bf16.msra.mxu1 %v8495_v42  ;;  %v11323_v42 = vld [vmem:[%s13284_s5 + $0x40] sm:$0xff]  ;;  %v8603_v37 = vpack.c.bf16 %v11307_v33, %v11302_v49 }
 0x32f   : > { %8500 = vmatprep.subr.bf16.mxu1 %v8499_v54  ;;  %14000 = vst [vmem:[#allocation44_spill] sm:$0xff] %v11504_v35 }
 0x330   : > { %8604 = vmatprep.subr.bf16.mxu0 %v8603_v37 }
 0x331   : > { %8134 = vmatmul.mubr.f32.gmra.mrb[12].mxu1 %v13965_v38  ;;  %v11364_v38 = vld [vmem:[%s13284_s5 + $0x78] sm:$0xff] }
 0x332   : > { %8136 = vmatprep.mubr.f32.mxu1 %v13966_v46  ;;  %8502 = vmatpush3.bf16.msra.mxu1 %v8499_v54  ;;  %v11343_v54 = vld [vmem:[%s13284_s5 + $0x50] sm:$0xff]  ;;  %v8605_v46 = vpack.c.bf16 %v11327_v36, %v11312_v21 }
 0x333   : > { %8504 = vmatprep.subr.bf16.mxu1 %v8503_v62 }
 0x334   : > { %8606 = vmatpush1.bf16.msra.mxu0 %v8605_v46 }
 0x335   : > { %8137 = vmatmul.mubr.f32.gmra.mrb[14].mxu1 %v13967_v3  ;;  %v8607_v3 = vpack.c.bf16 %v11337_v4, %v11332_v59  ;;  %v14049_v4 = vand.u32 4294901760, %v11297_v29  ;;  %v14050_v59 = vand.u32 4294901760, %v11318_v27 }
 0x336   : > { %8139 = vmatprep.mubr.f32.mxu1 %v13968_v8  ;;  %8506 = vmatpush3.bf16.msra.mxu1 %v8503_v62  ;;  %v13533_v62 = vand.u32 4294901760, %v11318_v27  ;;  %v11379_v8 = vsub.f32 %v11292_v6, %v4457_v23 }
 0x337   : > { %8508 = vmatprep.subr.bf16.mxu1 %v10401_v1  ;;  %8608 = vmatprep.subr.bf16.mxu0 %v8607_v3  ;;  %v11656_v36 = vpack.c.bf16 %v14050_v59, %v14049_v4  ;;  %v4429_v59 = vld [vmem:[%s13284_s5 + $0xf0] sm:$0xff] }
 0x338   : > { %13988 = vst [vmem:[#allocation25_spill] sm:$0xff] %v11379_v8 }
 0x339   : > { %8140 = vmatmul.mubr.f32.gmra.mrb[16].mxu1 %v13969_v28  ;;  %v4461_v28 = vand.u32 4294901760, %v11323_v42  ;;  %14051 = vst [vmem:[#allocation18_spill] sm:$0xff] %v11656_v36 }
 0x33a   : > { %8142 = vmatprep.mubr.f32.mxu1 %v13970_v5  ;;  %v11385_v5 = vld [vmem:[%s13284_s5 + $0x70] sm:$0xff] }
 0x33d   : > { %8143 = vmatmul.mubr.f32.gmra.mrb[18].mxu1 %v13971_v45  ;;  %v11390_v45 = vsub.f32 %v11297_v29, %v13536_v19 }
 0x33e   : > { %8145 = vmatprep.mubr.f32.mxu1 %v13972_v50  ;;  %v11395_v50 = vsub.f32 %v11318_v27, %v13533_v62  ;;  %v11453_v62 = vpack.c.bf16 %v4449_v43, %v4445_v20  ;;  %v13543_v43 = vand.u32 4294901760, %v11431_v61  ;;  %v4427_v27 = vld [vmem:[%s13284_s5 + $0xe0] sm:$0xff] }
 0x33f   : > { %13989 = vst [vmem:[#allocation29_spill] sm:$0xff] %v11390_v45  ;;  %v4501_v4 = vand.u32 4294901760, %v4427_v27 }
 0x340   : > { %13990 = vst [vmem:[#allocation6_spill] sm:$0xff] %v11395_v50  ;;  %13996 = vst [vmem:[#allocation8_spill] sm:$0xff] %v11453_v62 }
 0x341   : > { %8146 = vmatmul.mubr.f32.gmra.mrb[20].mxu1 %v13973_v41  ;;  %v4465_v41 = vand.u32 4294901760, %v11343_v54 }
 0x342   : > { %8148 = vmatprep.mubr.f32.mxu1 %v13974_v52  ;;  %v13534_v52 = vand.u32 4294901760, %v11348_v26 }
 0x345   : > { %8149 = vmatmul.mubr.f32.gmra.mrb[22].mxu1 %v13975_v58  ;;  %v11402_v58 = vld [vmem:[%s13284_s5 + $0x88] sm:$0xff] }
 0x346   : > { %8151 = vmatprep.mubr.f32.mxu1 %v13976_v48  ;;  %v8609_v48 = vpack.c.bf16 %v11379_v8, %v11357_v24  ;;  %v13538_v37 = vand.u32 4294901760, %v11402_v58  ;;  %v14048_v8 = vand.u32 4294901760, %v11279_v16 }
 0x348   : > { %8610 = vmatpush1.bf16.msra.mxu0 %v8609_v48  ;;  %v11478_v19 = vsub.f32 %v11402_v58, %v13538_v37 }
 0x349   : > { %8152 = vmatmul.mubr.f32.gmra.mrb[24].mxu1 %v13977_v11  ;;  %v11408_v11 = vsub.f32 %v11323_v42, %v4461_v28  ;;  %v11439_v42 = vsub.f32 %v11348_v26, %v13534_v52  ;;  %v11458_v52 = vld [vmem:[%s13284_s5 + $0xa8] sm:$0xff] }
 0x34a   : > { %8154 = vmatprep.mubr.f32.mxu1 %v13978_v51  ;;  %v13535_v51 = vand.u32 4294901760, %v11364_v38  ;;  %13998 = vst [vmem:[#allocation39_spill] sm:$0xff] %v11478_v19  ;;  %v13549_v37 = vand.u32 4294901760, %v11458_v52 }
 0x34b   : > { %13991 = vst [vmem:[#allocation28_spill] sm:$0xff] %v11408_v11  ;;  %13993 = vst [vmem:[#allocation7_spill] sm:$0xff] %v11439_v42 }
 0x34d   : > { %8155 = vmatmul.mubr.f32.gmra.mrb[26].mxu1 %v13979_v57 }
 0x34e   : > { %8157 = vmatprep.mubr.f32.mxu1 %v13980_v25  ;;  %v11415_v25 = vld [vmem:[%s13284_s5 + $0x98] sm:$0xff] }
 0x34f   : > { %v13539_v3 = vand.u32 4294901760, %v11415_v25 }
 0x351   : > { %8158 = vmatmul.mubr.f32.gmra.mrb[28].mxu1 %v13981_v12  ;;  %v11420_v12 = vsub.f32 %v11343_v54, %v4465_v41  ;;  %v11444_v54 = vsub.f32 %v11364_v38, %v13535_v51  ;;  %v11463_v51 = vld [vmem:[%s13284_s5 + $0xb8] sm:$0xff]  ;;  %v11483_v48 = vsub.f32 %v11415_v25, %v13539_v3 }
 0x352   : > { %8160 = vmatprep.mubr.f32.mxu1 %v13982_v2  ;;  %v4473_v2 = vand.u32 4294901760, %v11385_v5  ;;  %v13552_v3 = vand.u32 4294901760, %v11463_v51 }
 0x353   : > { %13992 = vst [vmem:[#allocation32_spill] sm:$0xff] %v11420_v12  ;;  %13994 = vst [vmem:[#allocation30_spill] sm:$0xff] %v11444_v54 }
 0x354   : > { %v11469_v7 = vsub.f32 %v11385_v5, %v4473_v2  ;;  %13999 = vst [vmem:[#allocation37_spill] sm:$0xff] %v11483_v48  ;;  %v11488_v5 = vld [vmem:[%s13284_s5 + $0xa0] sm:$0xff] }
 0x355   : > { %8161 = vmatmul.mubr.f32.gmra.mrb[30].mxu1 %v13983_v34  ;;  %v11426_v34 = vld [vmem:[%s13284_s5 + $0x80] sm:$0xff] }
 0x356   : > { %8195 = vmatprep.mubr.f32.mxu1 %v10719_v31  ;;  %13997 = vst [vmem:[#allocation33_spill] sm:$0xff] %v11469_v7  ;;  %v13544_v20 = vand.u32 4294901760, %v11426_v34 }
 0x358   : > { %v11509_v17 = vsub.f32 %v11426_v34, %v13544_v20  ;;  %v11535_v20 = vpack.c.bf16 %v4465_v41, %v4461_v28  ;;  %v11556_v28 = vsub.f32 %v11463_v51, %v13552_v3  ;;  %v14010_v3 = vand.u32 4294901760, %v11493_v44  ;;  %v14018_v41 = vld [vmem:[#allocation34_spill] sm:$0xff] }
 0x359   : > { %8196 = vmatmul.mubr.f32.vlgmr.msra.gmra.mrb[0].mxu1 %v10714_v53 }
 0x35a   : > { %8510 = vmatpush3.bf16.msra.mxu1 %v10401_v1  ;;  %8198 = vmatprep.mubr.f32.mxu1 %v10736_v32  ;;  %v11369_v1 = vld [vmem:[%s13284_s5 + $0x60] sm:$0xff]  ;;  %14001 = vst [vmem:[#allocation41_spill] sm:$0xff] %v11509_v17  ;;  %14003 = vst [vmem:[#allocation12_spill] sm:$0xff] %v11535_v20 }
 0x35b   : > { %8512 = vmatprep.subr.bf16.mxu1 %v13897_v55  ;;  %v4469_v57 = vand.u32 4294901760, %v11369_v1  ;;  %14005 = vst [vmem:[#allocation45_spill] sm:$0xff] %v11556_v28 }
 0x35d   : > { %8199 = vmatmul.mubr.f32.gmra.mrb[2].mxu1 %v10732_v63  ;;  %v11448_v46 = vsub.f32 %v11369_v1, %v4469_v57  ;;  %v8613_v1 = vpack.c.bf16 %v11420_v12, %v11408_v11  ;;  %v14044_v12 = vld [vmem:[#allocation66_spill] sm:$0xff]  ;;  %v14045_v11 = vld [vmem:[#allocation68_spill] sm:$0xff] }
 0x35e   : > { %8201 = vmatprep.mubr.f32.mxu1 %v10755_v10  ;;  %8514 = vmatpush3.bf16.msra.mxu1 %v13897_v55  ;;  %v8611_v55 = vpack.c.bf16 %v11395_v50, %v11390_v45  ;;  %v14046_v50 = vld [vmem:[#allocation69_spill] sm:$0xff]  ;;  %v14047_v45 = vand.u32 4294901760, %v11274_v0  ;;  %v4430_v0 = vld [vmem:[%s13284_s5 + $0xf8] sm:$0xff] }
 0x35f   : > { %8516 = vmatprep.subr.bf16.mxu1 %v13900_v40  ;;  %13995 = vst [vmem:[#allocation36_spill] sm:$0xff] %v11448_v46  ;;  %v8617_v6 = vpack.c.bf16 %v11469_v7, %v11448_v46  ;;  %v11573_v46 = vsub.f32 %v11493_v44, %v14010_v3  ;;  %v14016_v3 = vand.u32 4294901760, %v11524_v15  ;;  %v4503_v29 = vand.u32 4294901760, %v4430_v0 }
 0x360   : > { %8612 = vmatprep.subr.bf16.mxu0 %v8611_v55  ;;  %v11514_v55 = vsub.f32 %v11431_v61, %v13543_v43  ;;  %v8619_v43 = vpack.c.bf16 %v11483_v48, %v11478_v19  ;;  %v11562_v19 = vpack.c.bf16 %v4473_v2, %v4469_v57  ;;  %v14013_v57 = vld [vmem:[#allocation9_spill] sm:$0xff]  ;;  %v11646_v24 = vpack.c.bf16 %v14048_v8, %v14047_v45 }
 0x361   : > { %8202 = vmatmul.mubr.f32.gmra.mrb[4].mxu1 %v10752_v60  ;;  %8614 = vmatpush1.bf16.msra.mxu0 %v8613_v1  ;;  %v11540_v1 = vld [vmem:[%s13284_s5 + $0xc0] sm:$0xff]  ;;  %14011 = vst [vmem:[#allocation55_spill] sm:$0xff] %v11573_v46  ;;  %v11590_v23 = vsub.f32 %v11524_v15, %v14016_v3  ;;  %v14024_v3 = vld [vmem:[#allocation10_spill] sm:$0xff]  ;;  %v11726_v8 = vsub.f32 %v4430_v0, %v4503_v29  ;;  %v14060_v45 = vand.u32 4294901760, %v11458_v52 }
 0x362   : > { %8204 = vmatprep.mubr.f32.mxu1 %v10772_v9  ;;  %8518 = vmatpush3.bf16.msra.mxu1 %v13900_v40  ;;  %v8615_v40 = vpack.c.bf16 %v11444_v54, %v11439_v42  ;;  %14002 = vst [vmem:[#allocation47_spill] sm:$0xff] %v11514_v55  ;;  %v8621_v48 = vpack.c.bf16 %v11514_v55, %v11509_v17  ;;  %14006 = vst [vmem:[#allocation52_spill] sm:$0xff] %v11562_v19  ;;  %v14012_v55 = vld [vmem:[#allocation35_spill] sm:$0xff]  ;;  %v14023_v17 = vld [vmem:[#allocation40_spill] sm:$0xff]  ;;  %v14029_v54 = vand.u32 4294901760, %v11255_v14 }
 0x363   : > { %8520 = vmatprep.subr.bf16.mxu1 %v13903_v47  ;;  %14017 = vst [vmem:[#allocation58_spill] sm:$0xff] %v11590_v23  ;;  %v14036_v14 = vld [vmem:[#allocation54_spill] sm:$0xff]  ;;  %v14043_v42 = vld [vmem:[#allocation67_spill] sm:$0xff] }
 0x364   : > { %8616 = vmatprep.subr.bf16.mxu0 %v8615_v40  ;;  %v14007_v40 = vld [vmem:[#allocation31_spill] sm:$0xff] }
 0x365   : > { %8205 = vmatmul.mubr.f32.gmra.mrb[6].mxu1 %v10766_v22  ;;  %8618 = vmatpush1.bf16.msra.mxu0 %v8617_v6 }
 0x366   : > { %8207 = vmatprep.mubr.f32.mxu1 %v10793_v39  ;;  %8522 = vmatpush3.bf16.msra.mxu1 %v13903_v47  ;;  %v11551_v47 = vsub.f32 %v11458_v52, %v13549_v37  ;;  %v14008_v37 = vand.u32 4294901760, %v11488_v5 }
 0x367   : > { %8524 = vmatprep.subr.bf16.mxu1 %v13906_v56  ;;  %8620 = vmatprep.subr.bf16.mxu0 %v8619_v43  ;;  %v14019_v43 = vand.u32 4294901760, %v11540_v1 }
 0x368   : > { %14004 = vst [vmem:[#allocation13_spill] sm:$0xff] %v11551_v47  ;;  %v11568_v7 = vsub.f32 %v11488_v5, %v14008_v37  ;;  %v8623_v2 = vpack.c.bf16 %v11556_v28, %v11551_v47  ;;  %v14014_v37 = vand.u32 4294901760, %v11519_v13  ;;  %v14021_v47 = vand.u32 4294901760, %v11545_v18 }
 0x369   : > { %8208 = vmatmul.mubr.f32.gmra.mrb[8].mxu1 %v14007_v40  ;;  %8622 = vmatpush1.bf16.msra.mxu0 %v8621_v48  ;;  %v11598_v28 = vsub.f32 %v11540_v1, %v14019_v43 }
 0x36a   : > { %14009 = vst [vmem:[#allocation49_spill] sm:$0xff] %v11568_v7  ;;  %8210 = vmatprep.mubr.f32.mxu1 %v14012_v55  ;;  %8526 = vmatpush3.bf16.msra.mxu1 %v13906_v56  ;;  %v11585_v6 = vsub.f32 %v11519_v13, %v14014_v37  ;;  %v8625_v56 = vpack.c.bf16 %v11573_v46, %v11568_v7  ;;  %v14025_v46 = vld [vmem:[#allocation38_spill] sm:$0xff]  ;;  %v14026_v7 = vld [vmem:[#allocation43_spill] sm:$0xff] }
 0x36b   : > { %8528 = vmatprep.subr.bf16.mxu1 %v14013_v57  ;;  %14020 = vst [vmem:[#allocation61_spill] sm:$0xff] %v11598_v28  ;;  %v11603_v37 = vsub.f32 %v11545_v18, %v14021_v47  ;;  %8624 = vmatprep.subr.bf16.mxu0 %v8623_v2  ;;  %v14027_v47 = vld [vmem:[#allocation11_spill] sm:$0xff] }
 0x36c   : > { %14015 = vst [vmem:[#allocation53_spill] sm:$0xff] %v11585_v6  ;;  %v8627_v48 = vpack.c.bf16 %v11590_v23, %v11585_v6  ;;  %v14030_v23 = vld [vmem:[#allocation42_spill] sm:$0xff]  ;;  %v14042_v6 = vld [vmem:[#allocation64_spill] sm:$0xff] }
 0x36d   : > { %8211 = vmatmul.mubr.f32.gmra.mrb[10].mxu1 %v14018_v41  ;;  %14022 = vst [vmem:[#allocation63_spill] sm:$0xff] %v11603_v37  ;;  %8626 = vmatpush1.bf16.msra.mxu0 %v8625_v56  ;;  %v8629_v43 = vpack.c.bf16 %v11603_v37, %v11598_v28  ;;  %v14031_v56 = vld [vmem:[#allocation48_spill] sm:$0xff]  ;;  %v14032_v37 = vld [vmem:[#allocation46_spill] sm:$0xff] }
 0x36e   : > { %8213 = vmatprep.mubr.f32.mxu1 %v14023_v17  ;;  %8530 = vmatpush3.bf16.msra.mxu1 %v14013_v57  ;;  %v14028_v57 = vand.u32 4294901760, %v11250_v30  ;;  %v14034_v28 = vld [vmem:[#allocation50_spill] sm:$0xff]  ;;  %v14035_v30 = vld [vmem:[#allocation56_spill] sm:$0xff] }
 0x36f   : > { %8532 = vmatprep.subr.bf16.mxu1 %v14024_v3  ;;  %8628 = vmatprep.subr.bf16.mxu0 %v8627_v48  ;;  %v14038_v48 = vld [vmem:[#allocation57_spill] sm:$0xff] }
 0x370   : > { %v11620_v2 = vpack.c.bf16 %v14029_v54, %v14028_v57  ;;  %v14037_v54 = vld [vmem:[#allocation59_spill] sm:$0xff]  ;;  %v14040_v57 = vld [vmem:[#allocation60_spill] sm:$0xff] }
 0x371   : > { %8214 = vmatmul.mubr.f32.gmra.mrb[12].mxu1 %v14025_v46  ;;  %8630 = vmatpush1.bf16.msra.mxu0 %v8629_v43  ;;  %v14039_v43 = vld [vmem:[#allocation62_spill] sm:$0xff] }
 0x372   : > { %8216 = vmatprep.mubr.f32.mxu1 %v14026_v7  ;;  %8534 = vmatpush3.bf16.msra.mxu1 %v14024_v3  ;;  %v14033_v3 = vld [vmem:[#allocation51_spill] sm:$0xff] }
 0x373   : > { %8536 = vmatprep.subr.bf16.mxu1 %v14027_v47 }
 0x375   : > { %8217 = vmatmul.mubr.f32.gmra.mrb[14].mxu1 %v14030_v23 }
 0x376   : > { %8219 = vmatprep.mubr.f32.mxu1 %v14031_v56  ;;  %8538 = vmatpush3.bf16.msra.mxu1 %v14027_v47  ;;  %v14041_v47 = vld [vmem:[#allocation65_spill] sm:$0xff] }
 0x377   : > { %8540 = vmatprep.subr.bf16.mxu1 %v11620_v2 }
 0x379   : > { %8220 = vmatmul.mubr.f32.gmra.mrb[16].mxu1 %v14032_v37 }
 0x37a   : > { %8222 = vmatprep.mubr.f32.mxu1 %v14033_v3 }
 0x37d   : > { %8223 = vmatmul.mubr.f32.gmra.mrb[18].mxu1 %v14034_v28 }
 0x37e   : > { %8225 = vmatprep.mubr.f32.mxu1 %v14035_v30 }
 0x381   : > { %8226 = vmatmul.mubr.f32.gmra.mrb[20].mxu1 %v14036_v14 }
 0x382   : > { %8228 = vmatprep.mubr.f32.mxu1 %v14037_v54 }
 0x385   : > { %8229 = vmatmul.mubr.f32.gmra.mrb[22].mxu1 %v14038_v48 }
 0x386   : > { %8231 = vmatprep.mubr.f32.mxu1 %v14039_v43 }
 0x389   : > { %8232 = vmatmul.mubr.f32.gmra.mrb[24].mxu1 %v14040_v57 }
 0x38a   : > { %8234 = vmatprep.mubr.f32.mxu1 %v14041_v47 }
 0x38d   : > { %8235 = vmatmul.mubr.f32.gmra.mrb[26].mxu1 %v14042_v6 }
 0x38e   : > { %8237 = vmatprep.mubr.f32.mxu1 %v14043_v42 }
 0x391   : > { %8238 = vmatmul.mubr.f32.gmra.mrb[28].mxu1 %v14044_v12 }
 0x392   : > { %8240 = vmatprep.mubr.f32.mxu1 %v14045_v11 }
 0x395   : > { %8241 = vmatmul.mubr.f32.gmra.mrb[30].mxu1 %v14046_v50 }
 0x396   : > { %8275 = vmatprep.mubr.f32.mxu1 %v10719_v31  ;;  %v14053_v31 = vand.u32 4294901760, %v11364_v38 }
 0x399   : > { %8276 = vmatmul.mubr.f32.vlgmr.msra.gmra.mrb[0].mxu1 %v10714_v53 }
 0x39a   : > { %8278 = vmatprep.mubr.f32.mxu1 %v10736_v32  ;;  %8542 = vmatpush1.bf16.msra.mxu1 %v11453_v62  ;;  %v14052_v32 = vand.u32 4294901760, %v11348_v26  ;;  %v4505_v26 = vand.u32 4294901760, %v4429_v59 }
 0x39b   : > { %8544 = vmatprep.subr.bf16.mxu1 %v11646_v24 }
 0x39c   : > { %v11666_v53 = vpack.c.bf16 %v14053_v31, %v14052_v32  ;;  %v14076_v32 = vld [vmem:[#allocation25_spill] sm:$0xff] }
 0x39d   : > { %8279 = vmatmul.mubr.f32.gmra.mrb[2].mxu1 %v10732_v63  ;;  %v14058_v63 = vand.u32 4294901760, %v11426_v34  ;;  %v14063_v34 = vand.u32 4294901760, %v11493_v44  ;;  %v14067_v44 = vand.u32 4294901760, %v11540_v1  ;;  %v13610_v1 = vand.u32 4294901760, %v11307_v33 }
 0x39e   : > { %8281 = vmatprep.mubr.f32.mxu1 %v10755_v10  ;;  %8546 = vmatpush1.bf16.msra.mxu1 %v11504_v35  ;;  %14054 = vst [vmem:[#allocation19_spill] sm:$0xff] %v11666_v53  ;;  %v14056_v10 = vand.u32 4294901760, %v11415_v25  ;;  %v11736_v25 = vsub.f32 %v4429_v59, %v4505_v26  ;;  %v13598_v31 = vand.u32 4294901760, %v14076_v32 }
 0x39f   : > { %8548 = vmatprep.subr.bf16.mxu1 %v11656_v36 }
 0x3a0   : > { %v4937_v0 = vsub.f32 %v14076_v32, %v13598_v31 }
 0x3a1   : > { %8282 = vmatmul.mubr.f32.gmra.mrb[4].mxu1 %v10752_v60  ;;  %v14059_v60 = vand.u32 4294901760, %v11431_v61 }
 0x3a2   : > { %8284 = vmatprep.mubr.f32.mxu1 %v10772_v9  ;;  %8550 = vmatpush1.bf16.msra.mxu1 %v11535_v20 }
 0x3a3   : > { %8552 = vmatprep.subr.bf16.mxu1 %v11666_v53 }
 0x3a5   : > { %8285 = vmatmul.mubr.f32.gmra.mrb[6].mxu1 %v10766_v22  ;;  %v14055_v22 = vand.u32 4294901760, %v11402_v58 }
 0x3a6   : > { %8287 = vmatprep.mubr.f32.mxu1 %v10793_v39  ;;  %8554 = vmatpush1.bf16.msra.mxu1 %v11562_v19  ;;  %v11708_v39 = vpack.c.bf16 %v14059_v60, %v14058_v63 }
 0x3a7   : > { %v11702_v9 = vpack.c.bf16 %v14056_v10, %v14055_v22 }
 0x3a9   : > { %8288 = vmatmul.mubr.f32.gmra.mrb[8].mxu1 %v14007_v40  ;;  %14057 = vst [vmem:[#allocation21_spill] sm:$0xff] %v11702_v9  ;;  %8556 = vmatprep.subr.bf16.mxu1 %v11702_v9 }
 0x3aa   : > { %8290 = vmatprep.mubr.f32.mxu1 %v14012_v55  ;;  %8558 = vmatpush1.bf16.msra.mxu1 %v11708_v39 }
 0x3ad   : > { %8291 = vmatmul.mubr.f32.gmra.mrb[10].mxu1 %v14018_v41  ;;  %v4907_v41 = vsub.f32 %v11307_v33, %v13610_v1 }
 0x3ae   : > { %8293 = vmatprep.mubr.f32.mxu1 %v14023_v17  ;;  %v4428_v17 = vld [vmem:[%s13284_s5 + $0xe8] sm:$0xff] }
 0x3af   : > { %v4499_v16 = vand.u32 4294901760, %v4428_v17 }
 0x3b1   : > { %8294 = vmatmul.mubr.f32.gmra.mrb[12].mxu1 %v14025_v46  ;;  %v11724_v38 = vsub.f32 %v4428_v17, %v4499_v16  ;;  %v14065_v46 = vand.u32 4294901760, %v11524_v15  ;;  %v11769_v15 = vpack.c.bf16 %v4505_v26, %v4501_v4 }
 0x3b2   : > { %8296 = vmatprep.mubr.f32.mxu1 %v14026_v7 }
 0x3b3   : > { %14071 = vst [vmem:[#allocation14_spill] sm:$0xff] %v11769_v15 }
 0x3b5   : > { %8297 = vmatmul.mubr.f32.gmra.mrb[14].mxu1 %v14030_v23  ;;  %v13612_v23 = vmov 0.0  }
 0x3b6   : > { %8299 = vmatprep.mubr.f32.mxu1 %v14031_v56  ;;  %5469 = vmatprep.mubr.f32.mxu0 %v13612_v23  ;;  %v13608_v56 = vand.u32 4294901760, %v11312_v21 }
 0x3b8   : > { %v4901_v22 = vsub.f32 %v11312_v21, %v13608_v56 }
 0x3b9   : > { %8300 = vmatmul.mubr.f32.gmra.mrb[16].mxu1 %v14032_v37 }
 0x3ba   : > { %8302 = vmatprep.mubr.f32.mxu1 %v14033_v3  ;;  %v14072_v3 = vld [vmem:[#allocation24_spill] sm:$0xff] }
 0x3bd   : > { %8303 = vmatmul.mubr.f32.gmra.mrb[18].mxu1 %v14034_v28 }
 0x3be   : > { %8305 = vmatprep.mubr.f32.mxu1 %v14035_v30  ;;  %v13607_v30 = vand.u32 4294901760, %v14072_v3 }
 0x3c0   : > { %v4913_v10 = vsub.f32 %v14072_v3, %v13607_v30 }
 0x3c1   : > { %8306 = vmatmul.mubr.f32.gmra.mrb[20].mxu1 %v14036_v14  ;;  %v14073_v14 = vld [vmem:[#allocation23_spill] sm:$0xff] }
 0x3c2   : > { %8308 = vmatprep.mubr.f32.mxu1 %v14037_v54  ;;  %v13603_v54 = vand.u32 4294901760, %v14073_v14  ;;  %v4914_v26 = vand.u32 4294901760, %v4913_v10 }
 0x3c4   : > { %v4919_v63 = vsub.f32 %v14073_v14, %v13603_v54 }
 0x3c5   : > { %8309 = vmatmul.mubr.f32.gmra.mrb[22].mxu1 %v14038_v48  ;;  %v14074_v48 = vld [vmem:[#allocation26_spill] sm:$0xff] }
 0x3c6   : > { %8311 = vmatprep.mubr.f32.mxu1 %v14039_v43  ;;  %v13600_v43 = vand.u32 4294901760, %v14074_v48 }
 0x3c8   : > { %v4931_v60 = vsub.f32 %v14074_v48, %v13600_v43 }
 0x3c9   : > { %8312 = vmatmul.mubr.f32.gmra.mrb[24].mxu1 %v14040_v57  ;;  %v14075_v57 = vld [vmem:[#allocation5_spill] sm:$0xff] }
 0x3ca   : > { %8314 = vmatprep.mubr.f32.mxu1 %v14041_v47  ;;  %v13599_v47 = vand.u32 4294901760, %v14075_v57 }
 0x3cc   : > { %v4925_v17 = vsub.f32 %v14075_v57, %v13599_v47 }
 0x3cd   : > { %8315 = vmatmul.mubr.f32.gmra.mrb[26].mxu1 %v14042_v6  ;;  %v4908_v6 = vand.u32 4294901760, %v4907_v41 }
 0x3ce   : > { %8317 = vmatprep.mubr.f32.mxu1 %v14043_v42  ;;  %v8631_v42 = vpack.c.bf16 %v11726_v8, %v11724_v38 }
 0x3d0   : > { %8632 = vmatprep.subr.bf16.mxu0 %v8631_v42  ;;  %v14080_v42 = vld [vmem:[#allocation32_spill] sm:$0xff] }
 0x3d1   : > { %8318 = vmatmul.mubr.f32.gmra.mrb[28].mxu1 %v14044_v12  ;;  %v14062_v12 = vand.u32 4294901760, %v11488_v5  ;;  %v14068_v5 = vand.u32 4294901760, %v11545_v18  ;;  %v13611_v18 = vand.u32 4294901760, %v11302_v49 }
 0x3d2   : > { %8320 = vmatprep.mubr.f32.mxu1 %v14045_v11  ;;  %v11734_v11 = vsub.f32 %v4427_v27, %v4501_v4  ;;  %v14078_v27 = vld [vmem:[#allocation6_spill] sm:$0xff]  ;;  %v4902_v4 = vand.u32 4294901760, %v4901_v22  ;;  %v14083_v22 = vld [vmem:[#allocation36_spill] sm:$0xff] }
 0x3d3   : > { %v11742_v61 = vpack.c.bf16 %v14063_v34, %v14062_v12  ;;  %v11760_v55 = vpack.c.bf16 %v14068_v5, %v14067_v44  ;;  %v4895_v28 = vsub.f32 %v11302_v49, %v13611_v18  ;;  %v13601_v59 = vand.u32 4294901760, %v14078_v27  ;;  %v11813_v44 = vld [vmem:[%s13283_s4] ss:$0 sm:$0xff] }
 0x3d4   : > { %v8633_v52 = vpack.c.bf16 %v11736_v25, %v11734_v11  ;;  %v4920_v12 = vand.u32 4294901760, %v4919_v63  ;;  %v4932_v34 = vand.u32 4294901760, %v4931_v60  ;;  %v4926_v5 = vand.u32 4294901760, %v4925_v17 }
 0x3d5   : > { %8321 = vmatmul.mubr.f32.gmra.mrb[30].mxu1 %v14046_v50  ;;  %v14061_v50 = vand.u32 4294901760, %v11463_v51  ;;  %v14064_v51 = vand.u32 4294901760, %v11519_v13  ;;  %14069 = vst [vmem:[#allocation27_spill] sm:$0xff] %v11760_v55  ;;  %v11766_v13 = vpack.c.bf16 %v4503_v29, %v4499_v16  ;;  %v4896_v40 = vand.u32 4294901760, %v4895_v28  ;;  %v14077_v16 = vld [vmem:[#allocation29_spill] sm:$0xff] }
 0x3d6   : > { %8634 = vmatpush1.bf16.msra.mxu0 %v8633_v52  ;;  %4539 = vmatprep.mubr.f32.mxu1 %v13612_v23  ;;  %v13597_v29 = vand.u32 4294901760, %v14077_v16  ;;  %v13606_v52 = vand.u32 4294901760, %v14080_v42  ;;  %v4938_v28 = vand.u32 4294901760, %v4937_v0  ;;  %v13609_v10 = vand.u32 4294901760, %v14083_v22  ;;  %v14084_v0 = vld [vmem:[#allocation33_spill] sm:$0xff] }
 0x3d7   : > { %v11732_v58 = vpack.c.bf16 %v14061_v50, %v14060_v45  ;;  %v11754_v7 = vpack.c.bf16 %v14065_v46, %v14064_v51  ;;  %8636 = vmatprep.subr.bf16.mxu0 %v11620_v2  ;;  %14070 = vst [vmem:[#allocation20_spill] sm:$0xff] %v11766_v13  ;;  %v8571_v37 = vpack.c.bf16 %v4908_v6, %v4896_v40  ;;  %v14079_v45 = vld [vmem:[#allocation28_spill] sm:$0xff]  ;;  %v14081_v51 = vld [vmem:[#allocation7_spill] sm:$0xff]  ;;  %v14082_v40 = vld [vmem:[#allocation30_spill] sm:$0xff] }
 0x3d8   : > { %v13602_v50 = vand.u32 4294901760, %v14079_v45  ;;  %v13604_v46 = vand.u32 4294901760, %v14081_v51  ;;  %v11818_v41 = vsub.f32 %v14077_v16, %v13597_v29  ;;  %v13605_v6 = vand.u32 4294901760, %v14082_v40 }
 0x3d9   : > { %8560 = vmatprep.subr.bf16.mxu1 %v11732_v58  ;;  %14066 = vst [vmem:[#allocation22_spill] sm:$0xff] %v11754_v7  ;;  %v11827_v60 = vpack.c.bf16 %v4914_v26, %v4902_v4  ;;  %v13614_v29 = vand.u32 4294901760, %v14084_v0  ;;  %v11836_v43 = vpack.c.bf16 %v4932_v34, %v4920_v12 }
 0x3da   : > { %8562 = vmatpush1.bf16.msra.mxu1 %v11742_v61  ;;  %v11832_v17 = vsub.f32 %v14079_v45, %v13602_v50  ;;  %v11846_v4 = vsub.f32 %v14081_v51, %v13604_v46  ;;  %v11849_v50 = vpack.c.bf16 %v4938_v28, %v4926_v5  ;;  %v4944_v54 = vand.u32 4294901760, %v11818_v41 }
 0x3db   : > { %8564 = vmatprep.subr.bf16.mxu1 %v11754_v7  ;;  %v11855_v12 = vsub.f32 %v14082_v40, %v13605_v6  ;;  %v11861_v46 = vsub.f32 %v14083_v22, %v13609_v10  ;;  %v11867_v41 = vsub.f32 %v14084_v0, %v13614_v29 }
 0x3dc   : > { %v4950_v28 = vand.u32 4294901760, %v11832_v17  ;;  %v4968_v56 = vand.u32 4294901760, %v11846_v4 }
 0x3dd   : > { %v4980_v17 = vand.u32 4294901760, %v11855_v12  ;;  %v4974_v0 = vand.u32 4294901760, %v11861_v46  ;;  %v4986_v4 = vand.u32 4294901760, %v11867_v41 }
 0x3de   : > { %8566 = vmatpush1.bf16.msra.mxu1 %v11760_v55 }
 0x3df   : > { %8568 = vmatprep.subr.bf16.mxu1 %v11766_v13  ;;  %v11921_v16 = vpack.c.bf16 %v4980_v17, %v4968_v56 }
 0x3e2   : > { %8570 = vmatpush1.bf16.msra.mxu1 %v11769_v15 }
 0x3e3   : > { %8572 = vmatprep.subr.bf16.mxu1 %v8571_v37  ;;  %v11824_v37 = vsub.f32 %v14078_v27, %v13601_v59  ;;  %v11841_v59 = vsub.f32 %v14080_v42, %v13606_v52 }
 0x46c   : > { %v8277_v63 = vpop.f32.mrb[0].mxu1 }
 0x46d   : > { %v8779_v31 = vadd.f32 %v8277_v63, %v11813_v44  ;;  %v4113_v47 = vpop.f32.mrb[1].mxu1  ;;  %v4956_v63 = vand.u32 4294901760, %v11824_v37  ;;  %v4962_v37 = vand.u32 4294901760, %v11841_v59 }
 0x46e   : > { %v8780_v26 = vadd.f32 %v11813_v44, %v4113_v47 }
 0x46f   : > { %vm4304_vm1 = vcmp.gt.f32.partialorder %v8779_v31, 0.0  ;;  %v4336_v34 = vmul.f32 0.01, %v8779_v31 }
 0x470   : > { %vm4303_vm2 = vcmp.gt.f32.partialorder %v8780_v26, 0.0  ;;  %v4335_v47 = vmul.f32 0.01, %v8780_v26  ;;  %v8280_v5 = vpop.f32.mrb[2].mxu1 }
 0x471   : > { %v8781_v6 = vadd.f32 %v8280_v5, %v11813_v44  ;;  %v4125_v52 = vpop.f32.mrb[3].mxu1  ;;  %v4368_v30 = vsel %vm4304_vm1, %v8779_v31, %v4336_v34 }
 0x472   : > { %v4367_v10 = vsel %vm4303_vm2, %v8780_v26, %v4335_v47  ;;  %v8782_v1 = vadd.f32 %v11813_v44, %v4125_v52  ;;  %v11873_v18 = vand.u32 4294901760, %v4368_v30  ;;  %v14087_v47 = vld [vmem:[#allocation39_spill] sm:$0xff] }
 0x473   : > { %v11876_v23 = vand.u32 4294901760, %v4367_v10  ;;  %vm4306_vm3 = vcmp.gt.f32.partialorder %v8781_v6, 0.0  ;;  %v4338_v29 = vmul.f32 0.01, %v8781_v6  ;;  %v14096_v56 = vand.u32 4294901760, %v14087_v47 }
 0x474   : > { %14085 = vst [vmem:[#allocation15_spill] sm:$0xff] %v11873_v18  ;;  %vm4305_vm4 = vcmp.gt.f32.partialorder %v8782_v1, 0.0  ;;  %v4337_v5 = vmul.f32 0.01, %v8782_v1  ;;  %v8283_v31 = vpop.f32.mrb[4].mxu1  ;;  %v11880_v59 = vsub.f32 %v4368_v30, %v11873_v18 }
 0x475   : > { %14086 = vst [vmem:[#allocation16_spill] sm:$0xff] %v11876_v23  ;;  %v11884_v52 = vsub.f32 %v4367_v10, %v11876_v23  ;;  %v8783_v26 = vadd.f32 %v8283_v31, %v11813_v44  ;;  %v4137_v12 = vpop.f32.mrb[5].mxu1  ;;  %v4370_v34 = vsel %vm4306_vm3, %v8781_v6, %v4338_v29  ;;  %v14090_v10 = vld [vmem:[#allocation37_spill] sm:$0xff] }
 0x476   : > { %v8784_v40 = vadd.f32 %v11813_v44, %v4137_v12  ;;  %v4369_v46 = vsel %vm4305_vm4, %v8782_v1, %v4337_v5  ;;  %v11890_v42 = vand.u32 4294901760, %v4370_v34  ;;  %v14091_v31 = vld [vmem:[#allocation41_spill] sm:$0xff]  ;;  %v14092_v5 = vmov 0.0  }
 0x477   : > { %v13628_v30 = vand.u32 4294901760, %v11884_v52  ;;  %5472 = vmatmul.mubr.f32.vlgmr.msra.gmra.mrb[32].mxu0 %v11884_v52  ;;  %v11894_v41 = vand.u32 4294901760, %v4369_v46  ;;  %v4340_v29 = vmul.f32 0.01, %v8783_v26  ;;  %v11900_v12 = vpack.c.bf16 %v4956_v63, %v4944_v54 }
 0x478   : > { %14088 = vst [vmem:[#allocation17_spill] sm:$0xff] %v11890_v42  ;;  %vm4307_vm5 = vcmp.gt.f32.partialorder %v8784_v40, 0.0  ;;  %v4339_v6 = vmul.f32 0.01, %v8784_v40  ;;  %8638 = vmatpush1.bf16.msra.mxu0 %v11453_v62  ;;  %v8286_v1 = vpop.f32.mrb[6].mxu1  ;;  %5477 = vmatprep.mubr.f32.mxu0 %v14092_v5  ;;  %vm4308_vm6 = vcmp.gt.f32.partialorder %v8783_v26, 0.0  ;;  %v11915_v63 = vsub.f32 %v4370_v34, %v11890_v42 }
 0x479   : > { %14089 = vst [vmem:[#allocation31_spill] sm:$0xff] %v11894_v41  ;;  %v4543_v22 = vsub.f32 %v11884_v52, %v13628_v30  ;;  %v4149_v51 = vpop.f32.mrb[7].mxu1  ;;  %v11906_v18 = vsub.f32 %v4369_v46, %v11894_v41  ;;  %v14093_v23 = vand.u32 4294901760, %v11880_v59  ;;  %8640 = vmatprep.subr.bf16.mxu0 %v11646_v24  ;;  %v8785_v62 = vadd.f32 %v8286_v1, %v11813_v44  ;;  %v14101_v42 = vld [vmem:[#allocation45_spill] sm:$0xff] }
 0x47a   : > { %v8786_v54 = vadd.f32 %v11813_v44, %v4149_v51  ;;  %v4371_v27 = vsel %vm4307_vm5, %v8784_v40, %v4339_v6  ;;  %v11919_v41 = vpack.c.bf16 %v4962_v37, %v4950_v28  ;;  %v4372_v51 = vsel %vm4308_vm6, %v8783_v26, %v4340_v29  ;;  %v14095_v40 = vld [vmem:[#allocation47_spill] sm:$0xff] }
 0x47b   : > { %v4554_v45 = vsub.f32 %v11880_v59, %v14093_v23  ;;  %v4544_v30 = vand.u32 4294901760, %v4543_v22  ;;  %5480 = vmatmul.mubr.f32.gmra.mrb[34].mxu0 %v11880_v59  ;;  %v13633_v46 = vand.u32 4294901760, %v11906_v18  ;;  %v11924_v1 = vand.u32 4294901760, %v4371_v27 }
 0x47c   : > { %v4341_v23 = vmul.f32 0.01, %v8786_v54  ;;  %v8289_v32 = vpop.f32.mrb[8].mxu1  ;;  %5485 = vmatprep.mubr.f32.mxu0 %v14092_v5  ;;  %8642 = vmatpush1.bf16.msra.mxu0 %v11504_v35  ;;  %v13643_v22 = vand.u32 4294901760, %v14095_v40  ;;  %vm4309_vm7 = vcmp.gt.f32.partialorder %v8786_v54, 0.0  ;;  %v11930_v28 = vpack.c.bf16 %v4986_v4, %v4974_v0 }
 0x47d   : > { %14094 = vst [vmem:[#allocation35_spill] sm:$0xff] %v11924_v1  ;;  %v4161_v34 = vpop.f32.mrb[9].mxu1  ;;  %4545 = vmatmul.mubr.f32.vlgmr.msra.gmra.mrb[32].mxu1 %v4544_v30  ;;  %8644 = vmatprep.subr.bf16.mxu0 %v11656_v36  ;;  %v11935_v37 = vsub.f32 %v14087_v47, %v14096_v56  ;;  %v14097_v17 = vand.u32 4294901760, %v14090_v10  ;;  %v4342_v26 = vmul.f32 0.01, %v8785_v62  ;;  %v4555_v29 = vand.u32 4294901760, %v4554_v45 }
 0x47e   : > { %4550 = vmatprep.mubr.f32.mxu1 %v14092_v5  ;;  %8574 = vmatpush1.bf16.msra.mxu1 %v11827_v60  ;;  %v14098_v0 = vand.u32 4294901760, %v14091_v31  ;;  %vm4310_vm8 = vcmp.gt.f32.partialorder %v8785_v62, 0.0  ;;  %v4565_v56 = vsub.f32 %v11906_v18, %v13633_v46  ;;  %v11957_v45 = vand.u32 4294901760, %v4372_v51  ;;  %v14102_v36 = vld [vmem:[#allocation49_spill] sm:$0xff] }
 0x47f   : > { %v11940_v6 = vsub.f32 %v14090_v10, %v14097_v17  ;;  %5488 = vmatmul.mubr.f32.gmra.mrb[36].mxu0 %v11906_v18  ;;  %v11955_v17 = vsub.f32 %v4371_v27, %v11924_v1  ;;  %8576 = vmatprep.subr.bf16.mxu1 %v11836_v43  ;;  %v8788_v60 = vadd.f32 %v11813_v44, %v4161_v34  ;;  %v4992_v43 = vand.u32 4294901760, %v11935_v37  ;;  %v14100_v1 = vld [vmem:[#allocation13_spill] sm:$0xff] }
 0x480   : > { %v11948_v4 = vsub.f32 %v14091_v31, %v14098_v0  ;;  %14099 = vst [vmem:[#allocation9_spill] sm:$0xff] %v11957_v45  ;;  %v11961_v30 = vpop.f32.mrb[10].mxu1  ;;  %5493 = vmatprep.mubr.f32.mxu0 %v14092_v5  ;;  %v4373_v0 = vsel %vm4309_vm7, %v8786_v54, %v4341_v23  ;;  %8646 = vmatpush1.bf16.msra.mxu0 %v11535_v20  ;;  %v14103_v23 = vand.u32 4294901760, %v11915_v63  ;;  %v14104_v20 = vld [vmem:[#allocation55_spill] sm:$0xff]  ;;  %v4566_v37 = vand.u32 4294901760, %v4565_v56 }
 0x481   : > { %v5009_v46 = vsub.f32 %v14095_v40, %v13643_v22  ;;  %v4173_v27 = vpop.f32.mrb[11].mxu1  ;;  %4556 = vmatmul.mubr.f32.gmra.mrb[34].mxu1 %v4555_v29  ;;  %8648 = vmatprep.subr.bf16.mxu0 %v11666_v53  ;;  %v8787_v54 = vadd.f32 %v8289_v32, %v11813_v44  ;;  %v4374_v29 = vsel %vm4310_vm8, %v8785_v62, %v4342_v26  ;;  %v11986_v31 = vand.u32 4294901760, %v4373_v0 }
 0x482   : > { %4561 = vmatprep.mubr.f32.mxu1 %v14092_v5  ;;  %v4576_v22 = vsub.f32 %v11915_v63, %v14103_v23  ;;  %v11983_v34 = vsub.f32 %v4372_v51, %v11957_v45  ;;  %8578 = vmatpush1.bf16.msra.mxu1 %v11849_v50  ;;  %v4343_v32 = vmul.f32 0.01, %v8788_v60  ;;  %v5004_v62 = vand.u32 4294901760, %v11940_v6 }
 0x483   : > { %5496 = vmatmul.mubr.f32.gmra.mrb[38].mxu0 %v11915_v63  ;;  %14105 = vst [vmem:[#allocation34_spill] sm:$0xff] %v11986_v31  ;;  %v4998_v26 = vand.u32 4294901760, %v11948_v4  ;;  %v5010_v56 = vand.u32 4294901760, %v5009_v46  ;;  %vm4311_vm9 = vcmp.gt.f32.partialorder %v8788_v60, 0.0  ;;  %8580 = vmatprep.subr.bf16.mxu1 %v11900_v12  ;;  %v14106_v23 = vand.u32 4294901760, %v14100_v1 }
 0x484   : > { %v11989_v40 = vpop.f32.mrb[12].mxu1  ;;  %5501 = vmatprep.mubr.f32.mxu0 %v14092_v5  ;;  %8650 = vmatpush1.bf16.msra.mxu0 %v11562_v19  ;;  %v14107_v35 = vand.u32 4294901760, %v14101_v42  ;;  %v14108_v45 = vand.u32 4294901760, %v14102_v36  ;;  %v4344_v19 = vmul.f32 0.01, %v8787_v54  ;;  %v4577_v46 = vand.u32 4294901760, %v4576_v22 }
 0x485   : > { %v4185_v51 = vpop.f32.mrb[13].mxu1  ;;  %4567 = vmatmul.mubr.f32.gmra.mrb[36].mxu1 %v4566_v37  ;;  %v5015_v50 = vsub.f32 %v14100_v1, %v14106_v23  ;;  %v12006_v4 = vand.u32 4294901760, %v4374_v29  ;;  %8652 = vmatprep.subr.bf16.mxu0 %v11702_v9  ;;  %v14110_v12 = vand.u32 4294901760, %v14104_v20  ;;  %vm4312_vm10 = vcmp.gt.f32.partialorder %v8787_v54, 0.0 }
 0x486   : > { %v5027_v53 = vsub.f32 %v14101_v42, %v14107_v35  ;;  %v5021_v6 = vsub.f32 %v14102_v36, %v14108_v45  ;;  %4572 = vmatprep.mubr.f32.mxu1 %v14092_v5  ;;  %v14111_v35 = vand.u32 4294901760, %v11955_v17  ;;  %v12017_v45 = vsub.f32 %v4373_v0, %v11986_v31  ;;  %8582 = vmatpush1.bf16.msra.mxu1 %v11919_v41 }
 0x487   : > { %14109 = vst [vmem:[#allocation40_spill] sm:$0xff] %v12006_v4  ;;  %v5033_v37 = vsub.f32 %v14104_v20, %v14110_v12  ;;  %5504 = vmatmul.mubr.f32.gmra.mrb[40].mxu0 %v11955_v17  ;;  %v8790_v9 = vadd.f32 %v11813_v44, %v4173_v27  ;;  %v4375_v12 = vsel %vm4311_vm9, %v8788_v60, %v4343_v32  ;;  %v5016_v22 = vand.u32 4294901760, %v5015_v50 }
 0x488   : > { %v4587_v23 = vsub.f32 %v11955_v17, %v14111_v35  ;;  %v12022_v36 = vpop.f32.mrb[14].mxu1  ;;  %5509 = vmatprep.mubr.f32.mxu0 %v14092_v5  ;;  %8654 = vmatpush1.bf16.msra.mxu0 %v11708_v39  ;;  %v8587_v0 = vpack.c.bf16 %v5004_v62, %v4992_v43  ;;  %v8589_v35 = vpack.c.bf16 %v5010_v56, %v4998_v26  ;;  %v5028_v31 = vand.u32 4294901760, %v5027_v53 }
 0x489   : > { %v12027_v20 = vpop.f32.mrb[15].mxu1  ;;  %4578 = vmatmul.mubr.f32.gmra.mrb[38].mxu1 %v4577_v46  ;;  %8584 = vmatprep.subr.bf16.mxu1 %v11921_v16  ;;  %v12032_v41 = vsub.f32 %v4374_v29, %v12006_v4  ;;  %v4376_v27 = vsel %vm4312_vm10, %v8787_v54, %v4344_v19  ;;  %v5022_v60 = vand.u32 4294901760, %v5021_v6  ;;  %v5034_v32 = vand.u32 4294901760, %v5033_v37 }
 0x48a   : > { %4583 = vmatprep.mubr.f32.mxu1 %v14092_v5  ;;  %8656 = vmatprep.subr.bf16.mxu0 %v11732_v58  ;;  %v4588_v46 = vand.u32 4294901760, %v4587_v23  ;;  %v14113_v16 = vand.u32 4294901760, %v11983_v34  ;;  %v13660_v53 = vand.u32 4294901760, %v12017_v45  ;;  %v12041_v62 = vand.u32 4294901760, %v4375_v12 }
 0x48b   : > { %14112 = vst [vmem:[#allocation10_spill] sm:$0xff] %v12032_v41  ;;  %5512 = vmatmul.mubr.f32.gmra.mrb[42].mxu0 %v11983_v34  ;;  %8586 = vmatpush1.bf16.msra.mxu1 %v11930_v28  ;;  %v8789_v19 = vadd.f32 %v11961_v30, %v11813_v44  ;;  %v4345_v54 = vmul.f32 0.01, %v8790_v9  ;;  %vm4313_vm11 = vcmp.gt.f32.partialorder %v8790_v9, 0.0  ;;  %v8591_v50 = vpack.c.bf16 %v5028_v31, %v5016_v22 }
 0x48c   : > { %v4598_v43 = vsub.f32 %v11983_v34, %v14113_v16  ;;  %14114 = vst [vmem:[#allocation38_spill] sm:$0xff] %v12041_v62  ;;  %v8301_v29 = vpop.f32.mrb[16].mxu1  ;;  %5517 = vmatprep.mubr.f32.mxu0 %v14092_v5  ;;  %8658 = vmatpush1.bf16.msra.mxu0 %v11742_v61  ;;  %v13659_v28 = vand.u32 4294901760, %v12032_v41  ;;  %v12056_v30 = vand.u32 4294901760, %v4376_v27  ;;  %v8593_v37 = vpack.c.bf16 %v5034_v32, %v5022_v60 }
 0x48d   : > { %v12049_v26 = vadd.f32 %v8301_v29, %v11813_v44  ;;  %v4209_v56 = vpop.f32.mrb[17].mxu1  ;;  %4589 = vmatmul.mubr.f32.gmra.mrb[40].mxu1 %v4588_v46  ;;  %8588 = vmatprep.subr.bf16.mxu1 %v8587_v0  ;;  %v8792_v23 = vadd.f32 %v11813_v44, %v4185_v51  ;;  %v4609_v31 = vsub.f32 %v12017_v45, %v13660_v53  ;;  %v4346_v0 = vmul.f32 0.01, %v8789_v19 }
 0x48e   : > { %v12052_v6 = vadd.f32 %v11813_v44, %v4209_v56  ;;  %4594 = vmatprep.mubr.f32.mxu1 %v14092_v5  ;;  %14115 = vst [vmem:[#allocation43_spill] sm:$0xff] %v12056_v30  ;;  %8660 = vmatprep.subr.bf16.mxu0 %v11754_v7  ;;  %v4599_v16 = vand.u32 4294901760, %v4598_v43  ;;  %v12065_v22 = vsub.f32 %v4375_v12, %v12041_v62  ;;  %vm4314_vm12 = vcmp.gt.f32.partialorder %v8789_v19, 0.0  ;;  %v14142_v7 = vld [vmem:[#allocation63_spill] sm:$0xff] }
 0x48f   : > { %5520 = vmatmul.mubr.f32.gmra.mrb[44].mxu0 %v12017_v45  ;;  %8590 = vmatpush1.bf16.msra.mxu1 %v8589_v35  ;;  %v4377_v29 = vsel %vm4313_vm11, %v8790_v9, %v4345_v54  ;;  %v4620_v12 = vsub.f32 %v12032_v41, %v13659_v28  ;;  %v12081_v9 = vsub.f32 %v4376_v27, %v12056_v30  ;;  %v4347_v35 = vmul.f32 0.01, %v8792_v23 }
 0x490   : > { %14116 = vst [vmem:[#allocation11_spill] sm:$0xff] %v12065_v22  ;;  %v8304_v46 = vpop.f32.mrb[18].mxu1  ;;  %5525 = vmatprep.mubr.f32.mxu0 %v14092_v5  ;;  %8662 = vmatpush1.bf16.msra.mxu0 %v11760_v55  ;;  %v4610_v43 = vand.u32 4294901760, %v4609_v31  ;;  %v13661_v54 = vand.u32 4294901760, %v12065_v22  ;;  %v12086_v56 = vand.u32 4294901760, %v4377_v29  ;;  %vm4315_vm13 = vcmp.gt.f32.partialorder %v8792_v23, 0.0 }
 0x491   : > { %v12071_v51 = vadd.f32 %v8304_v46, %v11813_v44  ;;  %v4221_v60 = vpop.f32.mrb[19].mxu1  ;;  %4600 = vmatmul.mubr.f32.gmra.mrb[42].mxu1 %v4599_v16  ;;  %8592 = vmatprep.subr.bf16.mxu1 %v8591_v50  ;;  %14117 = vst [vmem:[#allocation42_spill] sm:$0xff] %v12081_v9  ;;  %v8791_v50 = vadd.f32 %v11989_v40, %v11813_v44  ;;  %vm4320_vm1 = vcmp.gt.f32.partialorder %v12049_v26, 0.0  ;;  %vm4319_vm2 = vcmp.gt.f32.partialorder %v12052_v6, 0.0 }
 0x492   : > { %v12074_v32 = vadd.f32 %v11813_v44, %v4221_v60  ;;  %4605 = vmatprep.mubr.f32.mxu1 %v14092_v5  ;;  %8664 = vmatprep.subr.bf16.mxu0 %v11766_v13  ;;  %14118 = vst [vmem:[#allocation48_spill] sm:$0xff] %v12086_v56  ;;  %v4378_v27 = vsel %vm4314_vm12, %v8789_v19, %v4346_v0 }
 0x493   : > { %5528 = vmatmul.mubr.f32.gmra.mrb[46].mxu0 %v12032_v41  ;;  %8594 = vmatpush1.bf16.msra.mxu1 %v8593_v37  ;;  %v4621_v37 = vand.u32 4294901760, %v4620_v12  ;;  %v4631_v19 = vsub.f32 %v12065_v22, %v13661_v54  ;;  %v12106_v0 = vsub.f32 %v4377_v29, %v12086_v56  ;;  %v8794_v28 = vadd.f32 %v11813_v44, %v12027_v20 }
 0x494   : > { %v8307_v16 = vpop.f32.mrb[20].mxu1  ;;  %5533 = vmatprep.mubr.f32.mxu0 %v14092_v5  ;;  %8666 = vmatpush1.bf16.msra.mxu0 %v11769_v15  ;;  %vm4316_vm14 = vcmp.gt.f32.partialorder %v8791_v50, 0.0  ;;  %v14122_v20 = vand.u32 4294901760, %v12081_v9  ;;  %vm4321_vm3 = vcmp.gt.f32.partialorder %v12074_v32, 0.0  ;;  %vm4322_vm4 = vcmp.gt.f32.partialorder %v12071_v51, 0.0 }
 0x495   : > { %v12094_v46 = vadd.f32 %v8307_v16, %v11813_v44  ;;  %v4233_v31 = vpop.f32.mrb[21].mxu1  ;;  %4611 = vmatmul.mubr.f32.gmra.mrb[44].mxu1 %v4610_v43  ;;  %14119 = vst [vmem:[#allocation46_spill] sm:$0xff] %v12106_v0  ;;  %v12108_v16 = vand.u32 4294901760, %v4378_v27  ;;  %v4379_v43 = vsel %vm4315_vm13, %v8792_v23, %v4347_v35  ;;  %v4632_v23 = vand.u32 4294901760, %v4631_v19 }
 0x496   : > { %v12097_v60 = vadd.f32 %v11813_v44, %v4233_v31  ;;  %4616 = vmatprep.mubr.f32.mxu1 %v14092_v5  ;;  %v4348_v31 = vmul.f32 0.01, %v8791_v50  ;;  %v12121_v54 = vand.u32 4294901760, %v4379_v43  ;;  %v4642_v35 = vsub.f32 %v12081_v9, %v14122_v20 }
 0x497   : > { %5536 = vmatmul.mubr.f32.gmra.mrb[48].mxu0 %v12065_v22  ;;  %14120 = vst [vmem:[#allocation51_spill] sm:$0xff] %v12108_v16  ;;  %v12128_v56 = vsub.f32 %v4378_v27, %v12108_v16  ;;  %vm4317_vm15 = vcmp.gt.f32.partialorder %v8794_v28, 0.0  ;;  %vm4324_vm6 = vcmp.gt.f32.partialorder %v12094_v46, 0.0  ;;  %v14141_v22 = vld [vmem:[#allocation61_spill] sm:$0xff]  ;;  %v13714_v41 = vand.u32 4294901760, %v14142_v7 }
 0x498   : > { %v8310_v12 = vpop.f32.mrb[22].mxu1  ;;  %5541 = vmatprep.mubr.f32.mxu0 %v14092_v5  ;;  %14121 = vst [vmem:[#allocation50_spill] sm:$0xff] %v12121_v54  ;;  %v4380_v62 = vsel %vm4316_vm14, %v8791_v50, %v4348_v31  ;;  %v12143_v20 = vsub.f32 %v4379_v43, %v12121_v54  ;;  %v4352_v43 = vmul.f32 0.01, %v12049_v26  ;;  %v4351_v54 = vmul.f32 0.01, %v12052_v6 }
 0x499   : > { %v12115_v53 = vadd.f32 %v8310_v12, %v11813_v44  ;;  %v4245_v40 = vpop.f32.mrb[23].mxu1  ;;  %4622 = vmatmul.mubr.f32.gmra.mrb[46].mxu1 %v4621_v37  ;;  %14123 = vst [vmem:[#allocation56_spill] sm:$0xff] %v12128_v56  ;;  %v13675_v12 = vand.u32 4294901760, %v12106_v0  ;;  %v8793_v37 = vadd.f32 %v12022_v36, %v11813_v44  ;;  %v4643_v36 = vand.u32 4294901760, %v4642_v35 }
 0x49a   : > { %v12118_v29 = vadd.f32 %v11813_v44, %v4245_v40  ;;  %4627 = vmatprep.mubr.f32.mxu1 %v14092_v5  ;;  %v4349_v40 = vmul.f32 0.01, %v8794_v28  ;;  %14124 = vst [vmem:[#allocation54_spill] sm:$0xff] %v12143_v20  ;;  %v12150_v31 = vand.u32 4294901760, %v4380_v62  ;;  %vm4323_vm5 = vcmp.gt.f32.partialorder %v12097_v60, 0.0 }
 0x49b   : > { %5544 = vmatmul.mubr.f32.gmra.mrb[50].mxu0 %v12081_v9  ;;  %v4653_v50 = vsub.f32 %v12106_v0, %v13675_v12  ;;  %vm4318_vm0 = vcmp.gt.f32.partialorder %v8793_v37, 0.0  ;;  %v13713_v55 = vand.u32 4294901760, %v14141_v22  ;;  %vm4326_vm8 = vcmp.gt.f32.partialorder %v12115_v53, 0.0 }
 0x49c   : > { %v8313_v30 = vpop.f32.mrb[24].mxu1  ;;  %5549 = vmatprep.mubr.f32.mxu0 %v14092_v5  ;;  %14125 = vst [vmem:[#allocation59_spill] sm:$0xff] %v12150_v31  ;;  %vm4325_vm7 = vcmp.gt.f32.partialorder %v12118_v29, 0.0 }
 0x49d   : > { %v12136_v19 = vadd.f32 %v8313_v30, %v11813_v44  ;;  %v4257_v15 = vpop.f32.mrb[25].mxu1  ;;  %4633 = vmatmul.mubr.f32.gmra.mrb[48].mxu1 %v4632_v23  ;;  %v13681_v30 = vand.u32 4294901760, %v12128_v56  ;;  %v4350_v23 = vmul.f32 0.01, %v8793_v37 }
 0x49e   : > { %v12139_v27 = vadd.f32 %v11813_v44, %v4257_v15  ;;  %4638 = vmatprep.mubr.f32.mxu1 %v14092_v5  ;;  %v4381_v15 = vsel %vm4317_vm15, %v8794_v28, %v4349_v40  ;;  %v4654_v40 = vand.u32 4294901760, %v4653_v50  ;;  %v4383_v50 = vsel %vm4319_vm2, %v12052_v6, %v4351_v54 }
 0x49f   : > { %5552 = vmatmul.mubr.f32.gmra.mrb[52].mxu0 %v12106_v0  ;;  %v12172_v0 = vand.u32 4294901760, %v4381_v15  ;;  %vm4328_vm10 = vcmp.gt.f32.partialorder %v12136_v19, 0.0 }
 0x4a0   : > { %v8316_v16 = vpop.f32.mrb[26].mxu1  ;;  %5557 = vmatprep.mubr.f32.mxu0 %v14092_v5  ;;  %vm4327_vm9 = vcmp.gt.f32.partialorder %v12139_v27, 0.0 }
 0x4a1   : > { %v12156_v35 = vadd.f32 %v8316_v16, %v11813_v44  ;;  %v4269_v9 = vpop.f32.mrb[27].mxu1  ;;  %4644 = vmatmul.mubr.f32.gmra.mrb[50].mxu1 %v4643_v36  ;;  %v4664_v16 = vsub.f32 %v12128_v56, %v13681_v30  ;;  %v12170_v36 = vsub.f32 %v4380_v62, %v12150_v31  ;;  %14127 = vst [vmem:[#allocation62_spill] sm:$0xff] %v12172_v0  ;;  %v14128_v31 = vand.u32 4294901760, %v12143_v20 }
 0x4a2   : > { %v12161_v12 = vadd.f32 %v11813_v44, %v4269_v9  ;;  %4649 = vmatprep.mubr.f32.mxu1 %v14092_v5  ;;  %v4382_v9 = vsel %vm4318_vm0, %v8793_v37, %v4350_v23  ;;  %v4384_v30 = vsel %vm4320_vm1, %v12049_v26, %v4352_v43  ;;  %v12192_v23 = vsub.f32 %v4381_v15, %v12172_v0 }
 0x4a3   : > { %5560 = vmatmul.mubr.f32.gmra.mrb[54].mxu0 %v12128_v56  ;;  %14126 = vst [vmem:[#allocation57_spill] sm:$0xff] %v12170_v36  ;;  %v4675_v37 = vsub.f32 %v12143_v20, %v14128_v31  ;;  %v12195_v54 = vand.u32 4294901760, %v4382_v9  ;;  %v12198_v43 = vand.u32 4294901760, %v4383_v50  ;;  %v4353_v15 = vmul.f32 0.01, %v12074_v32 }
 0x4a4   : > { %v8319_v4 = vpop.f32.mrb[28].mxu1  ;;  %5565 = vmatprep.mubr.f32.mxu0 %v14092_v5  ;;  %14129 = vst [vmem:[#allocation60_spill] sm:$0xff] %v12192_v23  ;;  %v13692_v56 = vand.u32 4294901760, %v12192_v23  ;;  %vm4329_vm11 = vcmp.gt.f32.partialorder %v12161_v12, 0.0  ;;  %vm4330_vm12 = vcmp.gt.f32.partialorder %v12156_v35, 0.0 }
 0x4a5   : > { %v12177_v13 = vadd.f32 %v8319_v4, %v11813_v44  ;;  %v4281_v28 = vpop.f32.mrb[29].mxu1  ;;  %4655 = vmatmul.mubr.f32.gmra.mrb[52].mxu1 %v4654_v40  ;;  %v4665_v4 = vand.u32 4294901760, %v4664_v16  ;;  %14130 = vst [vmem:[#allocation65_spill] sm:$0xff] %v12195_v54  ;;  %14131 = vst [vmem:[#allocation64_spill] sm:$0xff] %v12198_v43  ;;  %v4354_v16 = vmul.f32 0.01, %v12071_v51 }
 0x4a6   : > { %v12184_v62 = vadd.f32 %v11813_v44, %v4281_v28  ;;  %4660 = vmatprep.mubr.f32.mxu1 %v14092_v5  ;;  %v12200_v28 = vand.u32 4294901760, %v4384_v30  ;;  %v4676_v0 = vand.u32 4294901760, %v4675_v37  ;;  %v4697_v37 = vsub.f32 %v12192_v23, %v13692_v56 }
 0x4a7   : > { %5568 = vmatmul.mubr.f32.gmra.mrb[56].mxu0 %v12143_v20  ;;  %v14133_v20 = vand.u32 4294901760, %v12170_v36  ;;  %v4355_v56 = vmul.f32 0.01, %v12097_v60  ;;  %vm4332_vm14 = vcmp.gt.f32.partialorder %v12177_v13, 0.0 }
 0x4a8   : > { %v8322_v26 = vpop.f32.mrb[30].mxu1  ;;  %5573 = vmatprep.mubr.f32.mxu0 %v14092_v5  ;;  %14132 = vst [vmem:[#allocation67_spill] sm:$0xff] %v12200_v28  ;;  %vm4331_vm13 = vcmp.gt.f32.partialorder %v12184_v62, 0.0 }
 0x4a9   : > { %v12203_v40 = vadd.f32 %v8322_v26, %v11813_v44  ;;  %v4293_v31 = vpop.f32.mrb[31].mxu1  ;;  %4666 = vmatmul.mubr.f32.gmra.mrb[54].mxu1 %v4665_v4  ;;  %v4686_v26 = vsub.f32 %v12170_v36, %v14133_v20  ;;  %v12217_v4 = vsub.f32 %v4382_v9, %v12195_v54  ;;  %v4385_v20 = vsel %vm4321_vm3, %v12074_v32, %v4353_v15  ;;  %v14137_v32 = vld [vmem:[#allocation53_spill] sm:$0xff] }
 0x4aa   : > { %v12209_v6 = vadd.f32 %v11813_v44, %v4293_v31  ;;  %4671 = vmatprep.mubr.f32.mxu1 %v14092_v5  ;;  %v12223_v44 = vsub.f32 %v4383_v50, %v12198_v43  ;;  %v12226_v31 = vsub.f32 %v4384_v30, %v12200_v28  ;;  %v4386_v50 = vsel %vm4322_vm4, %v12071_v51, %v4354_v16 }
 0x4ab   : > { %5576 = vmatmul.mubr.f32.gmra.mrb[58].mxu0 %v12170_v36  ;;  %14134 = vst [vmem:[#allocation66_spill] sm:$0xff] %v12217_v4  ;;  %v4687_v9 = vand.u32 4294901760, %v4686_v26  ;;  %v13695_v54 = vand.u32 4294901760, %v12217_v4  ;;  %v12239_v28 = vand.u32 4294901760, %v4385_v20  ;;  %v12243_v26 = vand.u32 4294901760, %v4386_v50 }
 0x4ac   : > { %5581 = vmatprep.mubr.f32.mxu0 %v14092_v5  ;;  %14135 = vst [vmem:[#allocation68_spill] sm:$0xff] %v12223_v44  ;;  %v13697_v30 = vand.u32 4294901760, %v12223_v44  ;;  %v4698_v51 = vand.u32 4294901760, %v4697_v37  ;;  %v14139_v37 = vand.u32 4294901760, %v14137_v32  ;;  %vm4333_vm15 = vcmp.gt.f32.partialorder %v12209_v6, 0.0 }
 0x4ad   : > { %4677 = vmatmul.mubr.f32.gmra.mrb[56].mxu1 %v4676_v0  ;;  %v13698_v0 = vand.u32 4294901760, %v12226_v31  ;;  %14136 = vst [vmem:[#allocation69_spill] sm:$0xff] %v12239_v28  ;;  %14138 = vst [vmem:[#allocation24_spill] sm:$0xff] %v12243_v26  ;;  %v4708_v16 = vsub.f32 %v12217_v4, %v13695_v54  ;;  %v12259_v43 = vsub.f32 %v4385_v20, %v12239_v28  ;;  %v14140_v28 = vld [vmem:[#allocation58_spill] sm:$0xff]  ;;  %vm4334_vm0 = vcmp.gt.f32.partialorder %v12203_v40, 0.0 }
 0x4ae   : > { %4682 = vmatprep.mubr.f32.mxu1 %v14092_v5  ;;  %v5039_v54 = vsub.f32 %v14137_v32, %v14139_v37  ;;  %v13712_v37 = vand.u32 4294901760, %v14140_v28 }
 0x4af   : > { %5584 = vmatmul.mubr.f32.gmra.mrb[60].mxu0 %v12192_v23  ;;  %v4730_v15 = vsub.f32 %v12226_v31, %v13698_v0  ;;  %v4709_v20 = vand.u32 4294901760, %v4708_v16  ;;  %v4387_v0 = vsel %vm4323_vm5, %v12097_v60, %v4355_v56  ;;  %v14143_v56 = vand.u32 4294901760, %v11302_v49 }
 0x4b0   : > { %5589 = vmatprep.mubr.f32.mxu0 %v14092_v5  ;;  %v5051_v16 = vsub.f32 %v14140_v28, %v13712_v37  ;;  %v14144_v60 = vand.u32 4294901760, %v11307_v33 }
 0x4b1   : > { %4688 = vmatmul.mubr.f32.gmra.mrb[58].mxu1 %v4687_v9  ;;  %v4719_v9 = vsub.f32 %v12223_v44, %v13697_v30  ;;  %v12269_v30 = vsub.f32 %v4386_v50, %v12243_v26  ;;  %v4731_v36 = vand.u32 4294901760, %v4730_v15  ;;  %v5040_v26 = vand.u32 4294901760, %v5039_v54 }
 0x4b2   : > { %4693 = vmatprep.mubr.f32.mxu1 %v14092_v5  ;;  %v12287_v15 = vand.u32 4294901760, %v4387_v0  ;;  %v5057_v54 = vsub.f32 %v14142_v7, %v13714_v41  ;;  %v5052_v33 = vand.u32 4294901760, %v5051_v16  ;;  %v13716_v41 = vand.u32 4294901760, %v11736_v25 }
 0x4b3   : > { %5592 = vmatmul.mubr.f32.gmra.mrb[62].mxu0 %v12217_v4  ;;  %v4356_v4 = vmul.f32 0.01, %v12094_v46  ;;  %v4720_v23 = vand.u32 4294901760, %v4719_v9  ;;  %v13717_v9 = vand.u32 4294901760, %v11734_v11  ;;  %v14145_v16 = vand.u32 4294901760, %v12259_v43 }
 0x4b4   : > { %5597 = vmatprep.mubr.f32.mxu0 %v14092_v5 }
 0x4b5   : > { %4699 = vmatmul.mubr.f32.gmra.mrb[60].mxu1 %v4698_v51  ;;  %v4357_v51 = vmul.f32 0.01, %v12118_v29  ;;  %v4388_v49 = vsel %vm4324_vm6, %v12094_v46, %v4356_v4  ;;  %v8595_v46 = vpack.c.bf16 %v5052_v33, %v5040_v26  ;;  %v5081_v26 = vsub.f32 %v11736_v25, %v13716_v41 }
 0x4b6   : > { %4704 = vmatprep.mubr.f32.mxu1 %v14092_v5 }
 0x4b7   : > { %5600 = vmatmul.mubr.f32.gmra.mrb[64].mxu0 %v12223_v44  ;;  %v8667_v44 = vpack.c.bf16 %v14144_v60, %v14143_v56  ;;  %v13724_v56 = vand.u32 4294901760, %v11724_v38  ;;  %v13715_v60 = vand.u32 4294901760, %v11726_v8  ;;  %v4389_v50 = vsel %vm4325_vm7, %v12118_v29, %v4357_v51  ;;  %8596 = vmatprep.subr.bf16.mxu1 %v8595_v46 }
 0x4b8   : > { %5605 = vmatprep.mubr.f32.mxu0 %v14092_v5  ;;  %v5069_v29 = vsub.f32 %v11734_v11, %v13717_v9  ;;  %v12326_v51 = vsub.f32 %v4387_v0, %v12287_v15  ;;  %v14146_v0 = vand.u32 4294901760, %v12269_v30  ;;  %v12337_v46 = vand.u32 4294901760, %v4389_v50 }
 0x4b9   : > { %4710 = vmatmul.mubr.f32.gmra.mrb[62].mxu1 %v4709_v20  ;;  %v5045_v20 = vsub.f32 %v14141_v22, %v13713_v55  ;;  %8668 = vmatprep.subr.bf16.mxu0 %v8667_v44  ;;  %v5058_v55 = vand.u32 4294901760, %v5057_v54  ;;  %v5063_v4 = vsub.f32 %v11724_v38, %v13724_v56  ;;  %v5075_v44 = vsub.f32 %v11726_v8, %v13715_v60 }
 0x4ba   : > { %4715 = vmatprep.mubr.f32.mxu1 %v14092_v5  ;;  %v12328_v54 = vand.u32 4294901760, %v4388_v49  ;;  %v4752_v9 = vsub.f32 %v12269_v30, %v14146_v0  ;;  %v4361_v0 = vmul.f32 0.01, %v12161_v12 }
 0x4bb   : > { %5608 = vmatmul.mubr.f32.gmra.mrb[66].mxu0 %v12226_v31  ;;  %v5046_v37 = vand.u32 4294901760, %v5045_v20  ;;  %v4741_v20 = vsub.f32 %v12259_v43, %v14145_v16  ;;  %v5064_v33 = vand.u32 4294901760, %v5063_v4  ;;  %v5076_v60 = vand.u32 4294901760, %v5075_v44 }
 0x4bc   : > { %5613 = vmatprep.mubr.f32.mxu0 %v14092_v5  ;;  %v5082_v16 = vand.u32 4294901760, %v5081_v26  ;;  %v4359_v44 = vmul.f32 0.01, %v12139_v27  ;;  %v4753_v26 = vand.u32 4294901760, %v4752_v9 }
 0x4bd   : > { %4721 = vmatmul.mubr.f32.gmra.mrb[64].mxu1 %v4720_v23  ;;  %v8597_v23 = vpack.c.bf16 %v5058_v55, %v5046_v37  ;;  %v4358_v55 = vmul.f32 0.01, %v12115_v53  ;;  %v5070_v37 = vand.u32 4294901760, %v5069_v29  ;;  %v8599_v41 = vpack.c.bf16 %v5076_v60, %v5064_v33 }
 0x4be   : > { %4726 = vmatprep.mubr.f32.mxu1 %v14092_v5  ;;  %v12342_v29 = vsub.f32 %v4388_v49, %v12328_v54 }
 0x4bf   : > { %5616 = vmatmul.mubr.f32.gmra.mrb[68].mxu0 %v12259_v43  ;;  %8598 = vmatpush1.bf16.msra.mxu1 %v8597_v23  ;;  %v8601_v4 = vpack.c.bf16 %v5082_v16, %v5070_v37  ;;  %v4742_v23 = vand.u32 4294901760, %v4741_v20  ;;  %v4390_v60 = vsel %vm4326_vm8, %v12115_v53, %v4358_v55  ;;  %v12351_v20 = vsub.f32 %v4389_v50, %v12337_v46 }
 0x4c0   : > { %5621 = vmatprep.mubr.f32.mxu0 %v14092_v5  ;;  %8600 = vmatprep.subr.bf16.mxu1 %v8599_v41  ;;  %v13719_v49 = vand.u32 4294901760, %v12342_v29  ;;  %v12358_v33 = vand.u32 4294901760, %v4390_v60  ;;  %v4391_v53 = vsel %vm4327_vm9, %v12139_v27, %v4359_v44  ;;  %v4360_v55 = vmul.f32 0.01, %v12136_v19 }
 0x4c1   : > { %4732 = vmatmul.mubr.f32.gmra.mrb[66].mxu1 %v4731_v36  ;;  %v13720_v36 = vand.u32 4294901760, %v12326_v51  ;;  %v13718_v50 = vand.u32 4294901760, %v12351_v20  ;;  %v12366_v9 = vand.u32 4294901760, %v4391_v53 }
 0x4c2   : > { %4737 = vmatprep.mubr.f32.mxu1 %v14092_v5  ;;  %v4774_v27 = vsub.f32 %v12342_v29, %v13719_v49  ;;  %v12373_v16 = vsub.f32 %v4390_v60, %v12358_v33  ;;  %v4362_v60 = vmul.f32 0.01, %v12156_v35 }
 0x4c3   : > { %5624 = vmatmul.mubr.f32.gmra.mrb[70].mxu0 %v12269_v30  ;;  %8602 = vmatpush1.bf16.msra.mxu1 %v8601_v4  ;;  %v4763_v41 = vsub.f32 %v12326_v51, %v13720_v36  ;;  %v4392_v4 = vsel %vm4328_vm10, %v12136_v19, %v4360_v55  ;;  %v4785_v44 = vsub.f32 %v12351_v20, %v13718_v50 }
 0x4c4   : > { %5629 = vmatprep.mubr.f32.mxu0 %v14092_v5  ;;  %8731 = vmatprep.subr.bf16.mxu1 %v11620_v2  ;;  %v12389_v19 = vand.u32 4294901760, %v4392_v4  ;;  %v4393_v55 = vsel %vm4329_vm11, %v12161_v12, %v4361_v0  ;;  %v4394_v0 = vsel %vm4330_vm12, %v12156_v35, %v4362_v60 }
 0x4c5   : > { %4743 = vmatmul.mubr.f32.gmra.mrb[68].mxu1 %v4742_v23  ;;  %v4764_v37 = vand.u32 4294901760, %v4763_v41  ;;  %v12384_v23 = vsub.f32 %v4391_v53, %v12366_v9  ;;  %v13721_v41 = vand.u32 4294901760, %v12373_v16  ;;  %v4363_v53 = vmul.f32 0.01, %v12184_v62 }
 0x4c6   : > { %4748 = vmatprep.mubr.f32.mxu1 %v14092_v5  ;;  %v12403_v49 = vsub.f32 %v4392_v4, %v12389_v19  ;;  %v12405_v12 = vand.u32 4294901760, %v4393_v55 }
 0x4c7   : > { %5632 = vmatmul.mubr.f32.gmra.mrb[72].mxu0 %v12326_v51  ;;  %v4796_v50 = vsub.f32 %v12373_v16, %v13721_v41  ;;  %v12419_v41 = vand.u32 4294901760, %v4394_v0  ;;  %v4395_v35 = vsel %vm4331_vm13, %v12184_v62, %v4363_v53  ;;  %v4365_v62 = vmul.f32 0.01, %v12209_v6 }
 0x4c8   : > { %5637 = vmatprep.mubr.f32.mxu0 %v14092_v5 }
 0x4c9   : > { %4754 = vmatmul.mubr.f32.gmra.mrb[70].mxu1 %v4753_v26  ;;  %v4775_v26 = vand.u32 4294901760, %v4774_v27  ;;  %v13722_v27 = vand.u32 4294901760, %v12384_v23  ;;  %v4797_v60 = vand.u32 4294901760, %v4796_v50  ;;  %v12441_v50 = vand.u32 4294901760, %v4395_v35 }
 0x4ca   : > { %4759 = vmatprep.mubr.f32.mxu1 %v14092_v5 }
 0x4cb   : > { %5640 = vmatmul.mubr.f32.gmra.mrb[74].mxu0 %v12342_v29  ;;  %v4807_v4 = vsub.f32 %v12384_v23, %v13722_v27  ;;  %v4364_v27 = vmul.f32 0.01, %v12177_v13 }
 0x4cc   : > { %5645 = vmatprep.mubr.f32.mxu0 %v14092_v5 }
 0x4cd   : > { %4765 = vmatmul.mubr.f32.gmra.mrb[72].mxu1 %v4764_v37  ;;  %v4786_v37 = vand.u32 4294901760, %v4785_v44  ;;  %v14147_v44 = vand.u32 4294901760, %v14137_v32  ;;  %v12426_v32 = vsub.f32 %v4393_v55, %v12405_v12  ;;  %v12448_v55 = vsub.f32 %v4394_v0, %v12419_v41 }
 0x4ce   : > { %4770 = vmatprep.mubr.f32.mxu1 %v14092_v5 }
 0x4cf   : > { %5648 = vmatmul.mubr.f32.gmra.mrb[76].mxu0 %v12351_v20  ;;  %v13725_v53 = vand.u32 4294901760, %v12426_v32  ;;  %v13726_v56 = vand.u32 4294901760, %v12448_v55 }
 0x4d0   : > { %5653 = vmatprep.mubr.f32.mxu0 %v14092_v5 }
 0x4d1   : > { %4776 = vmatmul.mubr.f32.gmra.mrb[74].mxu1 %v4775_v26  ;;  %v14148_v26 = vand.u32 4294901760, %v14140_v28  ;;  %v13723_v28 = vand.u32 4294901760, %v12403_v49 }
 0x4d2   : > { %4781 = vmatprep.mubr.f32.mxu1 %v14092_v5 }
 0x4d3   : > { %5656 = vmatmul.mubr.f32.gmra.mrb[78].mxu0 %v12373_v16  ;;  %v12413_v36 = vpack.c.bf16 %v14148_v26, %v14147_v44  ;;  %v14150_v44 = vand.u32 4294901760, %v14142_v7  ;;  %v4808_v7 = vand.u32 4294901760, %v4807_v4  ;;  %v12456_v4 = vsub.f32 %v4395_v35, %v12441_v50 }
 0x4d4   : > { %5661 = vmatprep.mubr.f32.mxu0 %v14092_v5 }
 0x4d5   : > { %4787 = vmatmul.mubr.f32.gmra.mrb[76].mxu1 %v4786_v37  ;;  %v14149_v37 = vand.u32 4294901760, %v14141_v22  ;;  %v4818_v22 = vsub.f32 %v12403_v49, %v13723_v28  ;;  %v4829_v28 = vsub.f32 %v12426_v32, %v13725_v53  ;;  %v14152_v53 = vand.u32 4294901760, %v11726_v8 }
 0x4d6   : > { %4792 = vmatprep.mubr.f32.mxu1 %v14092_v5  ;;  %v14154_v8 = vand.u32 4294901760, %v11734_v11 }
 0x4d7   : > { %5664 = vmatmul.mubr.f32.gmra.mrb[80].mxu0 %v12384_v23  ;;  %v12433_v26 = vpack.c.bf16 %v14150_v44, %v14149_v37  ;;  %v4366_v37 = vmul.f32 0.01, %v12203_v40  ;;  %v4397_v44 = vsel %vm4333_vm15, %v12209_v6, %v4365_v62  ;;  %v4819_v0 = vand.u32 4294901760, %v4818_v22 }
 0x4d8   : > { %5669 = vmatprep.mubr.f32.mxu0 %v14092_v5  ;;  %v4830_v35 = vand.u32 4294901760, %v4829_v28  ;;  %v4840_v62 = vsub.f32 %v12448_v55, %v13726_v56 }
 0x4d9   : > { %4798 = vmatmul.mubr.f32.gmra.mrb[78].mxu1 %v4797_v60  ;;  %v4396_v60 = vsel %vm4332_vm14, %v12177_v13, %v4364_v27  ;;  %v12470_v27 = vand.u32 4294901760, %v4397_v44  ;;  %v4398_v22 = vsel %vm4334_vm0, %v12203_v40, %v4366_v37  ;;  %v14153_v40 = vand.u32 4294901760, %v12456_v4 }
 0x4da   : > { %4803 = vmatprep.mubr.f32.mxu1 %v14092_v5  ;;  %v12464_v13 = vand.u32 4294901760, %v4396_v60  ;;  %v12491_v56 = vand.u32 4294901760, %v4398_v22 }
 0x4db   : > { %5672 = vmatmul.mubr.f32.gmra.mrb[82].mxu0 %v12403_v49  ;;  %v12489_v28 = vsub.f32 %v4397_v44, %v12470_v27  ;;  %v4851_v37 = vsub.f32 %v12456_v4, %v14153_v40 }
 0x4dc   : > { %5677 = vmatprep.mubr.f32.mxu0 %v14092_v5 }
 0x4dd   : > { %4809 = vmatmul.mubr.f32.gmra.mrb[80].mxu1 %v4808_v7  ;;  %v12477_v7 = vsub.f32 %v4396_v60, %v12464_v13  ;;  %v4841_v60 = vand.u32 4294901760, %v4840_v62  ;;  %v4852_v44 = vand.u32 4294901760, %v4851_v37  ;;  %v13727_v11 = vand.u32 4294901760, %v12489_v28 }
 0x4de   : > { %4814 = vmatprep.mubr.f32.mxu1 %v14092_v5 }
 0x4df   : > { %5680 = vmatmul.mubr.f32.gmra.mrb[84].mxu0 %v12426_v32 }
 0x4e0   : > { %5685 = vmatprep.mubr.f32.mxu0 %v14092_v5 }
 0x4e1   : > { %4820 = vmatmul.mubr.f32.gmra.mrb[82].mxu1 %v4819_v0  ;;  %v14151_v0 = vand.u32 4294901760, %v11724_v38  ;;  %v13728_v38 = vand.u32 4294901760, %v12477_v7 }
 0x4e2   : > { %4825 = vmatprep.mubr.f32.mxu1 %v14092_v5 }
 0x4e3   : > { %5688 = vmatmul.mubr.f32.gmra.mrb[86].mxu0 %v12448_v55  ;;  %v12485_v6 = vpack.c.bf16 %v14152_v53, %v14151_v0  ;;  %v14155_v53 = vand.u32 4294901760, %v11736_v25  ;;  %v4862_v62 = vsub.f32 %v12477_v7, %v13728_v38  ;;  %v12511_v0 = vsub.f32 %v4398_v22, %v12491_v56 }
 0x4e4   : > { %5693 = vmatprep.mubr.f32.mxu0 %v14092_v5 }
 0x4e5   : > { %4831 = vmatmul.mubr.f32.gmra.mrb[84].mxu1 %v4830_v35  ;;  %v12502_v35 = vpack.c.bf16 %v14155_v53, %v14154_v8  ;;  %v4863_v25 = vand.u32 4294901760, %v4862_v62  ;;  %v13729_v40 = vand.u32 4294901760, %v12511_v0  ;;  %v14156_v8 = vand.u32 4294901760, %v11312_v21 }
 0x4e6   : > { %4836 = vmatprep.mubr.f32.mxu1 %v14092_v5  ;;  %v14157_v53 = vand.u32 4294901760, %v14072_v3  ;;  %v14158_v62 = vand.u32 4294901760, %v14073_v14  ;;  %v14161_v21 = vand.u32 4294901760, %v14075_v57  ;;  %v14164_v14 = vld [vmem:[#allocation29_spill] sm:$0xff] }
 0x4e7   : > { %5696 = vmatmul.mubr.f32.gmra.mrb[88].mxu0 %v12456_v4  ;;  %v4884_v37 = vsub.f32 %v12511_v0, %v13729_v40  ;;  %v14162_v40 = vld [vmem:[#allocation25_spill] sm:$0xff] }
 0x4e8   : > { %5701 = vmatprep.mubr.f32.mxu0 %v14092_v5  ;;  %v14163_v3 = vand.u32 4294901760, %v14162_v40 }
 0x4e9   : > { %4842 = vmatmul.mubr.f32.gmra.mrb[86].mxu1 %v4841_v60  ;;  %v4873_v60 = vsub.f32 %v12489_v28, %v13727_v11  ;;  %v4885_v38 = vand.u32 4294901760, %v4884_v37  ;;  %v14169_v37 = vld [vmem:[#allocation28_spill] sm:$0xff] }
 0x4ea   : > { %4847 = vmatprep.mubr.f32.mxu1 %v14092_v5  ;;  %v14170_v57 = vand.u32 4294901760, %v14169_v37  ;;  %v14184_v37 = vld [vmem:[#allocation15_spill] sm:$0xff] }
 0x4eb   : > { %5704 = vmatmul.mubr.f32.gmra.mrb[90].mxu0 %v12477_v7  ;;  %v4874_v22 = vand.u32 4294901760, %v4873_v60  ;;  %v14160_v60 = vand.u32 4294901760, %v11884_v52  ;;  %v14168_v52 = vand.u32 4294901760, %v11880_v59  ;;  %v14178_v59 = vld [vmem:[#allocation8_spill] sm:$0xff] }
 0x4ec   : > { %5709 = vmatprep.mubr.f32.mxu0 %v14092_v5 }
 0x4ed   : > { %4853 = vmatmul.mubr.f32.gmra.mrb[88].mxu1 %v4852_v44  ;;  %v8669_v44 = vpack.c.bf16 %v14157_v53, %v14156_v8  ;;  %v8673_v8 = vpack.c.bf16 %v14163_v3, %v14161_v21  ;;  %v14176_v21 = vld [vmem:[#allocation30_spill] sm:$0xff] }
 0x4ee   : > { %4858 = vmatprep.mubr.f32.mxu1 %v14092_v5  ;;  %v14177_v3 = vand.u32 4294901760, %v14176_v21 }
 0x4ef   : > { %5712 = vmatmul.mubr.f32.gmra.mrb[92].mxu0 %v12489_v28 }
 0x4f0   : > { %5717 = vmatprep.mubr.f32.mxu0 %v14092_v5 }
 0x4f1   : > { %4864 = vmatmul.mubr.f32.gmra.mrb[90].mxu1 %v4863_v25  ;;  %v14159_v25 = vand.u32 4294901760, %v14074_v48  ;;  %v14166_v48 = vld [vmem:[#allocation6_spill] sm:$0xff] }
 0x4f2   : > { %4869 = vmatprep.mubr.f32.mxu1 %v14092_v5  ;;  %v14167_v53 = vand.u32 4294901760, %v14166_v48 }
 0x4f3   : > { %5720 = vmatmul.mubr.f32.gmra.mrb[94].mxu0 %v12511_v0  ;;  %v8671_v11 = vpack.c.bf16 %v14159_v25, %v14158_v62 }
 0x4f4   : > { %5822 = vmatprep.mubr.f32.mxu0 %v14092_v5 }
 0x4f5   : > { %4875 = vmatmul.mubr.f32.gmra.mrb[92].mxu1 %v4874_v22  ;;  %v14165_v22 = vand.u32 4294901760, %v14164_v14 }
 0x4f6   : > { %4880 = vmatprep.mubr.f32.mxu1 %v14092_v5 }
 0x4f7   : > { %5826 = vmatmul.mubr.f32.vlgmr.msra.gmra.mrb[32].mxu0 %v14160_v60  ;;  %v8675_v62 = vpack.c.bf16 %v14167_v53, %v14165_v22  ;;  %v14179_v22 = vand.u32 4294901760, %v11906_v18  ;;  %v14182_v53 = vld [vmem:[#allocation33_spill] sm:$0xff]  ;;  %v14187_v18 = vld [vmem:[#allocation44_spill] sm:$0xff] }
 0x4f8   : > { %8670 = vmatpush1.bf16.msra.mxu0 %v8669_v44  ;;  %5831 = vmatprep.mubr.f32.mxu0 %v14092_v5  ;;  %v14171_v44 = vld [vmem:[#allocation32_spill] sm:$0xff] }
 0x4f9   : > { %4886 = vmatmul.mubr.f32.gmra.mrb[94].mxu1 %v4885_v38  ;;  %8672 = vmatprep.subr.bf16.mxu0 %v8671_v11  ;;  %v14172_v40 = vand.u32 4294901760, %v14171_v44  ;;  %v14173_v38 = vld [vmem:[#allocation16_spill] sm:$0xff]  ;;  %v14174_v11 = vld [vmem:[#allocation7_spill] sm:$0xff]  ;;  %v14186_v44 = vand.u32 4294901760, %v14090_v10  ;;  %v14195_v10 = vand.u32 4294901760, %v14100_v1 }
 0x4fa   : > { %5116 = vmatprep.mubr.f32.mxu1 %v14092_v5  ;;  %v14175_v60 = vand.u32 4294901760, %v14174_v11  ;;  %v14188_v11 = vand.u32 4294901760, %v11915_v63  ;;  %v14197_v63 = vld [vmem:[#allocation12_spill] sm:$0xff] }
 0x4fb   : > { %5835 = vmatmul.mubr.f32.gmra.mrb[34].mxu0 %v14168_v52  ;;  %v8677_v25 = vpack.c.bf16 %v14172_v40, %v14170_v57  ;;  %v14185_v57 = vand.u32 4294901760, %v14087_v47 }
 0x4fc   : > { %5840 = vmatprep.mubr.f32.mxu0 %v14092_v5  ;;  %8674 = vmatpush1.bf16.msra.mxu0 %v8673_v8  ;;  %v8679_v14 = vpack.c.bf16 %v14177_v3, %v14175_v60  ;;  %v14180_v8 = vld [vmem:[#allocation36_spill] sm:$0xff]  ;;  %v14190_v60 = vld [vmem:[#allocation41_spill] sm:$0xff]  ;;  %v14192_v3 = vld [vmem:[#allocation47_spill] sm:$0xff] }
 0x4fd   : > { %5118 = vmatmul.mubr.f32.vlgmr.msra.gmra.mrb[32].mxu1 %v14173_v38  ;;  %8676 = vmatprep.subr.bf16.mxu0 %v8675_v62  ;;  %v14181_v48 = vand.u32 4294901760, %v14180_v8  ;;  %v14183_v62 = vand.u32 4294901760, %v14182_v53  ;;  %v8683_v40 = vpack.c.bf16 %v14186_v44, %v14185_v57  ;;  %v14191_v21 = vand.u32 4294901760, %v14190_v60  ;;  %v14202_v44 = vld [vmem:[#allocation55_spill] sm:$0xff]  ;;  %v14207_v60 = vld [vmem:[#allocation21_spill] sm:$0xff] }
 0x4fe   : > { %5123 = vmatprep.mubr.f32.mxu1 %v14092_v5  ;;  %8739 = vmatpush1.bf16.msra.mxu1 %v14178_v59  ;;  %v14196_v8 = vand.u32 4294901760, %v14101_v42  ;;  %v14198_v53 = vand.u32 4294901760, %v11955_v17  ;;  %v14205_v42 = vld [vmem:[#allocation52_spill] sm:$0xff]  ;;  %v14206_v17 = vand.u32 4294901760, %v11983_v34  ;;  %v14210_v34 = vld [vmem:[#allocation9_spill] sm:$0xff] }
 0x4ff   : > { %5844 = vmatmul.mubr.f32.gmra.mrb[36].mxu0 %v14179_v22  ;;  %8732 = vmatprep.subr.bf16.mxu1 %v11646_v24  ;;  %v8681_v52 = vpack.c.bf16 %v14183_v62, %v14181_v48  ;;  %v14194_v22 = vld [vmem:[#allocation31_spill] sm:$0xff] }
 0x500   : > { %5849 = vmatprep.mubr.f32.mxu0 %v14092_v5  ;;  %8678 = vmatpush1.bf16.msra.mxu0 %v8677_v25  ;;  %v14189_v25 = vld [vmem:[#allocation18_spill] sm:$0xff]  ;;  %v8687_v48 = vpack.c.bf16 %v14196_v8, %v14195_v10  ;;  %v14199_v62 = vld [vmem:[#allocation19_spill] sm:$0xff]  ;;  %v14218_v8 = vld [vmem:[#allocation20_spill] sm:$0xff] }
 0x501   : > { %5125 = vmatmul.mubr.f32.gmra.mrb[34].mxu1 %v14184_v37  ;;  %8680 = vmatprep.subr.bf16.mxu0 %v8679_v14  ;;  %v14193_v14 = vand.u32 4294901760, %v14192_v3  ;;  %v14209_v3 = vand.u32 4294901760, %v12017_v45  ;;  %v14214_v45 = vld [vmem:[#allocation34_spill] sm:$0xff] }
 0x502   : > { %5130 = vmatprep.mubr.f32.mxu1 %v14092_v5  ;;  %8740 = vmatpush1.bf16.msra.mxu1 %v14187_v18 }
 0x503   : > { %5853 = vmatmul.mubr.f32.gmra.mrb[38].mxu0 %v14188_v11  ;;  %8733 = vmatprep.subr.bf16.mxu1 %v14189_v25  ;;  %v8685_v47 = vpack.c.bf16 %v14193_v14, %v14191_v21  ;;  %v14204_v11 = vld [vmem:[#allocation17_spill] sm:$0xff]  ;;  %v14208_v21 = vld [vmem:[#allocation35_spill] sm:$0xff] }
 0x504   : > { %5858 = vmatprep.mubr.f32.mxu0 %v14092_v5  ;;  %8682 = vmatpush1.bf16.msra.mxu0 %v8681_v52  ;;  %v14200_v52 = vld [vmem:[#allocation49_spill] sm:$0xff] }
 0x505   : > { %5132 = vmatmul.mubr.f32.gmra.mrb[36].mxu1 %v14194_v22  ;;  %8684 = vmatprep.subr.bf16.mxu0 %v8683_v40  ;;  %v14201_v57 = vand.u32 4294901760, %v14200_v52  ;;  %v14203_v40 = vand.u32 4294901760, %v14202_v44 }
 0x506   : > { %5137 = vmatprep.mubr.f32.mxu1 %v14092_v5  ;;  %8741 = vmatpush1.bf16.msra.mxu1 %v14197_v63 }
 0x507   : > { %5862 = vmatmul.mubr.f32.gmra.mrb[40].mxu0 %v14198_v53  ;;  %8734 = vmatprep.subr.bf16.mxu1 %v14199_v62  ;;  %v8689_v1 = vpack.c.bf16 %v14203_v40, %v14201_v57  ;;  %v14221_v53 = vld [vmem:[#allocation42_spill] sm:$0xff]  ;;  %v14226_v40 = vld [vmem:[#allocation43_spill] sm:$0xff] }
 0x508   : > { %5867 = vmatprep.mubr.f32.mxu0 %v14092_v5  ;;  %8686 = vmatpush1.bf16.msra.mxu0 %v8685_v47  ;;  %v14213_v47 = vld [vmem:[#allocation22_spill] sm:$0xff]  ;;  %v14222_v52 = vand.u32 4294901760, %v14221_v53 }
 0x509   : > { %5139 = vmatmul.mubr.f32.gmra.mrb[38].mxu1 %v14204_v11  ;;  %8688 = vmatprep.subr.bf16.mxu0 %v8687_v48  ;;  %v14219_v48 = vld [vmem:[#allocation40_spill] sm:$0xff]  ;;  %v14224_v57 = vld [vmem:[#allocation46_spill] sm:$0xff] }
 0x50a   : > { %5144 = vmatprep.mubr.f32.mxu1 %v14092_v5  ;;  %8742 = vmatpush1.bf16.msra.mxu1 %v14205_v42  ;;  %v14225_v44 = vand.u32 4294901760, %v14224_v57  ;;  %v14236_v57 = vld [vmem:[#allocation60_spill] sm:$0xff] }
 0x50b   : > { %5871 = vmatmul.mubr.f32.gmra.mrb[42].mxu0 %v14206_v17  ;;  %8735 = vmatprep.subr.bf16.mxu1 %v14207_v60 }
 0x50c   : > { %5876 = vmatprep.mubr.f32.mxu0 %v14092_v5  ;;  %8690 = vmatpush1.bf16.msra.mxu0 %v8689_v1  ;;  %v14227_v1 = vld [vmem:[#allocation56_spill] sm:$0xff] }
 0x50d   : > { %5146 = vmatmul.mubr.f32.gmra.mrb[40].mxu1 %v14208_v21  ;;  %8692 = vmatprep.subr.bf16.mxu0 %v12413_v36  ;;  %v14211_v36 = vld [vmem:[#allocation10_spill] sm:$0xff]  ;;  %v14228_v17 = vand.u32 4294901760, %v14227_v1  ;;  %v14238_v1 = vld [vmem:[#allocation59_spill] sm:$0xff] }
 0x50e   : > { %5151 = vmatprep.mubr.f32.mxu1 %v14092_v5  ;;  %8743 = vmatpush1.bf16.msra.mxu1 %v11708_v39  ;;  %v14212_v14 = vand.u32 4294901760, %v14211_v36  ;;  %v14230_v36 = vld [vmem:[#allocation54_spill] sm:$0xff] }
 0x50f   : > { %5880 = vmatmul.mubr.f32.gmra.mrb[44].mxu0 %v14209_v3  ;;  %8736 = vmatprep.subr.bf16.mxu1 %v11732_v58  ;;  %v14229_v3 = vld [vmem:[#allocation48_spill] sm:$0xff] }
 0x510   : > { %5885 = vmatprep.mubr.f32.mxu0 %v14092_v5  ;;  %8694 = vmatpush1.bf16.msra.mxu0 %v12433_v26  ;;  %v14215_v26 = vld [vmem:[#allocation27_spill] sm:$0xff] }
 0x511   : > { %5153 = vmatmul.mubr.f32.gmra.mrb[42].mxu1 %v14210_v34  ;;  %8696 = vmatprep.subr.bf16.mxu0 %v12485_v6  ;;  %v14216_v6 = vld [vmem:[#allocation11_spill] sm:$0xff] }
 0x512   : > { %5158 = vmatprep.mubr.f32.mxu1 %v14092_v5  ;;  %8744 = vmatpush1.bf16.msra.mxu1 %v11742_v61  ;;  %v14217_v10 = vand.u32 4294901760, %v14216_v6  ;;  %v14232_v6 = vld [vmem:[#allocation51_spill] sm:$0xff] }
 0x513   : > { %5889 = vmatmul.mubr.f32.gmra.mrb[46].mxu0 %v14212_v14  ;;  %8737 = vmatprep.subr.bf16.mxu1 %v14213_v47  ;;  %v14231_v14 = vand.u32 4294901760, %v14230_v36 }
 0x514   : > { %5894 = vmatprep.mubr.f32.mxu0 %v14092_v5  ;;  %8698 = vmatpush1.bf16.msra.mxu0 %v12502_v35  ;;  %v14220_v35 = vld [vmem:[#allocation14_spill] sm:$0xff] }
 0x515   : > { %5160 = vmatmul.mubr.f32.gmra.mrb[44].mxu1 %v14214_v45  ;;  %8700 = vmatprep.subr.bf16.mxu0 %v11620_v2  ;;  %v14223_v2 = vld [vmem:[#allocation38_spill] sm:$0xff] }
 0x516   : > { %5165 = vmatprep.mubr.f32.mxu1 %v14092_v5  ;;  %8745 = vmatpush1.bf16.msra.mxu1 %v14215_v26 }
 0x517   : > { %5898 = vmatmul.mubr.f32.gmra.mrb[48].mxu0 %v14217_v10  ;;  %8738 = vmatprep.subr.bf16.mxu1 %v14218_v8  ;;  %v14233_v10 = vld [vmem:[#allocation57_spill] sm:$0xff] }
 0x518   : > { %5903 = vmatprep.mubr.f32.mxu0 %v14092_v5  ;;  %v14234_v53 = vand.u32 4294901760, %v14233_v10  ;;  %v14242_v10 = vld [vmem:[#allocation68_spill] sm:$0xff] }
 0x519   : > { %5167 = vmatmul.mubr.f32.gmra.mrb[46].mxu1 %v14219_v48 }
 0x51a   : > { %5172 = vmatprep.mubr.f32.mxu1 %v14092_v5  ;;  %8746 = vmatpush1.bf16.msra.mxu1 %v14220_v35 }
 0x51b   : > { %5907 = vmatmul.mubr.f32.gmra.mrb[50].mxu0 %v14222_v52  ;;  %v14235_v52 = vld [vmem:[#allocation50_spill] sm:$0xff] }
 0x51c   : > { %5912 = vmatprep.mubr.f32.mxu0 %v14092_v5 }
 0x51d   : > { %5174 = vmatmul.mubr.f32.gmra.mrb[48].mxu1 %v14223_v2 }
 0x51e   : > { %5179 = vmatprep.mubr.f32.mxu1 %v14092_v5 }
 0x51f   : > { %5916 = vmatmul.mubr.f32.gmra.mrb[52].mxu0 %v14225_v44  ;;  %v14237_v44 = vand.u32 4294901760, %v14236_v57  ;;  %v14244_v57 = vld [vmem:[#allocation65_spill] sm:$0xff] }
 0x520   : > { %5921 = vmatprep.mubr.f32.mxu0 %v14092_v5 }
 0x521   : > { %5181 = vmatmul.mubr.f32.gmra.mrb[50].mxu1 %v14226_v40 }
 0x522   : > { %5186 = vmatprep.mubr.f32.mxu1 %v14092_v5 }
 0x523   : > { %5925 = vmatmul.mubr.f32.gmra.mrb[54].mxu0 %v14228_v17  ;;  %v14239_v17 = vld [vmem:[#allocation66_spill] sm:$0xff] }
 0x524   : > { %5930 = vmatprep.mubr.f32.mxu0 %v14092_v5  ;;  %v14240_v36 = vand.u32 4294901760, %v14239_v17  ;;  %v14246_v17 = vld [vmem:[#allocation64_spill] sm:$0xff] }
 0x525   : > { %5188 = vmatmul.mubr.f32.gmra.mrb[52].mxu1 %v14229_v3 }
 0x526   : > { %5193 = vmatprep.mubr.f32.mxu1 %v14092_v5 }
 0x527   : > { %5934 = vmatmul.mubr.f32.gmra.mrb[56].mxu0 %v14231_v14  ;;  %v14241_v14 = vld [vmem:[#allocation62_spill] sm:$0xff] }
 0x528   : > { %5939 = vmatprep.mubr.f32.mxu0 %v14092_v5 }
 0x529   : > { %5195 = vmatmul.mubr.f32.gmra.mrb[54].mxu1 %v14232_v6 }
 0x52a   : > { %5200 = vmatprep.mubr.f32.mxu1 %v14092_v5 }
 0x52b   : > { %5943 = vmatmul.mubr.f32.gmra.mrb[58].mxu0 %v14234_v53  ;;  %v14243_v53 = vand.u32 4294901760, %v14242_v10  ;;  %v14248_v10 = vld [vmem:[#allocation67_spill] sm:$0xff] }
 0x52c   : > { %5948 = vmatprep.mubr.f32.mxu0 %v14092_v5 }
 0x52d   : > { %5202 = vmatmul.mubr.f32.gmra.mrb[56].mxu1 %v14235_v52 }
 0x52e   : > { %5207 = vmatprep.mubr.f32.mxu1 %v14092_v5 }
 0x52f   : > { %5952 = vmatmul.mubr.f32.gmra.mrb[60].mxu0 %v14237_v44  ;;  %v14245_v44 = vand.u32 4294901760, %v12226_v31  ;;  %v14250_v31 = vld [vmem:[#allocation69_spill] sm:$0xff] }
 0x530   : > { %5957 = vmatprep.mubr.f32.mxu0 %v14092_v5 }
 0x531   : > { %5209 = vmatmul.mubr.f32.gmra.mrb[58].mxu1 %v14238_v1 }
 0x532   : > { %5214 = vmatprep.mubr.f32.mxu1 %v14092_v5 }
 0x533   : > { %5961 = vmatmul.mubr.f32.gmra.mrb[62].mxu0 %v14240_v36  ;;  %v14247_v36 = vand.u32 4294901760, %v12259_v43  ;;  %v14252_v43 = vld [vmem:[#allocation24_spill] sm:$0xff] }
 0x534   : > { %5966 = vmatprep.mubr.f32.mxu0 %v14092_v5 }
 0x535   : > { %5216 = vmatmul.mubr.f32.gmra.mrb[60].mxu1 %v14241_v14 }
 0x536   : > { %5221 = vmatprep.mubr.f32.mxu1 %v14092_v5 }
 0x537   : > { %5970 = vmatmul.mubr.f32.gmra.mrb[64].mxu0 %v14243_v53  ;;  %v14249_v53 = vand.u32 4294901760, %v12269_v30  ;;  %v14254_v30 = vand.u32 4294901760, %v12351_v20  ;;  %v14257_v20 = vand.u32 4294901760, %v12403_v49  ;;  %v14260_v49 = vand.u32 4294901760, %v12456_v4 }
 0x538   : > { %5975 = vmatprep.mubr.f32.mxu0 %v14092_v5  ;;  %v14263_v4 = vand.u32 4294901760, %v12511_v0 }
 0x539   : > { %5223 = vmatmul.mubr.f32.gmra.mrb[62].mxu1 %v14244_v57 }
 0x53a   : > { %5228 = vmatprep.mubr.f32.mxu1 %v14092_v5 }
 0x53b   : > { %5979 = vmatmul.mubr.f32.gmra.mrb[66].mxu0 %v14245_v44  ;;  %v14251_v44 = vand.u32 4294901760, %v12326_v51  ;;  %v14255_v51 = vand.u32 4294901760, %v12373_v16  ;;  %v14258_v16 = vand.u32 4294901760, %v12426_v32  ;;  %v14261_v32 = vand.u32 4294901760, %v12477_v7 }
 0x53c   : > { %5984 = vmatprep.mubr.f32.mxu0 %v14092_v5 }
 0x53d   : > { %5230 = vmatmul.mubr.f32.gmra.mrb[64].mxu1 %v14246_v17 }
 0x53e   : > { %5235 = vmatprep.mubr.f32.mxu1 %v14092_v5 }
 0x53f   : > { %5988 = vmatmul.mubr.f32.gmra.mrb[68].mxu0 %v14247_v36  ;;  %v14253_v36 = vand.u32 4294901760, %v12342_v29  ;;  %v14256_v29 = vand.u32 4294901760, %v12384_v23  ;;  %v14259_v23 = vand.u32 4294901760, %v12448_v55  ;;  %v14262_v55 = vand.u32 4294901760, %v12489_v28 }
 0x540   : > { %5993 = vmatprep.mubr.f32.mxu0 %v14092_v5 }
 0x541   : > { %5237 = vmatmul.mubr.f32.gmra.mrb[66].mxu1 %v14248_v10 }
 0x542   : > { %5242 = vmatprep.mubr.f32.mxu1 %v14092_v5 }
 0x543   : > { %5997 = vmatmul.mubr.f32.gmra.mrb[70].mxu0 %v14249_v53 }
 0x544   : > { %6002 = vmatprep.mubr.f32.mxu0 %v14092_v5 }
 0x545   : > { %5244 = vmatmul.mubr.f32.gmra.mrb[68].mxu1 %v14250_v31 }
 0x546   : > { %5249 = vmatprep.mubr.f32.mxu1 %v14092_v5 }
 0x547   : > { %6006 = vmatmul.mubr.f32.gmra.mrb[72].mxu0 %v14251_v44 }
 0x548   : > { %6011 = vmatprep.mubr.f32.mxu0 %v14092_v5 }
 0x549   : > { %5251 = vmatmul.mubr.f32.gmra.mrb[70].mxu1 %v14252_v43 }
 0x54a   : > { %5256 = vmatprep.mubr.f32.mxu1 %v14092_v5 }
 0x54b   : > { %6015 = vmatmul.mubr.f32.gmra.mrb[74].mxu0 %v14253_v36 }
 0x54c   : > { %6020 = vmatprep.mubr.f32.mxu0 %v14092_v5 }
 0x54d   : > { %5258 = vmatmul.mubr.f32.gmra.mrb[72].mxu1 %v12287_v15 }
 0x54e   : > { %5263 = vmatprep.mubr.f32.mxu1 %v14092_v5 }
 0x54f   : > { %6024 = vmatmul.mubr.f32.gmra.mrb[76].mxu0 %v14254_v30 }
 0x550   : > { %6029 = vmatprep.mubr.f32.mxu0 %v14092_v5 }
 0x551   : > { %5265 = vmatmul.mubr.f32.gmra.mrb[74].mxu1 %v12328_v54 }
 0x552   : > { %5270 = vmatprep.mubr.f32.mxu1 %v14092_v5 }
 0x553   : > { %6033 = vmatmul.mubr.f32.gmra.mrb[78].mxu0 %v14255_v51 }
 0x554   : > { %6038 = vmatprep.mubr.f32.mxu0 %v14092_v5 }
 0x555   : > { %5272 = vmatmul.mubr.f32.gmra.mrb[76].mxu1 %v12337_v46 }
 0x556   : > { %5277 = vmatprep.mubr.f32.mxu1 %v14092_v5 }
 0x557   : > { %6042 = vmatmul.mubr.f32.gmra.mrb[80].mxu0 %v14256_v29 }
 0x558   : > { %6047 = vmatprep.mubr.f32.mxu0 %v14092_v5 }
 0x559   : > { %5279 = vmatmul.mubr.f32.gmra.mrb[78].mxu1 %v12358_v33 }
 0x55a   : > { %5284 = vmatprep.mubr.f32.mxu1 %v14092_v5 }
 0x55b   : > { %6051 = vmatmul.mubr.f32.gmra.mrb[82].mxu0 %v14257_v20 }
 0x55c   : > { %6056 = vmatprep.mubr.f32.mxu0 %v14092_v5 }
 0x55d   : > { %5286 = vmatmul.mubr.f32.gmra.mrb[80].mxu1 %v12366_v9 }
 0x55e   : > { %5291 = vmatprep.mubr.f32.mxu1 %v14092_v5 }
 0x55f   : > { %6060 = vmatmul.mubr.f32.gmra.mrb[84].mxu0 %v14258_v16 }
 0x560   : > { %6065 = vmatprep.mubr.f32.mxu0 %v14092_v5 }
 0x561   : > { %5293 = vmatmul.mubr.f32.gmra.mrb[82].mxu1 %v12389_v19 }
 0x562   : > { %5298 = vmatprep.mubr.f32.mxu1 %v14092_v5 }
 0x563   : > { %6069 = vmatmul.mubr.f32.gmra.mrb[86].mxu0 %v14259_v23 }
 0x564   : > { %6074 = vmatprep.mubr.f32.mxu0 %v14092_v5 }
 0x565   : > { %5300 = vmatmul.mubr.f32.gmra.mrb[84].mxu1 %v12405_v12 }
 0x566   : > { %5305 = vmatprep.mubr.f32.mxu1 %v14092_v5 }
 0x567   : > { %6078 = vmatmul.mubr.f32.gmra.mrb[88].mxu0 %v14260_v49 }
 0x568   : > { %6083 = vmatprep.mubr.f32.mxu0 %v14092_v5 }
 0x569   : > { %5307 = vmatmul.mubr.f32.gmra.mrb[86].mxu1 %v12419_v41 }
 0x56a   : > { %5312 = vmatprep.mubr.f32.mxu1 %v14092_v5 }
 0x56b   : > { %6087 = vmatmul.mubr.f32.gmra.mrb[90].mxu0 %v14261_v32 }
 0x56c   : > { %6092 = vmatprep.mubr.f32.mxu0 %v14092_v5 }
 0x56d   : > { %5314 = vmatmul.mubr.f32.gmra.mrb[88].mxu1 %v12441_v50 }
 0x56e   : > { %5319 = vmatprep.mubr.f32.mxu1 %v14092_v5 }
 0x56f   : > { %6096 = vmatmul.mubr.f32.gmra.mrb[92].mxu0 %v14262_v55  ;;  %v4433_v55 = vlaneseq }
 0x570   : > { %6101 = vmatprep.mubr.f32.mxu0 %v14092_v5 }
 0x571   : > { %5321 = vmatmul.mubr.f32.gmra.mrb[90].mxu1 %v12464_v13 }
 0x572   : > { %5326 = vmatprep.mubr.f32.mxu1 %v14092_v5 }
 0x573   : > { %6105 = vmatmul.mubr.f32.gmra.mrb[94].mxu0 %v14263_v4 }
 0x574   : > { %6271 = vmatprep.mubr.f32.mxu0 %v14092_v5 }
 0x575   : > { %5328 = vmatmul.mubr.f32.gmra.mrb[92].mxu1 %v12470_v27 }
 0x576   : > { %5333 = vmatprep.mubr.f32.mxu1 %v14092_v5 }
 0x577   : > { %6273 = vmatmul.mubr.f32.vlgmr.msra.gmra.mrb[32].mxu0 %v14173_v38 }
 0x578   : > { %8702 = vmatpush1.bf16.msra.mxu0 %v14178_v59  ;;  %6278 = vmatprep.mubr.f32.mxu0 %v14092_v5 }
 0x579   : > { %5335 = vmatmul.mubr.f32.gmra.mrb[94].mxu1 %v12491_v56  ;;  %8704 = vmatprep.subr.bf16.mxu0 %v11646_v24 }
 0x57a   : > { %6620 = vmatprep.mubr.f32.mxu1 %v14092_v5 }
 0x57b   : > { %6280 = vmatmul.mubr.f32.gmra.mrb[34].mxu0 %v14184_v37 }
 0x57c   : > { %6285 = vmatprep.mubr.f32.mxu0 %v14092_v5  ;;  %8706 = vmatpush1.bf16.msra.mxu0 %v14187_v18 }
 0x57d   : > { %6622 = vmatmul.mubr.f32.vlgmr.msra.gmra.mrb[96].mxu1 %v14208_v21  ;;  %8708 = vmatprep.subr.bf16.mxu0 %v14189_v25 }
 0x57e   : > { %6627 = vmatprep.mubr.f32.mxu1 %v14092_v5 }
 0x57f   : > { %6287 = vmatmul.mubr.f32.gmra.mrb[36].mxu0 %v14194_v22 }
 0x580   : > { %6292 = vmatprep.mubr.f32.mxu0 %v14092_v5  ;;  %8710 = vmatpush1.bf16.msra.mxu0 %v14197_v63 }
 0x581   : > { %6629 = vmatmul.mubr.f32.gmra.mrb[98].mxu1 %v14210_v34  ;;  %8712 = vmatprep.subr.bf16.mxu0 %v14199_v62 }
 0x582   : > { %6634 = vmatprep.mubr.f32.mxu1 %v14092_v5 }
 0x583   : > { %6294 = vmatmul.mubr.f32.gmra.mrb[38].mxu0 %v14204_v11 }
 0x584   : > { %6299 = vmatprep.mubr.f32.mxu0 %v14092_v5  ;;  %8714 = vmatpush1.bf16.msra.mxu0 %v14205_v42 }
 0x585   : > { %6636 = vmatmul.mubr.f32.gmra.mrb[100].mxu1 %v14214_v45  ;;  %8716 = vmatprep.subr.bf16.mxu0 %v14207_v60 }
 0x586   : > { %6641 = vmatprep.mubr.f32.mxu1 %v14092_v5 }
 0x587   : > { %6301 = vmatmul.mubr.f32.gmra.mrb[40].mxu0 %v14208_v21 }
 0x588   : > { %6306 = vmatprep.mubr.f32.mxu0 %v14092_v5  ;;  %8718 = vmatpush1.bf16.msra.mxu0 %v11708_v39 }
 0x589   : > { %6643 = vmatmul.mubr.f32.gmra.mrb[102].mxu1 %v14219_v48  ;;  %8720 = vmatprep.subr.bf16.mxu0 %v11732_v58 }
 0x58a   : > { %6648 = vmatprep.mubr.f32.mxu1 %v14092_v5 }
 0x58b   : > { %6308 = vmatmul.mubr.f32.gmra.mrb[42].mxu0 %v14210_v34 }
 0x58c   : > { %6313 = vmatprep.mubr.f32.mxu0 %v14092_v5  ;;  %8722 = vmatpush1.bf16.msra.mxu0 %v11742_v61 }
 0x58d   : > { %6650 = vmatmul.mubr.f32.gmra.mrb[104].mxu1 %v14223_v2  ;;  %8724 = vmatprep.subr.bf16.mxu0 %v14213_v47 }
 0x58e   : > { %6655 = vmatprep.mubr.f32.mxu1 %v14092_v5 }
 0x58f   : > { %6315 = vmatmul.mubr.f32.gmra.mrb[44].mxu0 %v14214_v45 }
 0x590   : > { %6320 = vmatprep.mubr.f32.mxu0 %v14092_v5  ;;  %8726 = vmatpush1.bf16.msra.mxu0 %v14215_v26 }
 0x591   : > { %6657 = vmatmul.mubr.f32.gmra.mrb[106].mxu1 %v14226_v40  ;;  %8728 = vmatprep.subr.bf16.mxu0 %v14218_v8 }
 0x592   : > { %6662 = vmatprep.mubr.f32.mxu1 %v14092_v5 }
 0x593   : > { %6322 = vmatmul.mubr.f32.gmra.mrb[46].mxu0 %v14219_v48 }
 0x594   : > { %6327 = vmatprep.mubr.f32.mxu0 %v14092_v5  ;;  %8730 = vmatpush1.bf16.msra.mxu0 %v14220_v35 }
 0x595   : > { %6664 = vmatmul.mubr.f32.gmra.mrb[108].mxu1 %v14229_v3 }
 0x596   : > { %6669 = vmatprep.mubr.f32.mxu1 %v14092_v5 }
 0x597   : > { %6329 = vmatmul.mubr.f32.gmra.mrb[48].mxu0 %v14223_v2 }
 0x598   : > { %6334 = vmatprep.mubr.f32.mxu0 %v14092_v5 }
 0x599   : > { %6671 = vmatmul.mubr.f32.gmra.mrb[110].mxu1 %v14232_v6 }
 0x59a   : > { %6676 = vmatprep.mubr.f32.mxu1 %v14092_v5 }
 0x59b   : > { %6336 = vmatmul.mubr.f32.gmra.mrb[50].mxu0 %v14226_v40 }
 0x59c   : > { %6341 = vmatprep.mubr.f32.mxu0 %v14092_v5 }
 0x59d   : > { %6678 = vmatmul.mubr.f32.gmra.mrb[112].mxu1 %v14235_v52 }
 0x59e   : > { %6683 = vmatprep.mubr.f32.mxu1 %v14092_v5 }
 0x59f   : > { %6343 = vmatmul.mubr.f32.gmra.mrb[52].mxu0 %v14229_v3 }
 0x5a0   : > { %6348 = vmatprep.mubr.f32.mxu0 %v14092_v5 }
 0x5a1   : > { %6685 = vmatmul.mubr.f32.gmra.mrb[114].mxu1 %v14238_v1 }
 0x5a2   : > { %6690 = vmatprep.mubr.f32.mxu1 %v14092_v5 }
 0x5a3   : > { %6350 = vmatmul.mubr.f32.gmra.mrb[54].mxu0 %v14232_v6 }
 0x5a4   : > { %6355 = vmatprep.mubr.f32.mxu0 %v14092_v5 }
 0x5a5   : > { %6692 = vmatmul.mubr.f32.gmra.mrb[116].mxu1 %v14241_v14 }
 0x5a6   : > { %6697 = vmatprep.mubr.f32.mxu1 %v14092_v5 }
 0x5a7   : > { %6357 = vmatmul.mubr.f32.gmra.mrb[56].mxu0 %v14235_v52 }
 0x5a8   : > { %6362 = vmatprep.mubr.f32.mxu0 %v14092_v5 }
 0x5a9   : > { %6699 = vmatmul.mubr.f32.gmra.mrb[118].mxu1 %v14244_v57 }
 0x5aa   : > { %6704 = vmatprep.mubr.f32.mxu1 %v14092_v5 }
 0x5ab   : > { %6364 = vmatmul.mubr.f32.gmra.mrb[58].mxu0 %v14238_v1 }
 0x5ac   : > { %6369 = vmatprep.mubr.f32.mxu0 %v14092_v5 }
 0x5ad   : > { %6706 = vmatmul.mubr.f32.gmra.mrb[120].mxu1 %v14246_v17 }
 0x5ae   : > { %6711 = vmatprep.mubr.f32.mxu1 %v14092_v5 }
 0x5af   : > { %6371 = vmatmul.mubr.f32.gmra.mrb[60].mxu0 %v14241_v14 }
 0x5b0   : > { %6376 = vmatprep.mubr.f32.mxu0 %v14092_v5 }
 0x5b1   : > { %6713 = vmatmul.mubr.f32.gmra.mrb[122].mxu1 %v14248_v10 }
 0x5b2   : > { %6718 = vmatprep.mubr.f32.mxu1 %v14092_v5 }
 0x5b3   : > { %6378 = vmatmul.mubr.f32.gmra.mrb[62].mxu0 %v14244_v57 }
 0x5b4   : > { %6383 = vmatprep.mubr.f32.mxu0 %v14092_v5 }
 0x5b5   : > { %6720 = vmatmul.mubr.f32.gmra.mrb[124].mxu1 %v14250_v31 }
 0x5b6   : > { %6725 = vmatprep.mubr.f32.mxu1 %v14092_v5 }
 0x5b7   : > { %6385 = vmatmul.mubr.f32.gmra.mrb[64].mxu0 %v14246_v17 }
 0x5b8   : > { %6390 = vmatprep.mubr.f32.mxu0 %v14092_v5 }
 0x5b9   : > { %6727 = vmatmul.mubr.f32.gmra.mrb[126].mxu1 %v14252_v43 }
 0x5ba   : > { %6732 = vmatprep.mubr.f32.mxu1 %v14092_v5 }
 0x5bb   : > { %6392 = vmatmul.mubr.f32.gmra.mrb[66].mxu0 %v14248_v10 }
 0x5bc   : > { %6397 = vmatprep.mubr.f32.mxu0 %v14092_v5 }
 0x5bd   : > { %6734 = vmatmul.mubr.f32.gmra.mrb[128].mxu1 %v12287_v15 }
 0x5be   : > { %6739 = vmatprep.mubr.f32.mxu1 %v14092_v5 }
 0x5bf   : > { %6399 = vmatmul.mubr.f32.gmra.mrb[68].mxu0 %v14250_v31 }
 0x5c0   : > { %6404 = vmatprep.mubr.f32.mxu0 %v14092_v5 }
 0x5c1   : > { %6741 = vmatmul.mubr.f32.gmra.mrb[130].mxu1 %v12328_v54 }
 0x5c2   : > { %6746 = vmatprep.mubr.f32.mxu1 %v14092_v5 }
 0x5c3   : > { %6406 = vmatmul.mubr.f32.gmra.mrb[70].mxu0 %v14252_v43 }
 0x5c4   : > { %6411 = vmatprep.mubr.f32.mxu0 %v14092_v5 }
 0x5c5   : > { %6748 = vmatmul.mubr.f32.gmra.mrb[132].mxu1 %v12337_v46 }
 0x5c6   : > { %6753 = vmatprep.mubr.f32.mxu1 %v14092_v5 }
 0x5c7   : > { %6413 = vmatmul.mubr.f32.gmra.mrb[72].mxu0 %v12287_v15 }
 0x5c8   : > { %6418 = vmatprep.mubr.f32.mxu0 %v14092_v5 }
 0x5c9   : > { %6755 = vmatmul.mubr.f32.gmra.mrb[134].mxu1 %v12358_v33 }
 0x5ca   : > { %6760 = vmatprep.mubr.f32.mxu1 %v14092_v5 }
 0x5cb   : > { %6420 = vmatmul.mubr.f32.gmra.mrb[74].mxu0 %v12328_v54 }
 0x5cc   : > { %6425 = vmatprep.mubr.f32.mxu0 %v14092_v5 }
 0x5cd   : > { %6762 = vmatmul.mubr.f32.gmra.mrb[136].mxu1 %v12366_v9 }
 0x5ce   : > { %6767 = vmatprep.mubr.f32.mxu1 %v14092_v5 }
 0x5cf   : > { %6427 = vmatmul.mubr.f32.gmra.mrb[76].mxu0 %v12337_v46 }
 0x5d0   : > { %v12856_v24 = vpop.f32.mrb[32].mxu1  ;;  %6432 = vmatprep.mubr.f32.mxu0 %v14092_v5 }
 0x5d1   : > { %14264 = vst [vmem:[#allocation23_spill] sm:$0xff] %v12856_v24  ;;  %v12859_v39 = vpop.f32.mrb[33].mxu1  ;;  %6769 = vmatmul.mubr.f32.gmra.mrb[138].mxu1 %v12389_v19 }
 0x5d2   : > { %14265 = vst [vmem:[#allocation26_spill] sm:$0xff] %v12859_v39  ;;  %6774 = vmatprep.mubr.f32.mxu1 %v14092_v5 }
 0x5d3   : > { %6434 = vmatmul.mubr.f32.gmra.mrb[78].mxu0 %v12358_v33 }
 0x5d4   : > { %v12864_v58 = vpop.f32.mrb[34].mxu1  ;;  %6439 = vmatprep.mubr.f32.mxu0 %v14092_v5 }
 0x5d5   : > { %14266 = vst [vmem:[#allocation5_spill] sm:$0xff] %v12864_v58  ;;  %v12867_v61 = vpop.f32.mrb[35].mxu1  ;;  %6776 = vmatmul.mubr.f32.gmra.mrb[140].mxu1 %v12405_v12  ;;  %v4431_v58 = vld [vmem:[%s13285_s6] sm:$0x3] }
 0x5d6   : > { %14267 = vst [vmem:[#allocation39_spill] sm:$0xff] %v12867_v61  ;;  %6781 = vmatprep.mubr.f32.mxu1 %v14092_v5 }
 0x5d7   : > { %6441 = vmatmul.mubr.f32.gmra.mrb[80].mxu0 %v12366_v9 }
 0x5d8   : > { %v12872_v15 = vpop.f32.mrb[36].mxu1  ;;  %6446 = vmatprep.mubr.f32.mxu0 %v14092_v5 }
 0x5d9   : > { %14268 = vst [vmem:[#allocation37_spill] sm:$0xff] %v12872_v15  ;;  %v12875_v54 = vpop.f32.mrb[37].mxu1  ;;  %6783 = vmatmul.mubr.f32.gmra.mrb[142].mxu1 %v12419_v41 }
 0x5da   : > { %14269 = vst [vmem:[#allocation13_spill] sm:$0xff] %v12875_v54  ;;  %6788 = vmatprep.mubr.f32.mxu1 %v14092_v5 }
 0x5db   : > { %6448 = vmatmul.mubr.f32.gmra.mrb[82].mxu0 %v12389_v19 }
 0x5dc   : > { %v12880_v46 = vpop.f32.mrb[38].mxu1  ;;  %6453 = vmatprep.mubr.f32.mxu0 %v14092_v5 }
 0x5dd   : > { %14270 = vst [vmem:[#allocation45_spill] sm:$0xff] %v12880_v46  ;;  %v12883_v33 = vpop.f32.mrb[39].mxu1  ;;  %6790 = vmatmul.mubr.f32.gmra.mrb[144].mxu1 %v12441_v50  ;;  %v4434_v46 = vshrl.u32 %v4433_v55, 7 }
 0x5de   : > { %14271 = vst [vmem:[#allocation53_spill] sm:$0xff] %v12883_v33  ;;  %6795 = vmatprep.mubr.f32.mxu1 %v14092_v5 }
 0x5df   : > { %6455 = vmatmul.mubr.f32.gmra.mrb[84].mxu0 %v12405_v12  ;;  %v4435_v61 = vsub.s32 0, %v4434_v46  ;;  %v4439_v39 = vsub.s32 1, %v4434_v46 }
 0x5e0   : > { %v12888_v9 = vpop.f32.mrb[40].mxu1  ;;  %6460 = vmatprep.mubr.f32.mxu0 %v14092_v5 }
 0x5e1   : > { %v12891_v7 = vpop.f32.mrb[41].mxu1  ;;  %6797 = vmatmul.mubr.f32.gmra.mrb[146].mxu1 %v12464_v13 }
 0x5e2   : > { %6802 = vmatprep.mubr.f32.mxu1 %v14092_v5 }
 0x5e3   : > { %6462 = vmatmul.mubr.f32.gmra.mrb[86].mxu0 %v12419_v41 }
 0x5e4   : > { %v12896_v19 = vpop.f32.mrb[42].mxu1  ;;  %6467 = vmatprep.mubr.f32.mxu0 %v14092_v5 }
 0x5e5   : > { %v12899_v28 = vpop.f32.mrb[43].mxu1  ;;  %6804 = vmatmul.mubr.f32.gmra.mrb[148].mxu1 %v12470_v27 }
 0x5e6   : > { %6809 = vmatprep.mubr.f32.mxu1 %v14092_v5 }
 0x5e7   : > { %6469 = vmatmul.mubr.f32.gmra.mrb[88].mxu0 %v12441_v50 }
 0x5e8   : > { %v12904_v12 = vpop.f32.mrb[44].mxu1  ;;  %6474 = vmatprep.mubr.f32.mxu0 %v14092_v5 }
 0x5e9   : > { %v12907_v0 = vpop.f32.mrb[45].mxu1  ;;  %6811 = vmatmul.mubr.f32.gmra.mrb[150].mxu1 %v12491_v56 }
 0x5eb   : > { %6476 = vmatmul.mubr.f32.gmra.mrb[90].mxu0 %v12464_v13 }
 0x5ec   : > { %v12911_v41 = vpop.f32.mrb[46].mxu1  ;;  %6481 = vmatprep.mubr.f32.mxu0 %v14092_v5 }
 0x5ed   : > { %v12914_v59 = vpop.f32.mrb[47].mxu1 }
 0x5ef   : > { %6483 = vmatmul.mubr.f32.gmra.mrb[92].mxu0 %v12470_v27 }
 0x5f0   : > { %v12917_v18 = vpop.f32.mrb[48].mxu1  ;;  %6488 = vmatprep.mubr.f32.mxu0 %v14092_v5 }
 0x5f1   : > { %v12920_v50 = vpop.f32.mrb[49].mxu1 }
 0x5f3   : > { %6490 = vmatmul.mubr.f32.gmra.mrb[94].mxu0 %v12491_v56 }
 0x5f4   : > { %v12923_v25 = vpop.f32.mrb[50].mxu1  ;;  %6592 = vmatprep.mubr.f32.mxu0 %v14092_v5 }
 0x5f5   : > { %v12926_v13 = vpop.f32.mrb[51].mxu1 }
 0x5f7   : > { %6594 = vmatmul.mubr.f32.vlgmr.msra.gmra.mrb[32].mxu0 %v14173_v38 }
 0x5f8   : > { %v12929_v63 = vpop.f32.mrb[52].mxu1  ;;  %6599 = vmatprep.mubr.f32.mxu0 %v14092_v5 }
 0x5f9   : > { %v12932_v27 = vpop.f32.mrb[53].mxu1 }
 0x5fb   : > { %6601 = vmatmul.mubr.f32.gmra.mrb[34].mxu0 %v14184_v37 }
 0x5fc   : > { %v12935_v62 = vpop.f32.mrb[54].mxu1  ;;  %6606 = vmatprep.mubr.f32.mxu0 %v14092_v5 }
 0x5fd   : > { %v12938_v56 = vpop.f32.mrb[55].mxu1 }
 0x5ff   : > { %6608 = vmatmul.mubr.f32.gmra.mrb[36].mxu0 %v14194_v22 }
 0x600   : > { %v12941_v42 = vpop.f32.mrb[56].mxu1  ;;  %6613 = vmatprep.mubr.f32.mxu0 %v14092_v5 }
 0x601   : > { %v12944_v38 = vpop.f32.mrb[57].mxu1 }
 0x603   : > { %6615 = vmatmul.mubr.f32.gmra.mrb[38].mxu0 %v14204_v11 }
 0x604   : > { %v12947_v60 = vpop.f32.mrb[58].mxu1 }
 0x605   : > { %v12949_v21 = vpop.f32.mrb[59].mxu1 }
 0x608   : > { %v12951_v37 = vpop.f32.mrb[60].mxu1 }
 0x609   : > { %v12953_v34 = vpop.f32.mrb[61].mxu1 }
 0x60c   : > { %v12955_v47 = vpop.f32.mrb[62].mxu1 }
 0x60d   : > { %v12957_v45 = vpop.f32.mrb[63].mxu1 }
 0x610   : > { %v12959_v22 = vpop.f32.mrb[64].mxu1 }
 0x611   : > { %v12961_v26 = vpop.f32.mrb[65].mxu1 }
 0x614   : > { %v12963_v5 = vpop.f32.mrb[66].mxu1 }
 0x615   : > { %v12965_v8 = vpop.f32.mrb[67].mxu1 }
 0x618   : > { %v12967_v11 = vpop.f32.mrb[68].mxu1 }
 0x619   : > { %v12969_v48 = vpop.f32.mrb[69].mxu1 }
 0x61c   : > { %v12971_v35 = vpop.f32.mrb[70].mxu1 }
 0x61d   : > { %v12973_v2 = vpop.f32.mrb[71].mxu1 }
 0x620   : > { %v12975_v40 = vpop.f32.mrb[72].mxu1 }
 0x621   : > { %v12977_v3 = vpop.f32.mrb[73].mxu1 }
 0x624   : > { %v12979_v6 = vpop.f32.mrb[74].mxu1 }
 0x625   : > { %v12981_v52 = vpop.f32.mrb[75].mxu1 }
 0x628   : > { %v12983_v1 = vpop.f32.mrb[76].mxu1 }
 0x629   : > { %v12985_v14 = vpop.f32.mrb[77].mxu1 }
 0x62c   : > { %v12987_v57 = vpop.f32.mrb[78].mxu1 }
 0x62d   : > { %v12989_v17 = vpop.f32.mrb[79].mxu1 }
 0x630   : > { %v12991_v10 = vpop.f32.mrb[80].mxu1 }
 0x631   : > { %v12993_v53 = vpop.f32.mrb[81].mxu1 }
 0x634   : > { %v12995_v31 = vpop.f32.mrb[82].mxu1 }
 0x635   : > { %v12997_v44 = vpop.f32.mrb[83].mxu1 }
 0x636   : > { %14272 = vst [vmem:[#allocation58_spill] sm:$0xff] %v12997_v44 }
 0x638   : > { %v12999_v43 = vpop.f32.mrb[84].mxu1 }
 0x639   : > { %14273 = vst [vmem:[#allocation61_spill] sm:$0xff] %v12999_v43  ;;  %v13001_v36 = vpop.f32.mrb[85].mxu1 }
 0x63a   : > { %14274 = vst [vmem:[#allocation63_spill] sm:$0xff] %v13001_v36 }
 0x63c   : > { %v13003_v30 = vpop.f32.mrb[86].mxu1 }
 0x63d   : > { %14275 = vst [vmem:[#allocation25_spill] sm:$0xff] %v13003_v30  ;;  %v13005_v51 = vpop.f32.mrb[87].mxu1 }
 0x63e   : > { %14276 = vst [vmem:[#allocation29_spill] sm:$0xff] %v13005_v51 }
 0x640   : > { %v13007_v29 = vpop.f32.mrb[88].mxu1 }
 0x641   : > { %14277 = vst [vmem:[#allocation6_spill] sm:$0xff] %v13007_v29  ;;  %v13009_v20 = vpop.f32.mrb[89].mxu1 }
 0x642   : > { %14278 = vst [vmem:[#allocation28_spill] sm:$0xff] %v13009_v20 }
 0x644   : > { %v13011_v16 = vpop.f32.mrb[90].mxu1 }
 0x645   : > { %14279 = vst [vmem:[#allocation32_spill] sm:$0xff] %v13011_v16  ;;  %v13013_v23 = vpop.f32.mrb[91].mxu1  ;;  %v13026_v16 = vrot.slane %v4431_v58, %v4435_v61 }
 0x646   : > { %14280 = vst [vmem:[#allocation16_spill] sm:$0xff] %v13013_v23 }
 0x647   : > { %v8833_v61 = vadd.f32 %v12896_v19, %v13026_v16 }
 0x648   : > { %v13015_v49 = vpop.f32.mrb[92].mxu1 }
 0x649   : > { %14281 = vst [vmem:[#allocation7_spill] sm:$0xff] %v13015_v49  ;;  %v13017_v32 = vpop.f32.mrb[93].mxu1  ;;  %v13028_v49 = vrot.slane %v4431_v58, %v4439_v39 }
 0x64a   : > { %14282 = vst [vmem:[#allocation30_spill] sm:$0xff] %v13017_v32 }
 0x64b   : > { %v8830_v55 = vadd.f32 %v12891_v7, %v13028_v49  ;;  %v8836_v58 = vadd.f32 %v12899_v28, %v13028_v49 }
 0x64c   : > { %v13019_v4 = vpop.f32.mrb[94].mxu1 }
 0x64d   : > { %14283 = vst [vmem:[#allocation8_spill] sm:$0xff] %v13019_v4  ;;  %v13021_v33 = vpop.f32.mrb[95].mxu1  ;;  %v8827_v4 = vadd.f32 %v12888_v9, %v13026_v16 }
 0x64e   : > { %14284 = vst [vmem:[#allocation36_spill] sm:$0xff] %v13021_v33 }
 0x650   : > { %v6623_v54 = vpop.f32.mrb[96].mxu1 }
 0x651   : > { %v6625_v15 = vpop.f32.mrb[97].mxu1 }
 0x654   : > { %v6630_v24 = vpop.f32.mrb[98].mxu1 }
 0x655   : > { %v6632_v23 = vpop.f32.mrb[99].mxu1 }
 0x658   : > { %v6637_v32 = vpop.f32.mrb[100].mxu1 }
 0x659   : > { %v6639_v33 = vpop.f32.mrb[101].mxu1 }
 0x65a   : > { %v6302_v20 = vpop.f32.mrb[40].mxu0 }
 0x65b   : > { %v8828_v29 = vadd.f32 %v8827_v4, %v6302_v20  ;;  %v6304_v51 = vpop.f32.mrb[41].mxu0 }
 0x65c   : > { %v8831_v30 = vadd.f32 %v8830_v55, %v6304_v51  ;;  %v6644_v46 = vpop.f32.mrb[102].mxu1  ;;  %v8839_v51 = vadd.f32 %v12904_v12, %v13026_v16 }
 0x65d   : > { %v8829_v36 = vadd.f32 %v8828_v29, %v6623_v54  ;;  %v6646_v39 = vpop.f32.mrb[103].mxu1  ;;  %v8842_v54 = vadd.f32 %v12907_v0, %v13028_v49 }
 0x65e   : > { %v8832_v43 = vadd.f32 %v8831_v30, %v6625_v15  ;;  %v6309_v9 = vpop.f32.mrb[42].mxu0 }
 0x65f   : > { %9557 = vtanh.f32 %v8829_v36  ;;  %v8834_v44 = vadd.f32 %v8833_v61, %v6309_v9  ;;  %v6311_v7 = vpop.f32.mrb[43].mxu0  ;;  %v8845_v61 = vadd.f32 %v12911_v41, %v13026_v16 }
 0x660   : > { %9559 = vtanh.f32 %v8832_v43  ;;  %v8837_v20 = vadd.f32 %v8836_v58, %v6311_v7  ;;  %v6651_v4 = vpop.f32.mrb[104].mxu1 }
 0x661   : > { %v8835_v55 = vadd.f32 %v8834_v44, %v6630_v24  ;;  %v6653_v19 = vpop.f32.mrb[105].mxu1  ;;  %v8848_v24 = vadd.f32 %v12914_v59, %v13028_v49 }
 0x662   : > { %v8838_v29 = vadd.f32 %v8837_v20, %v6632_v23  ;;  %v6316_v28 = vpop.f32.mrb[44].mxu0 }
 0x663   : > { %9561 = vtanh.f32 %v8835_v55  ;;  %v8840_v15 = vadd.f32 %v8839_v51, %v6316_v28  ;;  %v6318_v36 = vpop.f32.mrb[45].mxu0  ;;  %v8851_v55 = vadd.f32 %v12917_v18, %v13026_v16 }
 0x664   : > { %9563 = vtanh.f32 %v8838_v29  ;;  %v8843_v43 = vadd.f32 %v8842_v54, %v6318_v36  ;;  %v6658_v30 = vpop.f32.mrb[106].mxu1 }
 0x665   : > { %v8841_v12 = vadd.f32 %v8840_v15, %v6637_v32  ;;  %v6660_v58 = vpop.f32.mrb[107].mxu1  ;;  %v8854_v32 = vadd.f32 %v12920_v50, %v13028_v49  ;;  %v8857_v50 = vadd.f32 %v12923_v25, %v13026_v16  ;;  %v8863_v25 = vadd.f32 %v12929_v63, %v13026_v16 }
 0x666   : > { %v8844_v44 = vadd.f32 %v8843_v43, %v6639_v33  ;;  %v6323_v0 = vpop.f32.mrb[46].mxu0  ;;  %v8869_v63 = vadd.f32 %v12935_v62, %v13026_v16  ;;  %v8875_v62 = vadd.f32 %v12941_v42, %v13026_v16  ;;  %v8881_v42 = vadd.f32 %v12947_v60, %v13026_v16 }
 0x667   : > { %9565 = vtanh.f32 %v8841_v12  ;;  %v8846_v23 = vadd.f32 %v8845_v61, %v6323_v0  ;;  %v6325_v9 = vpop.f32.mrb[47].mxu0  ;;  %v8887_v60 = vadd.f32 %v12951_v37, %v13026_v16  ;;  %v8893_v37 = vadd.f32 %v12955_v47, %v13026_v16 }
 0x668   : > { %9567 = vtanh.f32 %v8844_v44  ;;  %v8849_v7 = vadd.f32 %v8848_v24, %v6325_v9  ;;  %v6665_v20 = vpop.f32.mrb[108].mxu1  ;;  %v8860_v24 = vadd.f32 %v12926_v13, %v13028_v49  ;;  %v8866_v13 = vadd.f32 %v12932_v27, %v13028_v49 }
 0x669   : > { %v9558_v51 = vpop.eup %9557  ;;  %v8847_v54 = vadd.f32 %v8846_v23, %v6644_v46  ;;  %v6667_v29 = vpop.f32.mrb[109].mxu1  ;;  %v8872_v27 = vadd.f32 %v12938_v56, %v13028_v49  ;;  %v8878_v56 = vadd.f32 %v12944_v38, %v13028_v49  ;;  %v8884_v38 = vadd.f32 %v12949_v21, %v13028_v49 }
 0x66a   : > { %v9560_v41 = vpop.eup %9559  ;;  %6889 = vst [vmem:[%s13053_s14 + $0x40] sm:$0xff] %v9558_v51  ;;  %v8850_v33 = vadd.f32 %v8849_v7, %v6646_v39  ;;  %v6330_v59 = vpop.f32.mrb[48].mxu0  ;;  %v8890_v21 = vadd.f32 %v12953_v34, %v13028_v49  ;;  %v8896_v34 = vadd.f32 %v12957_v45, %v13028_v49  ;;  %v8899_v47 = vadd.f32 %v12959_v22, %v13026_v16 }
 0x66b   : > { %6890 = vst [vmem:[%s13053_s14 + $0x48] sm:$0xff] %v9560_v41  ;;  %9569 = vtanh.f32 %v8847_v54  ;;  %v8852_v28 = vadd.f32 %v8851_v55, %v6330_v59  ;;  %v6332_v15 = vpop.f32.mrb[49].mxu0  ;;  %v8902_v45 = vadd.f32 %v12961_v26, %v13028_v49  ;;  %v8905_v22 = vadd.f32 %v12963_v5, %v13026_v16 }
 0x66c   : > { %9571 = vtanh.f32 %v8850_v33  ;;  %v8855_v18 = vadd.f32 %v8854_v32, %v6332_v15  ;;  %v6672_v46 = vpop.f32.mrb[110].mxu1  ;;  %v8908_v26 = vadd.f32 %v12965_v8, %v13028_v49  ;;  %v8911_v5 = vadd.f32 %v12967_v11, %v13026_v16 }
 0x66d   : > { %v9562_v36 = vpop.eup %9561  ;;  %v8853_v43 = vadd.f32 %v8852_v28, %v6651_v4  ;;  %v6674_v61 = vpop.f32.mrb[111].mxu1  ;;  %v8914_v8 = vadd.f32 %v12969_v48, %v13028_v49  ;;  %v8917_v11 = vadd.f32 %v12971_v35, %v13026_v16  ;;  %v8920_v48 = vadd.f32 %v12973_v2, %v13028_v49 }
 0x66e   : > { %v9564_v12 = vpop.eup %9563  ;;  %6891 = vst [vmem:[%s13053_s14 + $0x50] sm:$0xff] %v9562_v36  ;;  %v8856_v39 = vadd.f32 %v8855_v18, %v6653_v19  ;;  %v6337_v44 = vpop.f32.mrb[50].mxu0  ;;  %v8923_v35 = vadd.f32 %v12975_v40, %v13026_v16  ;;  %v8926_v2 = vadd.f32 %v12977_v3, %v13028_v49  ;;  %v8929_v40 = vadd.f32 %v12979_v6, %v13026_v16 }
 0x66f   : > { %6892 = vst [vmem:[%s13053_s14 + $0x58] sm:$0xff] %v9564_v12  ;;  %9573 = vtanh.f32 %v8853_v43  ;;  %v8858_v0 = vadd.f32 %v8857_v50, %v6337_v44  ;;  %v6339_v23 = vpop.f32.mrb[51].mxu0  ;;  %v8932_v3 = vadd.f32 %v12981_v52, %v13028_v49  ;;  %v8935_v6 = vadd.f32 %v12983_v1, %v13026_v16 }
 0x670   : > { %9575 = vtanh.f32 %v8856_v39  ;;  %v8861_v9 = vadd.f32 %v8860_v24, %v6339_v23  ;;  %v6679_v7 = vpop.f32.mrb[112].mxu1  ;;  %v8938_v52 = vadd.f32 %v12985_v14, %v13028_v49  ;;  %v8941_v1 = vadd.f32 %v12987_v57, %v13026_v16 }
 0x671   : > { %v9566_v51 = vpop.eup %9565  ;;  %v8859_v4 = vadd.f32 %v8858_v0, %v6658_v30  ;;  %v6681_v55 = vpop.f32.mrb[113].mxu1  ;;  %v8944_v14 = vadd.f32 %v12989_v17, %v13028_v49  ;;  %v8947_v57 = vadd.f32 %v12991_v10, %v13026_v16  ;;  %v8950_v17 = vadd.f32 %v12993_v53, %v13028_v49  ;;  %v14285_v53 = vld [vmem:[#allocation58_spill] sm:$0xff] }
 0x672   : > { %v9568_v54 = vpop.eup %9567  ;;  %6893 = vst [vmem:[%s13053_s14 + $0x60] sm:$0xff] %v9566_v51  ;;  %v8862_v19 = vadd.f32 %v8861_v9, %v6660_v58  ;;  %v6344_v41 = vpop.f32.mrb[52].mxu0  ;;  %v8953_v10 = vadd.f32 %v12995_v31, %v13026_v16  ;;  %v14286_v31 = vld [vmem:[#allocation61_spill] sm:$0xff] }
 0x673   : > { %6894 = vst [vmem:[%s13053_s14 + $0x68] sm:$0xff] %v9568_v54  ;;  %9577 = vtanh.f32 %v8859_v4  ;;  %v8864_v32 = vadd.f32 %v8863_v25, %v6344_v41  ;;  %v6346_v33 = vpop.f32.mrb[53].mxu0 }
 0x674   : > { %9579 = vtanh.f32 %v8862_v19  ;;  %v8867_v59 = vadd.f32 %v8866_v13, %v6346_v33  ;;  %v6686_v28 = vpop.f32.mrb[114].mxu1 }
 0x675   : > { %v9570_v15 = vpop.eup %9569  ;;  %v8865_v30 = vadd.f32 %v8864_v32, %v6665_v20  ;;  %v6688_v18 = vpop.f32.mrb[115].mxu1 }
 0x676   : > { %v9572_v36 = vpop.eup %9571  ;;  %6895 = vst [vmem:[%s13053_s14 + $0x70] sm:$0xff] %v9570_v15  ;;  %v8868_v58 = vadd.f32 %v8867_v59, %v6667_v29  ;;  %v6351_v50 = vpop.f32.mrb[54].mxu0 }
 0x677   : > { %6896 = vst [vmem:[%s13053_s14 + $0x78] sm:$0xff] %v9572_v36  ;;  %9581 = vtanh.f32 %v8865_v30  ;;  %v8870_v43 = vadd.f32 %v8869_v63, %v6351_v50  ;;  %v6353_v12 = vpop.f32.mrb[55].mxu0 }
 0x678   : > { %9583 = vtanh.f32 %v8868_v58  ;;  %v8873_v24 = vadd.f32 %v8872_v27, %v6353_v12  ;;  %v6693_v39 = vpop.f32.mrb[116].mxu1 }
 0x679   : > { %v9574_v44 = vpop.eup %9573  ;;  %v8871_v20 = vadd.f32 %v8870_v43, %v6672_v46  ;;  %v6695_v0 = vpop.f32.mrb[117].mxu1 }
 0x67a   : > { %v9576_v23 = vpop.eup %9575  ;;  %6897 = vst [vmem:[%s13053_s14 + $0x80] sm:$0xff] %v9574_v44  ;;  %v8874_v29 = vadd.f32 %v8873_v24, %v6674_v61  ;;  %v6358_v9 = vpop.f32.mrb[56].mxu0 }
 0x67b   : > { %6898 = vst [vmem:[%s13053_s14 + $0x88] sm:$0xff] %v9576_v23  ;;  %9585 = vtanh.f32 %v8871_v20  ;;  %v8876_v51 = vadd.f32 %v8875_v62, %v6358_v9  ;;  %v6360_v25 = vpop.f32.mrb[57].mxu0 }
 0x67c   : > { %9587 = vtanh.f32 %v8874_v29  ;;  %v8879_v4 = vadd.f32 %v8878_v56, %v6360_v25  ;;  %v6700_v54 = vpop.f32.mrb[118].mxu1 }
 0x67d   : > { %v9578_v13 = vpop.eup %9577  ;;  %v8877_v46 = vadd.f32 %v8876_v51, %v6679_v7  ;;  %v6702_v19 = vpop.f32.mrb[119].mxu1 }
 0x67e   : > { %v9580_v41 = vpop.eup %9579  ;;  %6899 = vst [vmem:[%s13053_s14 + $0x90] sm:$0xff] %v9578_v13  ;;  %v8880_v61 = vadd.f32 %v8879_v4, %v6681_v55  ;;  %v6365_v32 = vpop.f32.mrb[58].mxu0 }
 0x67f   : > { %6900 = vst [vmem:[%s13053_s14 + $0x98] sm:$0xff] %v9580_v41  ;;  %9589 = vtanh.f32 %v8877_v46  ;;  %v8882_v33 = vadd.f32 %v8881_v42, %v6365_v32  ;;  %v6367_v59 = vpop.f32.mrb[59].mxu0 }
 0x680   : > { %9591 = vtanh.f32 %v8880_v61  ;;  %v8885_v15 = vadd.f32 %v8884_v38, %v6367_v59  ;;  %v6707_v63 = vpop.f32.mrb[120].mxu1 }
 0x681   : > { %v9582_v30 = vpop.eup %9581  ;;  %v8883_v7 = vadd.f32 %v8882_v33, %v6686_v28  ;;  %v6709_v36 = vpop.f32.mrb[121].mxu1 }
 0x682   : > { %v9584_v27 = vpop.eup %9583  ;;  %6901 = vst [vmem:[%s13053_s14 + $0xa0] sm:$0xff] %v9582_v30  ;;  %v8886_v55 = vadd.f32 %v8885_v15, %v6688_v18  ;;  %v6372_v58 = vpop.f32.mrb[60].mxu0 }
 0x683   : > { %6902 = vst [vmem:[%s13053_s14 + $0xa8] sm:$0xff] %v9584_v27  ;;  %9593 = vtanh.f32 %v8883_v7  ;;  %v8888_v50 = vadd.f32 %v8887_v60, %v6372_v58  ;;  %v6374_v43 = vpop.f32.mrb[61].mxu0 }
 0x684   : > { %9595 = vtanh.f32 %v8886_v55  ;;  %v8891_v12 = vadd.f32 %v8890_v21, %v6374_v43  ;;  %v6714_v24 = vpop.f32.mrb[122].mxu1 }
 0x685   : > { %v9586_v44 = vpop.eup %9585  ;;  %v8889_v28 = vadd.f32 %v8888_v50, %v6693_v39  ;;  %v6716_v62 = vpop.f32.mrb[123].mxu1 }
 0x686   : > { %v9588_v20 = vpop.eup %9587  ;;  %6903 = vst [vmem:[%s13053_s14 + $0xb0] sm:$0xff] %v9586_v44  ;;  %v8892_v18 = vadd.f32 %v8891_v12, %v6695_v0  ;;  %v6379_v23 = vpop.f32.mrb[62].mxu0 }
 0x687   : > { %6904 = vst [vmem:[%s13053_s14 + $0xb8] sm:$0xff] %v9588_v20  ;;  %9597 = vtanh.f32 %v8889_v28  ;;  %v8894_v56 = vadd.f32 %v8893_v37, %v6379_v23  ;;  %v6381_v29 = vpop.f32.mrb[63].mxu0 }
 0x688   : > { %9599 = vtanh.f32 %v8892_v18  ;;  %v8897_v9 = vadd.f32 %v8896_v34, %v6381_v29  ;;  %v6721_v51 = vpop.f32.mrb[124].mxu1 }
 0x689   : > { %v9590_v25 = vpop.eup %9589  ;;  %v8895_v39 = vadd.f32 %v8894_v56, %v6700_v54  ;;  %v6723_v4 = vpop.f32.mrb[125].mxu1 }
 0x68a   : > { %v9592_v13 = vpop.eup %9591  ;;  %6905 = vst [vmem:[%s13053_s14 + $0xc0] sm:$0xff] %v9590_v25  ;;  %v8898_v0 = vadd.f32 %v8897_v9, %v6702_v19  ;;  %v6386_v42 = vpop.f32.mrb[64].mxu0 }
 0x68b   : > { %6906 = vst [vmem:[%s13053_s14 + $0xc8] sm:$0xff] %v9592_v13  ;;  %9601 = vtanh.f32 %v8895_v39  ;;  %v8900_v46 = vadd.f32 %v8899_v47, %v6386_v42  ;;  %v6388_v41 = vpop.f32.mrb[65].mxu0 }
 0x68c   : > { %9603 = vtanh.f32 %v8898_v0  ;;  %v8903_v38 = vadd.f32 %v8902_v45, %v6388_v41  ;;  %v6728_v61 = vpop.f32.mrb[126].mxu1 }
 0x68d   : > { %v9594_v32 = vpop.eup %9593  ;;  %v8901_v54 = vadd.f32 %v8900_v46, %v6707_v63  ;;  %v6730_v33 = vpop.f32.mrb[127].mxu1 }
 0x68e   : > { %v9596_v59 = vpop.eup %9595  ;;  %6907 = vst [vmem:[%s13053_s14 + $0xd0] sm:$0xff] %v9594_v32  ;;  %v8904_v19 = vadd.f32 %v8903_v38, %v6709_v36  ;;  %v6393_v15 = vpop.f32.mrb[66].mxu0 }
 0x68f   : > { %6908 = vst [vmem:[%s13053_s14 + $0xd8] sm:$0xff] %v9596_v59  ;;  %9605 = vtanh.f32 %v8901_v54  ;;  %v8906_v30 = vadd.f32 %v8905_v22, %v6393_v15  ;;  %v6395_v60 = vpop.f32.mrb[67].mxu0 }
 0x690   : > { %9607 = vtanh.f32 %v8904_v19  ;;  %v8909_v7 = vadd.f32 %v8908_v26, %v6395_v60  ;;  %v6735_v27 = vpop.f32.mrb[128].mxu1 }
 0x691   : > { %v9598_v21 = vpop.eup %9597  ;;  %v8907_v63 = vadd.f32 %v8906_v30, %v6714_v24  ;;  %v6737_v55 = vpop.f32.mrb[129].mxu1 }
 0x692   : > { %v9600_v58 = vpop.eup %9599  ;;  %6909 = vst [vmem:[%s13053_s14 + $0xe0] sm:$0xff] %v9598_v21  ;;  %v8910_v36 = vadd.f32 %v8909_v7, %v6716_v62  ;;  %v6400_v50 = vpop.f32.mrb[68].mxu0 }
 0x693   : > { %6910 = vst [vmem:[%s13053_s14 + $0xe8] sm:$0xff] %v9600_v58  ;;  %9609 = vtanh.f32 %v8907_v63  ;;  %v8912_v43 = vadd.f32 %v8911_v5, %v6400_v50  ;;  %v6402_v12 = vpop.f32.mrb[69].mxu0 }
 0x694   : > { %9611 = vtanh.f32 %v8910_v36  ;;  %v8915_v44 = vadd.f32 %v8914_v8, %v6402_v12  ;;  %v6742_v37 = vpop.f32.mrb[130].mxu1 }
 0x695   : > { %v9602_v28 = vpop.eup %9601  ;;  %v8913_v24 = vadd.f32 %v8912_v43, %v6721_v51  ;;  %v6744_v20 = vpop.f32.mrb[131].mxu1 }
 0x696   : > { %v9604_v34 = vpop.eup %9603  ;;  %6911 = vst [vmem:[%s13053_s14 + $0xf0] sm:$0xff] %v9602_v28  ;;  %v8916_v62 = vadd.f32 %v8915_v44, %v6723_v4  ;;  %v6407_v18 = vpop.f32.mrb[70].mxu0 }
 0x697   : > { %6912 = vst [vmem:[%s13053_s14 + $0xf8] sm:$0xff] %v9604_v34  ;;  %9613 = vtanh.f32 %v8913_v24  ;;  %v8918_v23 = vadd.f32 %v8917_v11, %v6407_v18  ;;  %v6409_v56 = vpop.f32.mrb[71].mxu0 }
 0x698   : > { %9615 = vtanh.f32 %v8916_v62  ;;  %v8921_v29 = vadd.f32 %v8920_v48, %v6409_v56  ;;  %v6749_v9 = vpop.f32.mrb[132].mxu1 }
 0x699   : > { %v9606_v25 = vpop.eup %9605  ;;  %v8919_v51 = vadd.f32 %v8918_v23, %v6728_v61  ;;  %v6751_v47 = vpop.f32.mrb[133].mxu1 }
 0x69a   : > { %v9608_v39 = vpop.eup %9607  ;;  %6913 = vst [vmem:[%s13053_s14 + $0x100] sm:$0xff] %v9606_v25  ;;  %v8922_v4 = vadd.f32 %v8921_v29, %v6730_v33  ;;  %v6414_v13 = vpop.f32.mrb[72].mxu0 }
 0x69b   : > { %6914 = vst [vmem:[%s13053_s14 + $0x108] sm:$0xff] %v9608_v39  ;;  %9617 = vtanh.f32 %v8919_v51  ;;  %v8924_v45 = vadd.f32 %v8923_v35, %v6414_v13  ;;  %v6416_v0 = vpop.f32.mrb[73].mxu0 }
 0x69c   : > { %9619 = vtanh.f32 %v8922_v4  ;;  %v8927_v42 = vadd.f32 %v8926_v2, %v6416_v0  ;;  %v6756_v46 = vpop.f32.mrb[134].mxu1  ;;  %v8956_v2 = vadd.f32 %v14285_v53, %v13028_v49 }
 0x69d   : > { %v9610_v41 = vpop.eup %9609  ;;  %v8925_v38 = vadd.f32 %v8924_v45, %v6735_v27  ;;  %v6758_v61 = vpop.f32.mrb[135].mxu1 }
 0x69e   : > { %v9612_v32 = vpop.eup %9611  ;;  %6915 = vst [vmem:[%s13053_s14 + $0x110] sm:$0xff] %v9610_v41  ;;  %v8928_v22 = vadd.f32 %v8927_v42, %v6737_v55  ;;  %v6421_v54 = vpop.f32.mrb[74].mxu0 }
 0x69f   : > { %6916 = vst [vmem:[%s13053_s14 + $0x118] sm:$0xff] %v9612_v32  ;;  %9621 = vtanh.f32 %v8925_v38  ;;  %v8930_v33 = vadd.f32 %v8929_v40, %v6421_v54  ;;  %v6423_v59 = vpop.f32.mrb[75].mxu0  ;;  %v8959_v40 = vadd.f32 %v14286_v31, %v13026_v16 }
 0x6a0   : > { %9623 = vtanh.f32 %v8928_v22  ;;  %v8933_v26 = vadd.f32 %v8932_v3, %v6423_v59  ;;  %v6763_v19 = vpop.f32.mrb[136].mxu1  ;;  %v14287_v3 = vld [vmem:[#allocation63_spill] sm:$0xff] }
 0x6a1   : > { %v9614_v15 = vpop.eup %9613  ;;  %v8931_v30 = vadd.f32 %v8930_v33, %v6742_v37  ;;  %v6765_v60 = vpop.f32.mrb[137].mxu1  ;;  %v8962_v22 = vadd.f32 %v14287_v3, %v13028_v49  ;;  %v14296_v3 = vld [vmem:[#allocation8_spill] sm:$0xff] }
 0x6a2   : > { %v9616_v7 = vpop.eup %9615  ;;  %6917 = vst [vmem:[%s13053_s14 + $0x120] sm:$0xff] %v9614_v15  ;;  %v8934_v27 = vadd.f32 %v8933_v26, %v6744_v20  ;;  %v6428_v21 = vpop.f32.mrb[76].mxu0 }
 0x6a3   : > { %6918 = vst [vmem:[%s13053_s14 + $0x128] sm:$0xff] %v9616_v7  ;;  %9625 = vtanh.f32 %v8931_v30  ;;  %v8936_v5 = vadd.f32 %v8935_v6, %v6428_v21  ;;  %v6430_v63 = vpop.f32.mrb[77].mxu0  ;;  %v14288_v30 = vld [vmem:[#allocation25_spill] sm:$0xff] }
 0x6a4   : > { %9627 = vtanh.f32 %v8934_v27  ;;  %v8939_v55 = vadd.f32 %v8938_v52, %v6430_v63  ;;  %v6770_v58 = vpop.f32.mrb[138].mxu1  ;;  %v14289_v21 = vld [vmem:[#allocation29_spill] sm:$0xff] }
 0x6a5   : > { %v9618_v8 = vpop.eup %9617  ;;  %v8937_v36 = vadd.f32 %v8936_v5, %v6749_v9  ;;  %v6772_v50 = vpop.f32.mrb[139].mxu1  ;;  %v8968_v5 = vadd.f32 %v14289_v21, %v13028_v49 }
 0x6a6   : > { %v9620_v43 = vpop.eup %9619  ;;  %6919 = vst [vmem:[%s13053_s14 + $0x130] sm:$0xff] %v9618_v8  ;;  %v8940_v12 = vadd.f32 %v8939_v55, %v6751_v47  ;;  %v6435_v44 = vpop.f32.mrb[78].mxu0 }
 0x6a7   : > { %6920 = vst [vmem:[%s13053_s14 + $0x138] sm:$0xff] %v9620_v43  ;;  %9629 = vtanh.f32 %v8937_v36  ;;  %v8942_v37 = vadd.f32 %v8941_v1, %v6435_v44  ;;  %v6437_v28 = vpop.f32.mrb[79].mxu0  ;;  %v14290_v43 = vld [vmem:[#allocation6_spill] sm:$0xff] }
 0x6a8   : > { %9631 = vtanh.f32 %v8940_v12  ;;  %v8945_v11 = vadd.f32 %v8944_v14, %v6437_v28  ;;  %v6777_v24 = vpop.f32.mrb[140].mxu1  ;;  %v8971_v14 = vadd.f32 %v14290_v43, %v13026_v16  ;;  %v14291_v28 = vld [vmem:[#allocation28_spill] sm:$0xff] }
 0x6a9   : > { %v9622_v20 = vpop.eup %9621  ;;  %v8943_v34 = vadd.f32 %v8942_v37, %v6756_v46  ;;  %v6779_v48 = vpop.f32.mrb[141].mxu1 }
 0x6aa   : > { %v9624_v62 = vpop.eup %9623  ;;  %6921 = vst [vmem:[%s13053_s14 + $0x140] sm:$0xff] %v9622_v20  ;;  %v8946_v18 = vadd.f32 %v8945_v11, %v6758_v61  ;;  %v6442_v23 = vpop.f32.mrb[80].mxu0  ;;  %v8974_v11 = vadd.f32 %v14291_v28, %v13028_v49 }
 0x6ab   : > { %6922 = vst [vmem:[%s13053_s14 + $0x148] sm:$0xff] %v9624_v62  ;;  %9633 = vtanh.f32 %v8943_v34  ;;  %v8948_v56 = vadd.f32 %v8947_v57, %v6442_v23  ;;  %v6444_v29 = vpop.f32.mrb[81].mxu0 }
 0x6ac   : > { %9635 = vtanh.f32 %v8946_v18  ;;  %v8951_v9 = vadd.f32 %v8950_v17, %v6444_v29  ;;  %v6784_v25 = vpop.f32.mrb[142].mxu1  ;;  %v14292_v18 = vld [vmem:[#allocation32_spill] sm:$0xff] }
 0x6ad   : > { %v9626_v35 = vpop.eup %9625  ;;  %v8949_v51 = vadd.f32 %v8948_v56, %v6763_v19  ;;  %v6786_v47 = vpop.f32.mrb[143].mxu1  ;;  %v8977_v23 = vadd.f32 %v14292_v18, %v13026_v16  ;;  %v14303_v18 = vld [vmem:[#allocation13_spill] sm:$0xff] }
 0x6ae   : > { %v9628_v39 = vpop.eup %9627  ;;  %6923 = vst [vmem:[%s13053_s14 + $0x150] sm:$0xff] %v9626_v35  ;;  %v8952_v4 = vadd.f32 %v8951_v9, %v6765_v60  ;;  %v6449_v13 = vpop.f32.mrb[82].mxu0  ;;  %v8965_v60 = vadd.f32 %v14288_v30, %v13026_v16 }
 0x6af   : > { %6924 = vst [vmem:[%s13053_s14 + $0x158] sm:$0xff] %v9628_v39  ;;  %9637 = vtanh.f32 %v8949_v51  ;;  %v8954_v45 = vadd.f32 %v8953_v10, %v6449_v13  ;;  %v6451_v0 = vpop.f32.mrb[83].mxu0 }
 0x6b0   : > { %9639 = vtanh.f32 %v8952_v4  ;;  %v8957_v42 = vadd.f32 %v8956_v2, %v6451_v0  ;;  %v6791_v46 = vpop.f32.mrb[144].mxu1  ;;  %v14294_v4 = vld [vmem:[#allocation7_spill] sm:$0xff] }
 0x6b1   : > { %v9630_v41 = vpop.eup %9629  ;;  %v8955_v38 = vadd.f32 %v8954_v45, %v6770_v58  ;;  %v6793_v61 = vpop.f32.mrb[145].mxu1  ;;  %v8983_v13 = vadd.f32 %v14294_v4, %v13026_v16 }
 0x6b2   : > { %v9632_v32 = vpop.eup %9631  ;;  %6925 = vst [vmem:[%s13053_s14 + $0x160] sm:$0xff] %v9630_v41  ;;  %v8958_v54 = vadd.f32 %v8957_v42, %v6772_v50  ;;  %v6456_v33 = vpop.f32.mrb[84].mxu0  ;;  %v14295_v42 = vld [vmem:[#allocation30_spill] sm:$0xff] }
 0x6b3   : > { %6926 = vst [vmem:[%s13053_s14 + $0x168] sm:$0xff] %v9632_v32  ;;  %9641 = vtanh.f32 %v8955_v38  ;;  %v8960_v59 = vadd.f32 %v8959_v40, %v6456_v33  ;;  %v6458_v26 = vpop.f32.mrb[85].mxu0 }
 0x6b4   : > { %9643 = vtanh.f32 %v8958_v54  ;;  %v8963_v19 = vadd.f32 %v8962_v22, %v6458_v26  ;;  %v6798_v15 = vpop.f32.mrb[146].mxu1  ;;  %v8989_v22 = vadd.f32 %v14296_v3, %v13026_v16 }
 0x6b5   : > { %v9634_v6 = vpop.eup %9633  ;;  %v8961_v7 = vadd.f32 %v8960_v59, %v6777_v24  ;;  %v6800_v52 = vpop.f32.mrb[147].mxu1  ;;  %v14297_v59 = vld [vmem:[#allocation36_spill] sm:$0xff] }
 0x6b6   : > { %v9636_v27 = vpop.eup %9635  ;;  %6927 = vst [vmem:[%s13053_s14 + $0x170] sm:$0xff] %v9634_v6  ;;  %v8964_v63 = vadd.f32 %v8963_v19, %v6779_v48  ;;  %v6463_v55 = vpop.f32.mrb[86].mxu0  ;;  %v8992_v26 = vadd.f32 %v14297_v59, %v13028_v49 }
 0x6b7   : > { %6928 = vst [vmem:[%s13053_s14 + $0x178] sm:$0xff] %v9636_v27  ;;  %9645 = vtanh.f32 %v8961_v7  ;;  %v8966_v58 = vadd.f32 %v8965_v60, %v6463_v55  ;;  %v6465_v8 = vpop.f32.mrb[87].mxu0 }
 0x6b8   : > { %9647 = vtanh.f32 %v8964_v63  ;;  %v8969_v1 = vadd.f32 %v8968_v5, %v6465_v8  ;;  %v6805_v36 = vpop.f32.mrb[148].mxu1  ;;  %v14299_v63 = vld [vmem:[#allocation26_spill] sm:$0xff] }
 0x6b9   : > { %v9638_v50 = vpop.eup %9637  ;;  %v8967_v12 = vadd.f32 %v8966_v58, %v6784_v25  ;;  %v6807_v44 = vpop.f32.mrb[149].mxu1  ;;  %v14293_v25 = vld [vmem:[#allocation16_spill] sm:$0xff]  ;;  %v8813_v55 = vadd.f32 %v14299_v63, %v13028_v49 }
 0x6ba   : > { %v9640_v37 = vpop.eup %9639  ;;  %6929 = vst [vmem:[%s13053_s14 + $0x180] sm:$0xff] %v9638_v50  ;;  %v8970_v24 = vadd.f32 %v8969_v1, %v6786_v47  ;;  %v6470_v20 = vpop.f32.mrb[88].mxu0  ;;  %v8980_v35 = vadd.f32 %v14293_v25, %v13028_v49 }
 0x6bb   : > { %6930 = vst [vmem:[%s13053_s14 + $0x188] sm:$0xff] %v9640_v37  ;;  %9649 = vtanh.f32 %v8967_v12  ;;  %v8972_v57 = vadd.f32 %v8971_v14, %v6470_v20  ;;  %v6472_v34 = vpop.f32.mrb[89].mxu0  ;;  %v14300_v14 = vld [vmem:[#allocation5_spill] sm:$0xff]  ;;  %v14301_v37 = vld [vmem:[#allocation39_spill] sm:$0xff] }
 0x6bc   : > { %9651 = vtanh.f32 %v8970_v24  ;;  %v8975_v48 = vadd.f32 %v8974_v11, %v6472_v34  ;;  %v6812_v62 = vpop.f32.mrb[150].mxu1  ;;  %v8815_v12 = vadd.f32 %v14300_v14, %v13026_v16  ;;  %v8817_v28 = vadd.f32 %v14301_v37, %v13028_v49 }
 0x6bd   : > { %v9642_v17 = vpop.eup %9641  ;;  %v8973_v56 = vadd.f32 %v8972_v57, %v6791_v46  ;;  %v6814_v29 = vpop.f32.mrb[151].mxu1  ;;  %v8986_v46 = vadd.f32 %v14295_v42, %v13028_v49 }
 0x6be   : > { %v9644_v9 = vpop.eup %9643  ;;  %6931 = vst [vmem:[%s13053_s14 + $0x190] sm:$0xff] %v9642_v17  ;;  %v8976_v10 = vadd.f32 %v8975_v48, %v6793_v61  ;;  %v6477_v51 = vpop.f32.mrb[90].mxu0  ;;  %v14302_v48 = vld [vmem:[#allocation37_spill] sm:$0xff] }
 0x6bf   : > { %6932 = vst [vmem:[%s13053_s14 + $0x198] sm:$0xff] %v9644_v9  ;;  %9653 = vtanh.f32 %v8973_v56  ;;  %v8978_v47 = vadd.f32 %v8977_v23, %v6477_v51  ;;  %v6479_v39 = vpop.f32.mrb[91].mxu0  ;;  %v8821_v23 = vadd.f32 %v14303_v18, %v13028_v49 }
 0x6c0   : > { %9655 = vtanh.f32 %v8976_v10  ;;  %v8981_v53 = vadd.f32 %v8980_v35, %v6479_v39  ;;  %v14304_v10 = vld [vmem:[#allocation45_spill] sm:$0xff] }
 0x6c1   : > { %v9646_v2 = vpop.eup %9645  ;;  %v8979_v45 = vadd.f32 %v8978_v47, %v6798_v15  ;;  %v8823_v51 = vadd.f32 %v14304_v10, %v13026_v16  ;;  %v14305_v39 = vld [vmem:[#allocation53_spill] sm:$0xff] }
 0x6c2   : > { %v9648_v0 = vpop.eup %9647  ;;  %6933 = vst [vmem:[%s13053_s14 + $0x1a0] sm:$0xff] %v9646_v2  ;;  %v8982_v41 = vadd.f32 %v8981_v53, %v6800_v52  ;;  %v6484_v31 = vpop.f32.mrb[92].mxu0  ;;  %v14298_v52 = vld [vmem:[#allocation23_spill] sm:$0xff]  ;;  %v8825_v53 = vadd.f32 %v14305_v39, %v13028_v49 }
 0x6c3   : > { %6934 = vst [vmem:[%s13053_s14 + $0x1a8] sm:$0xff] %v9648_v0  ;;  %9657 = vtanh.f32 %v8979_v45  ;;  %v8984_v40 = vadd.f32 %v8983_v13, %v6484_v31  ;;  %v6486_v38 = vpop.f32.mrb[93].mxu0  ;;  %v8811_v27 = vadd.f32 %v14298_v52, %v13026_v16 }
 0x6c4   : > { %9659 = vtanh.f32 %v8982_v41  ;;  %v8987_v61 = vadd.f32 %v8986_v46, %v6486_v38 }
 0x6c5   : > { %v9650_v32 = vpop.eup %9649  ;;  %v8985_v54 = vadd.f32 %v8984_v40, %v6805_v36 }
 0x6c6   : > { %v9652_v33 = vpop.eup %9651  ;;  %6935 = vst [vmem:[%s13053_s14 + $0x1b0] sm:$0xff] %v9650_v32  ;;  %v8988_v19 = vadd.f32 %v8987_v61, %v6807_v44  ;;  %v6491_v15 = vpop.f32.mrb[94].mxu0 }
 0x6c7   : > { %6936 = vst [vmem:[%s13053_s14 + $0x1b8] sm:$0xff] %v9652_v33  ;;  %9661 = vtanh.f32 %v8985_v54  ;;  %v8990_v6 = vadd.f32 %v8989_v22, %v6491_v15  ;;  %v6493_v30 = vpop.f32.mrb[95].mxu0 }
 0x6c8   : > { %9663 = vtanh.f32 %v8988_v19  ;;  %v8993_v60 = vadd.f32 %v8992_v26, %v6493_v30 }
 0x6c9   : > { %v9654_v7 = vpop.eup %9653  ;;  %v8991_v21 = vadd.f32 %v8990_v6, %v6812_v62  ;;  %v8819_v62 = vadd.f32 %v14302_v48, %v13026_v16 }
 0x6ca   : > { %v9656_v5 = vpop.eup %9655  ;;  %6937 = vst [vmem:[%s13053_s14 + $0x1c0] sm:$0xff] %v9654_v7  ;;  %v8994_v58 = vadd.f32 %v8993_v60, %v6814_v29  ;;  %v6595_v8 = vpop.f32.mrb[32].mxu0 }
 0x6cb   : > { %6938 = vst [vmem:[%s13053_s14 + $0x1c8] sm:$0xff] %v9656_v5  ;;  %9665 = vtanh.f32 %v8991_v21  ;;  %v8812_v1 = vadd.f32 %v8811_v27, %v6595_v8  ;;  %v6597_v36 = vpop.f32.mrb[33].mxu0 }
 0x6cc   : > { %9667 = vtanh.f32 %v8994_v58  ;;  %v8814_v50 = vadd.f32 %v8813_v55, %v6597_v36 }
 0x6cd   : > { %v9658_v43 = vpop.eup %9657  ;;  %9669 = vtanh.f32 %v8812_v1 }
 0x6ce   : > { %v9660_v44 = vpop.eup %9659  ;;  %6939 = vst [vmem:[%s13053_s14 + $0x1d0] sm:$0xff] %v9658_v43  ;;  %9671 = vtanh.f32 %v8814_v50  ;;  %v6602_v11 = vpop.f32.mrb[34].mxu0 }
 0x6cf   : > { %6940 = vst [vmem:[%s13053_s14 + $0x1d8] sm:$0xff] %v9660_v44  ;;  %v8816_v24 = vadd.f32 %v8815_v12, %v6602_v11  ;;  %v6604_v20 = vpop.f32.mrb[35].mxu0 }
 0x6d0   : > { %v8818_v57 = vadd.f32 %v8817_v28, %v6604_v20 }
 0x6d1   : > { %v9662_v34 = vpop.eup %9661  ;;  %9673 = vtanh.f32 %v8816_v24 }
 0x6d2   : > { %v9664_v17 = vpop.eup %9663  ;;  %6941 = vst [vmem:[%s13053_s14 + $0x1e0] sm:$0xff] %v9662_v34  ;;  %9675 = vtanh.f32 %v8818_v57  ;;  %v6609_v56 = vpop.f32.mrb[36].mxu0 }
 0x6d3   : > { %6942 = vst [vmem:[%s13053_s14 + $0x1e8] sm:$0xff] %v9664_v17  ;;  %v8820_v29 = vadd.f32 %v8819_v62, %v6609_v56  ;;  %v6611_v9 = vpop.f32.mrb[37].mxu0 }
 0x6d4   : > { %v8822_v25 = vadd.f32 %v8821_v23, %v6611_v9 }
 0x6d5   : > { %v9666_v35 = vpop.eup %9665  ;;  %9677 = vtanh.f32 %v8820_v29 }
 0x6d6   : > { %v9668_v47 = vpop.eup %9667  ;;  %6943 = vst [vmem:[%s13053_s14 + $0x1f0] sm:$0xff] %v9666_v35  ;;  %9679 = vtanh.f32 %v8822_v25  ;;  %v6616_v2 = vpop.f32.mrb[38].mxu0 }
 0x6d7   : > { %v9670_v4 = vpop.eup %9669  ;;  %6944 = vst [vmem:[%s13053_s14 + $0x1f8] sm:$0xff] %v9668_v47  ;;  %v8824_v13 = vadd.f32 %v8823_v51, %v6616_v2  ;;  %v6618_v45 = vpop.f32.mrb[39].mxu0 }
 0x6d8   : > { %v9672_v0 = vpop.eup %9671  ;;  %6881 = vst [vmem:[%s13053_s14] sm:$0xff] %v9670_v4  ;;  %v8826_v16 = vadd.f32 %v8825_v53, %v6618_v45 }
 0x6d9   : > { %6882 = vst [vmem:[%s13053_s14 + $0x8] sm:$0xff] %v9672_v0  ;;  %9681 = vtanh.f32 %v8824_v13 }
 0x6da   : > { %9683 = vtanh.f32 %v8826_v16 }
 0x6db   : > { %v9674_v49 = vpop.eup %9673 }
 0x6dc   : > { %v9676_v42 = vpop.eup %9675  ;;  %6883 = vst [vmem:[%s13053_s14 + $0x10] sm:$0xff] %v9674_v49 }
 0x6dd   : > { %6884 = vst [vmem:[%s13053_s14 + $0x18] sm:$0xff] %v9676_v42 }
 0x6df   : > { %v9678_v46 = vpop.eup %9677 }
 0x6e0   : > { %v9680_v41 = vpop.eup %9679  ;;  %6885 = vst [vmem:[%s13053_s14 + $0x20] sm:$0xff] %v9678_v46 }
 0x6e1   : > { %6886 = vst [vmem:[%s13053_s14 + $0x28] sm:$0xff] %v9680_v41 }
 0x6e3   : > { %v9682_v31 = vpop.eup %9681 }
 0x6e4   : > { %v9684_v40 = vpop.eup %9683  ;;  %6887 = vst [vmem:[%s13053_s14 + $0x30] sm:$0xff] %v9682_v31 }
 0x6e5   : > { %6888 = vst [vmem:[%s13053_s14 + $0x38] sm:$0xff] %v9684_v40 }
 0x6e6   : > { %9698 = shalt.err (!%p9695_p3)
}
 0x6e7   : > { %s9699_s29 = scalar_lea.hbm %s13230_s19, 8192  ;;  %s9703_s13 = scalar_lea.hbm %s13286_s7, 16384 }
 0x6e8   : > { %p9700_p4 = scmp.ne.s32.totalorder %s13230_s19, %s9699_s29  ;;  %p9704_p9 = scmp.lt.u32.totalorder %s13230_s19, %s13286_s7 }
 0x6e9   : > { %p9705_p10 = scmp.lt.u32.totalorder %s9703_s13, %s9699_s29  ;;  %p9707_p12 = scmp.lt.u32.totalorder %s9699_s29, %s13230_s19 }
 0x6ea   : > { %p9701_p7 = pnand %p9700_p4, %p9831_p5 }
 0x6eb   : > { %p9706_p11 = por %p9705_p10, %p9704_p9 }
 0x6ec   : > { %p9702_p8 = pneg %p9701_p7 }
 0x6ed   : > { %p9708_p13 = por %p9707_p12, %p9706_p11 }
 0x6ef   : > { %p9709_p0 = pnand %p9708_p13, %p9702_p8 }
 0x6f1   : > { %9712 = shalt.err (!%p9709_p0)
}
 0x6f2   : > { %s9751_s17 = smov 256   ;;  %s9752_s18 = smov 16  }
 0x6f3   : > { %9515 = dma.vmem_to_hbm [thread:$0]  (%p9831_p5), %s13232_s16, 8192, %s13230_s19, %s13238_s28, %s9751_s17, %s9751_s17, %s9752_s18  }
 0x6f4 PF: > { %p9521_p1 = scmp.ge.s32.totalorder %s9747_s27, 2  ;;  %s6975_s20 = sand.u32 1, %s9735_s24  }
 0x6f5   : > { %s6976_s21 = scalar_lea.sflag [#allocation3], %s6975_s20 }
 0x6f6   : > { %p9518_p2 = pnand %p9521_p1, %p9835_p6 }
 0x6f8   : > { %9730 = dma.done.wait (!%p9518_p2), %s6976_s21, 8192  }
 0x6f9   : > { %9732 = vsyncadd (!%p9518_p2), %s6976_s21, 4294959104  ;;  %p17_p3 = scmp.ge.s32.totalorder %s9818_s30, 4   ;;  %s14306_s24 = smov %s9739_s25 }
 0x6fa   : > { %s14307_s25 = smov %s9743_s26  ;;  %s14308_s26 = smov %s9829_s10 }
 0x6fb   : > { %s14309_s27 = smov %s9818_s30  ;;  %19 = sbr.rel (!%p17_p3) target bundleno = 3 (0x3), region = 83 }
 0x702   :  { %6981 = vsyncpa [#allocation3], 1 }
 0x703   :  { %6983 = vsyncpa [#allocation3 + $0x1], 1 }

</bundles_post_ra>
